<compile_context>
chip_gen: v6e
topology: v6e:2x2x1
jax: 0.10.0
libtpu: 0.0.40
codegen_flags: <defaults>
</compile_context>

<pallas_src>
import functools
import math

import numpy as np
import jax
import jax.numpy as jnp
from jax.experimental import pallas as pl
from jax.experimental.pallas import tpu as pltpu

COMPUTE_DTYPE = jnp.float32   # jnp.bfloat16 on v6e/v7x for ~2x DMA roofline (loosen tolerances)


# ----------------------------- helpers --------------------------------------

def _round_up(x, m):
    return ((x + m - 1) // m) * m


def _choose_row_tile(m, max_tile=2048):
    """Row tile (multiple of 8) aiming for >=2 grid steps; returns (tile, padded_m)."""
    mp = _round_up(max(m, 8), 8)
    tm = min(max_tile, _round_up(-(-mp // 2), 8))
    return tm, _round_up(mp, tm)


def _choose_batch_tile(b, max_images=64):
    """Images per grid step (multiple of 8, >=2 steps when the batch allows)."""
    bp = _round_up(max(b, 1), 8)
    tb = min(max_images, max(8, (bp // 2) // 8 * 8))
    return tb, _round_up(bp, tb)


def _pool_phase_patches(x, kh=5, kw=5):
    """x: (B,H,W,C) NHWC.  Returns the 4 pool-phase im2col patch tensors, each
    (B, PH, PW, kh*kw*C): entry (b,P,Q) of phase (u,v) is the conv patch of the
    pre-pool output position (2P+u, 2Q+v).  Column order is (kh, kw, cin)."""
    B, H, W, C = x.shape
    ph, pw = (H - kh + 1) // 2, (W - kw + 1) // 2
    phases = []
    for u in (0, 1):
        for v in (0, 1):
            cols = []
            for i in range(kh):
                for j in range(kw):
                    cols.append(x[:, u + i:u + i + 2 * ph:2,
                                  v + j:v + j + 2 * pw:2, :])
            phases.append(jnp.concatenate(cols, axis=-1))
    return phases, ph, pw


# ----------------------------- Pallas kernels -------------------------------

def _conv_pool_kernel(p_ref, w_ref, b_ref, o_ref):
    """conv(+bias)+ReLU+2x2 maxpool: elementwise max over 4 pool-phase patch
    matmuls; one weight tile stays resident across all 4 MXU calls."""
    w = w_ref[...]
    a = jnp.dot(p_ref[0], w, preferred_element_type=jnp.float32)
    a = jnp.maximum(a, jnp.dot(p_ref[1], w, preferred_element_type=jnp.float32))
    a = jnp.maximum(a, jnp.dot(p_ref[2], w, preferred_element_type=jnp.float32))
    a = jnp.maximum(a, jnp.dot(p_ref[3], w, preferred_element_type=jnp.float32))
    o_ref[...] = jnp.maximum(a + b_ref[...], 0.0).astype(o_ref.dtype)


def _conv2_fc_kernel(p_ref, w2_ref, b2_ref, w3_ref, b3_ref, w4_ref, b4_ref,
                     w5_ref, b5_ref, o_ref, *, tb):
    """conv2(+bias)+ReLU+pool fused with fc1+ReLU -> fc2+ReLU -> fc3.

    Patch rows are ordered (spatial s=P*5+Q, image) with `tb` images per tile,
    so the fc1 flatten is just 25 8-aligned slab dots against the
    (spatial, channel)-permuted fc1 weight: the (tb, 400) activation never
    needs a relayout and never touches HBM."""
    w2 = w2_ref[...]
    a = jnp.dot(p_ref[0], w2, preferred_element_type=jnp.float32)
    a = jnp.maximum(a, jnp.dot(p_ref[1], w2, preferred_element_type=jnp.float32))
    a = jnp.maximum(a, jnp.dot(p_ref[2], w2, preferred_element_type=jnp.float32))
    a = jnp.maximum(a, jnp.dot(p_ref[3], w2, preferred_element_type=jnp.float32))
    act = jnp.maximum(a + b2_ref[...], 0.0)          # (25*tb, 16), rows (s, b)
    act = act.astype(w3_ref.dtype)

    w3 = w3_ref[...]                                  # (400, 120), rows (s, c)
    h = jnp.zeros((tb, w3.shape[1]), jnp.float32)
    for s in range(25):                               # 8-aligned slabs -> no relayout
        h = h + jnp.dot(act[s * tb:(s + 1) * tb, :],
                        w3[s * 16:(s + 1) * 16, :],
                        preferred_element_type=jnp.float32)
    h = jnp.maximum(h + b3_ref[...], 0.0).astype(w4_ref.dtype)        # (tb, 120)
    h = jnp.maximum(jnp.dot(h, w4_ref[...], preferred_element_type=jnp.float32)
                    + b4_ref[...], 0.0).astype(w5_ref.dtype)          # (tb, 84)
    o_ref[...] = (jnp.dot(h, w5_ref[...], preferred_element_type=jnp.float32)
                  + b5_ref[...]).astype(o_ref.dtype)                  # (tb, 10)


# ----------------------------- forward ---------------------------------------

@jax.jit
def net_forward(x_nchw, params):
    B = x_nchw.shape[0]
    x = jnp.transpose(x_nchw, (0, 2, 3, 1)).astype(params["w1"].dtype)  # NHWC

    # ---------------- stage 1: conv1 + bias + ReLU + pool -------------------
    ph1, h1, w1s = _pool_phase_patches(x)             # 4 x (B,14,14,75)
    M1 = B * h1 * w1s
    p1 = jnp.stack([p.reshape(M1, 75) for p in ph1])  # (4, M1, 75), rows (b,P,Q)
    TM, Mpad = _choose_row_tile(M1)
    if Mpad != M1:
        p1 = jnp.pad(p1, ((0, 0), (0, Mpad - M1), (0, 0)))

    y1 = pl.pallas_call(
        _conv_pool_kernel,
        out_shape=jax.ShapeDtypeStruct((Mpad, 6), params["w2"].dtype),
        grid=(Mpad // TM,),
        in_specs=[pl.BlockSpec((4, TM, 75), lambda i: (0, i, 0)),
                  pl.BlockSpec(params["w1"].shape, lambda i: (0, 0)),
                  pl.BlockSpec(params["b1"].shape, lambda i: (0, 0))],
        out_specs=pl.BlockSpec((TM, 6), lambda i: (i, 0)),
        compiler_params=pltpu.CompilerParams(
            dimension_semantics=("parallel",)),
    )(p1, params["w1"], params["b1"])
    y1 = y1[:M1].reshape(B, h1, w1s, 6)               # (B,14,14,6)

    # -------- stage 2: conv2 + bias + ReLU + pool + fc1..fc3 (one call) -----
    ph2, h2, w2s = _pool_phase_patches(y1)            # 4 x (B,5,5,150)
    TB, Bpad = _choose_batch_tile(B)
    ntiles = Bpad // TB
    p2 = jnp.stack(ph2)                               # (4, B, 5, 5, 150)
    if Bpad != B:
        p2 = jnp.pad(p2, ((0, 0), (0, Bpad - B), (0, 0), (0, 0), (0, 0)))
    # Re-tile rows to (batch_tile, P, Q, image_in_tile) so each grid step gets a
    # contiguous block and the in-kernel 8-aligned per-spatial slabs line up.
    p2 = (p2.reshape(4, ntiles, TB, h2, w2s, 150)
            .transpose(0, 1, 3, 4, 2, 5)
            .reshape(4, Bpad * 25, 150))

    fc_keys = ("w2", "b2", "w3", "b3", "w4", "b4", "w5", "b5")
    out = pl.pallas_call(
        functools.partial(_conv2_fc_kernel, tb=TB),
        out_shape=jax.ShapeDtypeStruct((Bpad, 10), jnp.float32),
        grid=(ntiles,),
        in_specs=[pl.BlockSpec((4, 25 * TB, 150), lambda i: (0, i, 0))] + [
            pl.BlockSpec(params[k].shape, lambda i: (0, 0)) for k in fc_keys],
        out_specs=pl.BlockSpec((TB, 10), lambda i: (i, 0)),
        compiler_params=pltpu.CompilerParams(
            dimension_semantics=("parallel",)),
    )(p2, *[params[k] for k in fc_keys])
    return out[:B]


# ----------------------------- params ----------------------------------------

def init_params(key, dtype=COMPUTE_DTYPE):
    """Synthetic PyTorch-default-style params in compact kernel layouts."""
    def uni(k, shape, fan_in):
        bound = 1.0 / math.sqrt(fan_in)
        return jax.random.uniform(k, shape, jnp.float32, -bound, bound)

    ks = jax.random.split(key, 10)
    w1 = uni(ks[0], (5, 5, 3, 6), 75);     b1 = uni(ks[1], (6,), 75)
    w2 = uni(ks[2], (5, 5, 6, 16), 150);   b2 = uni(ks[3], (16,), 150)
    w3 = uni(ks[4], (400, 120), 400);      b3 = uni(ks[5], (120,), 400)
    w4 = uni(ks[6], (120, 84), 120);       b4 = uni(ks[7], (84,), 120)
    w5 = uni(ks[8], (84, 10), 84);         b5 = uni(ks[9], (10,), 84)

    # fc1 rows re-ordered once from PyTorch's (C,H,W) flatten to the kernel's
    # (spatial s = P*5+Q, channel) slab order -> no activation transpose/reshape.
    perm = np.array([c * 25 + s for s in range(25) for c in range(16)],
                    dtype=np.int32)

    return {
        "w1": w1.reshape(75, 6).astype(dtype),    "b1": b1.reshape(1, 6),
        "w2": w2.reshape(150, 16).astype(dtype),  "b2": b2.reshape(1, 16),
        "w3": w3[perm, :].astype(dtype),          "b3": b3.reshape(1, 120),
        "w4": w4.astype(dtype),                   "b4": b4.reshape(1, 84),
        "w5": w5.astype(dtype),                   "b5": b5.reshape(1, 10),
    }


# ----------------------------- pure-JAX reference -----------------------------

def reference_forward(x_nchw, p):
    hp = jax.lax.Precision.HIGHEST
    f32 = lambda a: a.astype(jnp.float32)
    x = jnp.transpose(x_nchw, (0, 2, 3, 1))

    def conv_stage(x, wmat, b, cin, cout):
        w = f32(wmat).reshape(5, 5, cin, cout)
        y = jax.lax.conv_general_dilated(
            x, w, (1, 1), "VALID",
            dimension_numbers=("NHWC", "HWIO", "NHWC"), precision=hp)
        y = jnp.maximum(y + b[0], 0.0)
        return jnp.max(jnp.stack([y[:, 0::2, 0::2, :], y[:, 0::2, 1::2, :],
                                  y[:, 1::2, 0::2, :], y[:, 1::2, 1::2, :]]),
                       axis=0)

    x = conv_stage(x, p["w1"], p["b1"], 3, 6)
    x = conv_stage(x, p["w2"], p["b2"], 6, 16)
    x = x.reshape(x.shape[0], 400)   # NHWC flatten == (s, c) row order of p["w3"]
    x = jnp.maximum(jnp.dot(x, f32(p["w3"]), precision=hp) + p["b3"][0], 0.0)
    x = jnp.maximum(jnp.dot(x, f32(p["w4"]), precision=hp) + p["b4"][0], 0.0)
    return jnp.dot(x, f32(p["w5"]), precision=hp) + p["b5"][0]


# ----------------------------- main ------------------------------------------

if __name__ == "__main__":
    key = jax.random.PRNGKey(0)
    kx, kp = jax.random.split(key)
    # The module implies CIFAR-style 3x32x32 inputs (16*5*5 flatten after 2x conv+pool).
    x = jax.random.normal(kx, (2, 3, 32, 32), jnp.float32)
    params = init_params(kp)

    out = jax.block_until_ready(net_forward(x, params))
    assert out.shape == (2, 10)
    assert out.dtype == jnp.float32

    ref = jax.block_until_ready(reference_forward(x, params))
    assert bool(jnp.allclose(out, ref, atol=2e-3, rtol=2e-3)), "mismatch vs reference"

    print("KERNEL_OK")
</pallas_src>

<mosaic_0001>
module attributes {stable_mosaic.version = 11 : i64} {
  func.func @_conv_pool_kernel(%arg0: i32, %arg1: memref<4x200x75xf32, #tpu.memory_space<vmem>>, %arg2: memref<75x6xf32, #tpu.memory_space<vmem>>, %arg3: memref<1x6xf32, #tpu.memory_space<vmem>>, %arg4: memref<200x6xf32, #tpu.memory_space<vmem>>) attributes {dimension_semantics = [#tpu.dimension_semantics<parallel>], iteration_bounds = array<i64: 2>, scalar_prefetch = 0 : i64, scratch_operands = 0 : i64, tpu.core_type = #tpu.core_type<tc>, window_params = [{transform_indices = @transform_0, window_bounds = array<i64: 4, 200, 75>}, {pipeline_mode = #tpu.pipeline_mode<synchronous>, transform_indices = @transform_1, window_bounds = array<i64: 75, 6>}, {pipeline_mode = #tpu.pipeline_mode<synchronous>, transform_indices = @transform_2, window_bounds = array<i64: 1, 6>}, {transform_indices = @transform_3, window_bounds = array<i64: 200, 6>}]} {
    %c0 = arith.constant 0 : index
    %c0_0 = arith.constant 0 : index
    %0 = vector.load %arg2[%c0, %c0_0] : memref<75x6xf32, #tpu.memory_space<vmem>>, vector<75x6xf32>
    %c0_1 = arith.constant 0 : index
    %c0_2 = arith.constant 0 : index
    %c0_3 = arith.constant 0 : index
    %1 = vector.load %arg1[%c0_1, %c0_2, %c0_3] : memref<4x200x75xf32, #tpu.memory_space<vmem>>, vector<1x200x75xf32>
    %2 = vector.shape_cast %1 : vector<1x200x75xf32> to vector<200x75xf32>
    %cst = arith.constant dense<0.000000e+00> : vector<200x6xf32>
    %3 = tpu.matmul %2, %0, %cst {dimension_numbers = #tpu.dot_dimension_numbers<[1], [0], [0], [1], [0, 0, 1, 1], [], []>} : vector<200x75xf32>, vector<75x6xf32>, vector<200x6xf32> -> vector<200x6xf32>
    %c1 = arith.constant 1 : index
    %c0_4 = arith.constant 0 : index
    %c0_5 = arith.constant 0 : index
    %4 = vector.load %arg1[%c1, %c0_4, %c0_5] : memref<4x200x75xf32, #tpu.memory_space<vmem>>, vector<1x200x75xf32>
    %5 = vector.shape_cast %4 : vector<1x200x75xf32> to vector<200x75xf32>
    %cst_6 = arith.constant dense<0.000000e+00> : vector<200x6xf32>
    %6 = tpu.matmul %5, %0, %cst_6 {dimension_numbers = #tpu.dot_dimension_numbers<[1], [0], [0], [1], [0, 0, 1, 1], [], []>} : vector<200x75xf32>, vector<75x6xf32>, vector<200x6xf32> -> vector<200x6xf32>
    %7 = arith.maximumf %3, %6 : vector<200x6xf32>
    %c2 = arith.constant 2 : index
    %c0_7 = arith.constant 0 : index
    %c0_8 = arith.constant 0 : index
    %8 = vector.load %arg1[%c2, %c0_7, %c0_8] : memref<4x200x75xf32, #tpu.memory_space<vmem>>, vector<1x200x75xf32>
    %9 = vector.shape_cast %8 : vector<1x200x75xf32> to vector<200x75xf32>
    %cst_9 = arith.constant dense<0.000000e+00> : vector<200x6xf32>
    %10 = tpu.matmul %9, %0, %cst_9 {dimension_numbers = #tpu.dot_dimension_numbers<[1], [0], [0], [1], [0, 0, 1, 1], [], []>} : vector<200x75xf32>, vector<75x6xf32>, vector<200x6xf32> -> vector<200x6xf32>
    %11 = arith.maximumf %7, %10 : vector<200x6xf32>
    %c3 = arith.constant 3 : index
    %c0_10 = arith.constant 0 : index
    %c0_11 = arith.constant 0 : index
    %12 = vector.load %arg1[%c3, %c0_10, %c0_11] : memref<4x200x75xf32, #tpu.memory_space<vmem>>, vector<1x200x75xf32>
    %13 = vector.shape_cast %12 : vector<1x200x75xf32> to vector<200x75xf32>
    %cst_12 = arith.constant dense<0.000000e+00> : vector<200x6xf32>
    %14 = tpu.matmul %13, %0, %cst_12 {dimension_numbers = #tpu.dot_dimension_numbers<[1], [0], [0], [1], [0, 0, 1, 1], [], []>} : vector<200x75xf32>, vector<75x6xf32>, vector<200x6xf32> -> vector<200x6xf32>
    %15 = arith.maximumf %11, %14 : vector<200x6xf32>
    %c0_13 = arith.constant 0 : index
    %c0_14 = arith.constant 0 : index
    %16 = vector.load %arg3[%c0_13, %c0_14] : memref<1x6xf32, #tpu.memory_space<vmem>>, vector<1x6xf32>
    %17 = vector.broadcast %16 : vector<1x6xf32> to vector<200x6xf32>
    %18 = arith.addf %15, %17 : vector<200x6xf32>
    %cst_15 = arith.constant 0.000000e+00 : f32
    %19 = vector.broadcast %cst_15 : f32 to vector<200x6xf32>
    %20 = arith.maximumf %18, %19 : vector<200x6xf32>
    %c0_16 = arith.constant 0 : index
    %c0_17 = arith.constant 0 : index
    %21 = vector.load %arg4[%c0_16, %c0_17] : memref<200x6xf32, #tpu.memory_space<vmem>>, vector<200x6xf32>
    tpu.vector_store %arg4[%c0_16, %c0_17], %20 {strides = array<i32>} : memref<200x6xf32, #tpu.memory_space<vmem>>, vector<200x6xf32>,
    return
  }
  func.func @transform_0(%arg0: i32) -> (i32, i32, i32) {
    %c0_i32 = arith.constant 0 : i32
    %c0_i32_0 = arith.constant 0 : i32
    %c0_i32_1 = arith.constant 0 : i32
    return %c0_i32, %arg0, %c0_i32_0 : i32, i32, i32
  }
  func.func @transform_1(%arg0: i32) -> (i32, i32) {
    %c0_i32 = arith.constant 0 : i32
    %c0_i32_0 = arith.constant 0 : i32
    %c0_i32_1 = arith.constant 0 : i32
    return %c0_i32, %c0_i32_0 : i32, i32
  }
  func.func @transform_2(%arg0: i32) -> (i32, i32) {
    %c0_i32 = arith.constant 0 : i32
    %c0_i32_0 = arith.constant 0 : i32
    %c0_i32_1 = arith.constant 0 : i32
    return %c0_i32, %c0_i32_0 : i32, i32
  }
  func.func @transform_3(%arg0: i32) -> (i32, i32) {
    %c0_i32 = arith.constant 0 : i32
    %c0_i32_0 = arith.constant 0 : i32
    return %arg0, %c0_i32 : i32, i32
  }
}

module attributes {stable_mosaic.version = 11 : i64} {
  func.func @_conv2_fc_kernel(%arg0: i32, %arg1: memref<4x200x150xf32, #tpu.memory_space<vmem>>, %arg2: memref<150x16xf32, #tpu.memory_space<vmem>>, %arg3: memref<1x16xf32, #tpu.memory_space<vmem>>, %arg4: memref<400x120xf32, #tpu.memory_space<vmem>>, %arg5: memref<1x120xf32, #tpu.memory_space<vmem>>, %arg6: memref<120x84xf32, #tpu.memory_space<vmem>>, %arg7: memref<1x84xf32, #tpu.memory_space<vmem>>, %arg8: memref<84x10xf32, #tpu.memory_space<vmem>>, %arg9: memref<1x10xf32, #tpu.memory_space<vmem>>, %arg10: memref<8x10xf32, #tpu.memory_space<vmem>>) attributes {dimension_semantics = [#tpu.dimension_semantics<parallel>], iteration_bounds = array<i64: 1>, scalar_prefetch = 0 : i64, scratch_operands = 0 : i64, tpu.core_type = #tpu.core_type<tc>, window_params = [{transform_indices = @transform_0, window_bounds = array<i64: 4, 200, 150>}, {pipeline_mode = #tpu.pipeline_mode<synchronous>, transform_indices = @transform_1, window_bounds = array<i64: 150, 16>}, {pipeline_mode = #tpu.pipeline_mode<synchronous>, transform_indices = @transform_2, window_bounds = array<i64: 1, 16>}, {pipeline_mode = #tpu.pipeline_mode<synchronous>, transform_indices = @transform_3, window_bounds = array<i64: 400, 120>}, {pipeline_mode = #tpu.pipeline_mode<synchronous>, transform_indices = @transform_4, window_bounds = array<i64: 1, 120>}, {pipeline_mode = #tpu.pipeline_mode<synchronous>, transform_indices = @transform_5, window_bounds = array<i64: 120, 84>}, {pipeline_mode = #tpu.pipeline_mode<synchronous>, transform_indices = @transform_6, window_bounds = array<i64: 1, 84>}, {pipeline_mode = #tpu.pipeline_mode<synchronous>, transform_indices = @transform_7, window_bounds = array<i64: 84, 10>}, {pipeline_mode = #tpu.pipeline_mode<synchronous>, transform_indices = @transform_8, window_bounds = array<i64: 1, 10>}, {transform_indices = @transform_9, window_bounds = array<i64: 8, 10>}]} {
    %c0 = arith.constant 0 : index
    %c0_0 = arith.constant 0 : index
    %0 = vector.load %arg2[%c0, %c0_0] : memref<150x16xf32, #tpu.memory_space<vmem>>, vector<150x16xf32>
    %c0_1 = arith.constant 0 : index
    %c0_2 = arith.constant 0 : index
    %c0_3 = arith.constant 0 : index
    %1 = vector.load %arg1[%c0_1, %c0_2, %c0_3] : memref<4x200x150xf32, #tpu.memory_space<vmem>>, vector<1x200x150xf32>
    %2 = vector.shape_cast %1 : vector<1x200x150xf32> to vector<200x150xf32>
    %cst = arith.constant dense<0.000000e+00> : vector<200x16xf32>
    %3 = tpu.matmul %2, %0, %cst {dimension_numbers = #tpu.dot_dimension_numbers<[1], [0], [0], [1], [0, 0, 1, 1], [], []>} : vector<200x150xf32>, vector<150x16xf32>, vector<200x16xf32> -> vector<200x16xf32>
    %c1 = arith.constant 1 : index
    %c0_4 = arith.constant 0 : index
    %c0_5 = arith.constant 0 : index
    %4 = vector.load %arg1[%c1, %c0_4, %c0_5] : memref<4x200x150xf32, #tpu.memory_space<vmem>>, vector<1x200x150xf32>
    %5 = vector.shape_cast %4 : vector<1x200x150xf32> to vector<200x150xf32>
    %cst_6 = arith.constant dense<0.000000e+00> : vector<200x16xf32>
    %6 = tpu.matmul %5, %0, %cst_6 {dimension_numbers = #tpu.dot_dimension_numbers<[1], [0], [0], [1], [0, 0, 1, 1], [], []>} : vector<200x150xf32>, vector<150x16xf32>, vector<200x16xf32> -> vector<200x16xf32>
    %7 = arith.maximumf %3, %6 : vector<200x16xf32>
    %c2 = arith.constant 2 : index
    %c0_7 = arith.constant 0 : index
    %c0_8 = arith.constant 0 : index
    %8 = vector.load %arg1[%c2, %c0_7, %c0_8] : memref<4x200x150xf32, #tpu.memory_space<vmem>>, vector<1x200x150xf32>
    %9 = vector.shape_cast %8 : vector<1x200x150xf32> to vector<200x150xf32>
    %cst_9 = arith.constant dense<0.000000e+00> : vector<200x16xf32>
    %10 = tpu.matmul %9, %0, %cst_9 {dimension_numbers = #tpu.dot_dimension_numbers<[1], [0], [0], [1], [0, 0, 1, 1], [], []>} : vector<200x150xf32>, vector<150x16xf32>, vector<200x16xf32> -> vector<200x16xf32>
    %11 = arith.maximumf %7, %10 : vector<200x16xf32>
    %c3 = arith.constant 3 : index
    %c0_10 = arith.constant 0 : index
    %c0_11 = arith.constant 0 : index
    %12 = vector.load %arg1[%c3, %c0_10, %c0_11] : memref<4x200x150xf32, #tpu.memory_space<vmem>>, vector<1x200x150xf32>
    %13 = vector.shape_cast %12 : vector<1x200x150xf32> to vector<200x150xf32>
    %cst_12 = arith.constant dense<0.000000e+00> : vector<200x16xf32>
    %14 = tpu.matmul %13, %0, %cst_12 {dimension_numbers = #tpu.dot_dimension_numbers<[1], [0], [0], [1], [0, 0, 1, 1], [], []>} : vector<200x150xf32>, vector<150x16xf32>, vector<200x16xf32> -> vector<200x16xf32>
    %15 = arith.maximumf %11, %14 : vector<200x16xf32>
    %c0_13 = arith.constant 0 : index
    %c0_14 = arith.constant 0 : index
    %16 = vector.load %arg3[%c0_13, %c0_14] : memref<1x16xf32, #tpu.memory_space<vmem>>, vector<1x16xf32>
    %17 = vector.broadcast %16 : vector<1x16xf32> to vector<200x16xf32>
    %18 = arith.addf %15, %17 : vector<200x16xf32>
    %cst_15 = arith.constant 0.000000e+00 : f32
    %19 = vector.broadcast %cst_15 : f32 to vector<200x16xf32>
    %20 = arith.maximumf %18, %19 : vector<200x16xf32>
    %c0_16 = arith.constant 0 : index
    %c0_17 = arith.constant 0 : index
    %21 = vector.load %arg4[%c0_16, %c0_17] : memref<400x120xf32, #tpu.memory_space<vmem>>, vector<400x120xf32>
    %cst_18 = arith.constant 0.000000e+00 : f32
    %22 = vector.broadcast %cst_18 : f32 to vector<8x120xf32>
    %23 = vector.extract_strided_slice %20 {offsets = [0, 0], sizes = [8, 16], strides = [1, 1]} : vector<200x16xf32> to vector<8x16xf32>
    %24 = vector.extract_strided_slice %21 {offsets = [0, 0], sizes = [16, 120], strides = [1, 1]} : vector<400x120xf32> to vector<16x120xf32>
    %cst_19 = arith.constant dense<0.000000e+00> : vector<8x120xf32>
    %25 = tpu.matmul %23, %24, %cst_19 {dimension_numbers = #tpu.dot_dimension_numbers<[1], [0], [0], [1], [0, 0, 1, 1], [], []>} : vector<8x16xf32>, vector<16x120xf32>, vector<8x120xf32> -> vector<8x120xf32>
    %26 = arith.addf %22, %25 : vector<8x120xf32>
    %27 = vector.extract_strided_slice %20 {offsets = [8, 0], sizes = [8, 16], strides = [1, 1]} : vector<200x16xf32> to vector<8x16xf32>
    %28 = vector.extract_strided_slice %21 {offsets = [16, 0], sizes = [16, 120], strides = [1, 1]} : vector<400x120xf32> to vector<16x120xf32>
    %cst_20 = arith.constant dense<0.000000e+00> : vector<8x120xf32>
    %29 = tpu.matmul %27, %28, %cst_20 {dimension_numbers = #tpu.dot_dimension_numbers<[1], [0], [0], [1], [0, 0, 1, 1], [], []>} : vector<8x16xf32>, vector<16x120xf32>, vector<8x120xf32> -> vector<8x120xf32>
    %30 = arith.addf %26, %29 : vector<8x120xf32>
    %31 = vector.extract_strided_slice %20 {offsets = [16, 0], sizes = [8, 16], strides = [1, 1]} : vector<200x16xf32> to vector<8x16xf32>
    %32 = vector.extract_strided_slice %21 {offsets = [32, 0], sizes = [16, 120], strides = [1, 1]} : vector<400x120xf32> to vector<16x120xf32>
    %cst_21 = arith.constant dense<0.000000e+00> : vector<8x120xf32>
    %33 = tpu.matmul %31, %32, %cst_21 {dimension_numbers = #tpu.dot_dimension_numbers<[1], [0], [0], [1], [0, 0, 1, 1], [], []>} : vector<8x16xf32>, vector<16x120xf32>, vector<8x120xf32> -> vector<8x120xf32>
    %34 = arith.addf %30, %33 : vector<8x120xf32>
    %35 = vector.extract_strided_slice %20 {offsets = [24, 0], sizes = [8, 16], strides = [1, 1]} : vector<200x16xf32> to vector<8x16xf32>
    %36 = vector.extract_strided_slice %21 {offsets = [48, 0], sizes = [16, 120], strides = [1, 1]} : vector<400x120xf32> to vector<16x120xf32>
    %cst_22 = arith.constant dense<0.000000e+00> : vector<8x120xf32>
    %37 = tpu.matmul %35, %36, %cst_22 {dimension_numbers = #tpu.dot_dimension_numbers<[1], [0], [0], [1], [0, 0, 1, 1], [], []>} : vector<8x16xf32>, vector<16x120xf32>, vector<8x120xf32> -> vector<8x120xf32>
    %38 = arith.addf %34, %37 : vector<8x120xf32>
    %39 = vector.extract_strided_slice %20 {offsets = [32, 0], sizes = [8, 16], strides = [1, 1]} : vector<200x16xf32> to vector<8x16xf32>
    %40 = vector.extract_strided_slice %21 {offsets = [64, 0], sizes = [16, 120], strides = [1, 1]} : vector<400x120xf32> to vector<16x120xf32>
    %cst_23 = arith.constant dense<0.000000e+00> : vector<8x120xf32>
    %41 = tpu.matmul %39, %40, %cst_23 {dimension_numbers = #tpu.dot_dimension_numbers<[1], [0], [0], [1], [0, 0, 1, 1], [], []>} : vector<8x16xf32>, vector<16x120xf32>, vector<8x120xf32> -> vector<8x120xf32>
    %42 = arith.addf %38, %41 : vector<8x120xf32>
    %43 = vector.extract_strided_slice %20 {offsets = [40, 0], sizes = [8, 16], strides = [1, 1]} : vector<200x16xf32> to vector<8x16xf32>
    %44 = vector.extract_strided_slice %21 {offsets = [80, 0], sizes = [16, 120], strides = [1, 1]} : vector<400x120xf32> to vector<16x120xf32>
    %cst_24 = arith.constant dense<0.000000e+00> : vector<8x120xf32>
    %45 = tpu.matmul %43, %44, %cst_24 {dimension_numbers = #tpu.dot_dimension_numbers<[1], [0], [0], [1], [0, 0, 1, 1], [], []>} : vector<8x16xf32>, vector<16x120xf32>, vector<8x120xf32> -> vector<8x120xf32>
    %46 = arith.addf %42, %45 : vector<8x120xf32>
    %47 = vector.extract_strided_slice %20 {offsets = [48, 0], sizes = [8, 16], strides = [1, 1]} : vector<200x16xf32> to vector<8x16xf32>
    %48 = vector.extract_strided_slice %21 {offsets = [96, 0], sizes = [16, 120], strides = [1, 1]} : vector<400x120xf32> to vector<16x120xf32>
    %cst_25 = arith.constant dense<0.000000e+00> : vector<8x120xf32>
    %49 = tpu.matmul %47, %48, %cst_25 {dimension_numbers = #tpu.dot_dimension_numbers<[1], [0], [0], [1], [0, 0, 1, 1], [], []>} : vector<8x16xf32>, vector<16x120xf32>, vector<8x120xf32> -> vector<8x120xf32>
    %50 = arith.addf %46, %49 : vector<8x120xf32>
    %51 = vector.extract_strided_slice %20 {offsets = [56, 0], sizes = [8, 16], strides = [1, 1]} : vector<200x16xf32> to vector<8x16xf32>
    %52 = vector.extract_strided_slice %21 {offsets = [112, 0], sizes = [16, 120], strides = [1, 1]} : vector<400x120xf32> to vector<16x120xf32>
    %cst_26 = arith.constant dense<0.000000e+00> : vector<8x120xf32>
    %53 = tpu.matmul %51, %52, %cst_26 {dimension_numbers = #tpu.dot_dimension_numbers<[1], [0], [0], [1], [0, 0, 1, 1], [], []>} : vector<8x16xf32>, vector<16x120xf32>, vector<8x120xf32> -> vector<8x120xf32>
    %54 = arith.addf %50, %53 : vector<8x120xf32>
    %55 = vector.extract_strided_slice %20 {offsets = [64, 0], sizes = [8, 16], strides = [1, 1]} : vector<200x16xf32> to vector<8x16xf32>
    %56 = vector.extract_strided_slice %21 {offsets = [128, 0], sizes = [16, 120], strides = [1, 1]} : vector<400x120xf32> to vector<16x120xf32>
    %cst_27 = arith.constant dense<0.000000e+00> : vector<8x120xf32>
    %57 = tpu.matmul %55, %56, %cst_27 {dimension_numbers = #tpu.dot_dimension_numbers<[1], [0], [0], [1], [0, 0, 1, 1], [], []>} : vector<8x16xf32>, vector<16x120xf32>, vector<8x120xf32> -> vector<8x120xf32>
    %58 = arith.addf %54, %57 : vector<8x120xf32>
    %59 = vector.extract_strided_slice %20 {offsets = [72, 0], sizes = [8, 16], strides = [1, 1]} : vector<200x16xf32> to vector<8x16xf32>
    %60 = vector.extract_strided_slice %21 {offsets = [144, 0], sizes = [16, 120], strides = [1, 1]} : vector<400x120xf32> to vector<16x120xf32>
    %cst_28 = arith.constant dense<0.000000e+00> : vector<8x120xf32>
    %61 = tpu.matmul %59, %60, %cst_28 {dimension_numbers = #tpu.dot_dimension_numbers<[1], [0], [0], [1], [0, 0, 1, 1], [], []>} : vector<8x16xf32>, vector<16x120xf32>, vector<8x120xf32> -> vector<8x120xf32>
    %62 = arith.addf %58, %61 : vector<8x120xf32>
    %63 = vector.extract_strided_slice %20 {offsets = [80, 0], sizes = [8, 16], strides = [1, 1]} : vector<200x16xf32> to vector<8x16xf32>
    %64 = vector.extract_strided_slice %21 {offsets = [160, 0], sizes = [16, 120], strides = [1, 1]} : vector<400x120xf32> to vector<16x120xf32>
    %cst_29 = arith.constant dense<0.000000e+00> : vector<8x120xf32>
    %65 = tpu.matmul %63, %64, %cst_29 {dimension_numbers = #tpu.dot_dimension_numbers<[1], [0], [0], [1], [0, 0, 1, 1], [], []>} : vector<8x16xf32>, vector<16x120xf32>, vector<8x120xf32> -> vector<8x120xf32>
    %66 = arith.addf %62, %65 : vector<8x120xf32>
    %67 = vector.extract_strided_slice %20 {offsets = [88, 0], sizes = [8, 16], strides = [1, 1]} : vector<200x16xf32> to vector<8x16xf32>
    %68 = vector.extract_strided_slice %21 {offsets = [176, 0], sizes = [16, 120], strides = [1, 1]} : vector<400x120xf32> to vector<16x120xf32>
    %cst_30 = arith.constant dense<0.000000e+00> : vector<8x120xf32>
    %69 = tpu.matmul %67, %68, %cst_30 {dimension_numbers = #tpu.dot_dimension_numbers<[1], [0], [0], [1], [0, 0, 1, 1], [], []>} : vector<8x16xf32>, vector<16x120xf32>, vector<8x120xf32> -> vector<8x120xf32>
    %70 = arith.addf %66, %69 : vector<8x120xf32>
    %71 = vector.extract_strided_slice %20 {offsets = [96, 0], sizes = [8, 16], strides = [1, 1]} : vector<200x16xf32> to vector<8x16xf32>
    %72 = vector.extract_strided_slice %21 {offsets = [192, 0], sizes = [16, 120], strides = [1, 1]} : vector<400x120xf32> to vector<16x120xf32>
    %cst_31 = arith.constant dense<0.000000e+00> : vector<8x120xf32>
    %73 = tpu.matmul %71, %72, %cst_31 {dimension_numbers = #tpu.dot_dimension_numbers<[1], [0], [0], [1], [0, 0, 1, 1], [], []>} : vector<8x16xf32>, vector<16x120xf32>, vector<8x120xf32> -> vector<8x120xf32>
    %74 = arith.addf %70, %73 : vector<8x120xf32>
    %75 = vector.extract_strided_slice %20 {offsets = [104, 0], sizes = [8, 16], strides = [1, 1]} : vector<200x16xf32> to vector<8x16xf32>
    %76 = vector.extract_strided_slice %21 {offsets = [208, 0], sizes = [16, 120], strides = [1, 1]} : vector<400x120xf32> to vector<16x120xf32>
    %cst_32 = arith.constant dense<0.000000e+00> : vector<8x120xf32>
    %77 = tpu.matmul %75, %76, %cst_32 {dimension_numbers = #tpu.dot_dimension_numbers<[1], [0], [0], [1], [0, 0, 1, 1], [], []>} : vector<8x16xf32>, vector<16x120xf32>, vector<8x120xf32> -> vector<8x120xf32>
    %78 = arith.addf %74, %77 : vector<8x120xf32>
    %79 = vector.extract_strided_slice %20 {offsets = [112, 0], sizes = [8, 16], strides = [1, 1]} : vector<200x16xf32> to vector<8x16xf32>
    %80 = vector.extract_strided_slice %21 {offsets = [224, 0], sizes = [16, 120], strides = [1, 1]} : vector<400x120xf32> to vector<16x120xf32>
    %cst_33 = arith.constant dense<0.000000e+00> : vector<8x120xf32>
    %81 = tpu.matmul %79, %80, %cst_33 {dimension_numbers = #tpu.dot_dimension_numbers<[1], [0], [0], [1], [0, 0, 1, 1], [], []>} : vector<8x16xf32>, vector<16x120xf32>, vector<8x120xf32> -> vector<8x120xf32>
    %82 = arith.addf %78, %81 : vector<8x120xf32>
    %83 = vector.extract_strided_slice %20 {offsets = [120, 0], sizes = [8, 16], strides = [1, 1]} : vector<200x16xf32> to vector<8x16xf32>
    %84 = vector.extract_strided_slice %21 {offsets = [240, 0], sizes = [16, 120], strides = [1, 1]} : vector<400x120xf32> to vector<16x120xf32>
    %cst_34 = arith.constant dense<0.000000e+00> : vector<8x120xf32>
    %85 = tpu.matmul %83, %84, %cst_34 {dimension_numbers = #tpu.dot_dimension_numbers<[1], [0], [0], [1], [0, 0, 1, 1], [], []>} : vector<8x16xf32>, vector<16x120xf32>, vector<8x120xf32> -> vector<8x120xf32>
    %86 = arith.addf %82, %85 : vector<8x120xf32>
    %87 = vector.extract_strided_slice %20 {offsets = [128, 0], sizes = [8, 16], strides = [1, 1]} : vector<200x16xf32> to vector<8x16xf32>
    %88 = vector.extract_strided_slice %21 {offsets = [256, 0], sizes = [16, 120], strides = [1, 1]} : vector<400x120xf32> to vector<16x120xf32>
    %cst_35 = arith.constant dense<0.000000e+00> : vector<8x120xf32>
    %89 = tpu.matmul %87, %88, %cst_35 {dimension_numbers = #tpu.dot_dimension_numbers<[1], [0], [0], [1], [0, 0, 1, 1], [], []>} : vector<8x16xf32>, vector<16x120xf32>, vector<8x120xf32> -> vector<8x120xf32>
    %90 = arith.addf %86, %89 : vector<8x120xf32>
    %91 = vector.extract_strided_slice %20 {offsets = [136, 0], sizes = [8, 16], strides = [1, 1]} : vector<200x16xf32> to vector<8x16xf32>
    %92 = vector.extract_strided_slice %21 {offsets = [272, 0], sizes = [16, 120], strides = [1, 1]} : vector<400x120xf32> to vector<16x120xf32>
    %cst_36 = arith.constant dense<0.000000e+00> : vector<8x120xf32>
    %93 = tpu.matmul %91, %92, %cst_36 {dimension_numbers = #tpu.dot_dimension_numbers<[1], [0], [0], [1], [0, 0, 1, 1], [], []>} : vector<8x16xf32>, vector<16x120xf32>, vector<8x120xf32> -> vector<8x120xf32>
    %94 = arith.addf %90, %93 : vector<8x120xf32>
    %95 = vector.extract_strided_slice %20 {offsets = [144, 0], sizes = [8, 16], strides = [1, 1]} : vector<200x16xf32> to vector<8x16xf32>
    %96 = vector.extract_strided_slice %21 {offsets = [288, 0], sizes = [16, 120], strides = [1, 1]} : vector<400x120xf32> to vector<16x120xf32>
    %cst_37 = arith.constant dense<0.000000e+00> : vector<8x120xf32>
    %97 = tpu.matmul %95, %96, %cst_37 {dimension_numbers = #tpu.dot_dimension_numbers<[1], [0], [0], [1], [0, 0, 1, 1], [], []>} : vector<8x16xf32>, vector<16x120xf32>, vector<8x120xf32> -> vector<8x120xf32>
    %98 = arith.addf %94, %97 : vector<8x120xf32>
    %99 = vector.extract_strided_slice %20 {offsets = [152, 0], sizes = [8, 16], strides = [1, 1]} : vector<200x16xf32> to vector<8x16xf32>
    %100 = vector.extract_strided_slice %21 {offsets = [304, 0], sizes = [16, 120], strides = [1, 1]} : vector<400x120xf32> to vector<16x120xf32>
    %cst_38 = arith.constant dense<0.000000e+00> : vector<8x120xf32>
    %101 = tpu.matmul %99, %100, %cst_38 {dimension_numbers = #tpu.dot_dimension_numbers<[1], [0], [0], [1], [0, 0, 1, 1], [], []>} : vector<8x16xf32>, vector<16x120xf32>, vector<8x120xf32> -> vector<8x120xf32>
    %102 = arith.addf %98, %101 : vector<8x120xf32>
    %103 = vector.extract_strided_slice %20 {offsets = [160, 0], sizes = [8, 16], strides = [1, 1]} : vector<200x16xf32> to vector<8x16xf32>
    %104 = vector.extract_strided_slice %21 {offsets = [320, 0], sizes = [16, 120], strides = [1, 1]} : vector<400x120xf32> to vector<16x120xf32>
    %cst_39 = arith.constant dense<0.000000e+00> : vector<8x120xf32>
    %105 = tpu.matmul %103, %104, %cst_39 {dimension_numbers = #tpu.dot_dimension_numbers<[1], [0], [0], [1], [0, 0, 1, 1], [], []>} : vector<8x16xf32>, vector<16x120xf32>, vector<8x120xf32> -> vector<8x120xf32>
    %106 = arith.addf %102, %105 : vector<8x120xf32>
    %107 = vector.extract_strided_slice %20 {offsets = [168, 0], sizes = [8, 16], strides = [1, 1]} : vector<200x16xf32> to vector<8x16xf32>
    %108 = vector.extract_strided_slice %21 {offsets = [336, 0], sizes = [16, 120], strides = [1, 1]} : vector<400x120xf32> to vector<16x120xf32>
    %cst_40 = arith.constant dense<0.000000e+00> : vector<8x120xf32>
    %109 = tpu.matmul %107, %108, %cst_40 {dimension_numbers = #tpu.dot_dimension_numbers<[1], [0], [0], [1], [0, 0, 1, 1], [], []>} : vector<8x16xf32>, vector<16x120xf32>, vector<8x120xf32> -> vector<8x120xf32>
    %110 = arith.addf %106, %109 : vector<8x120xf32>
    %111 = vector.extract_strided_slice %20 {offsets = [176, 0], sizes = [8, 16], strides = [1, 1]} : vector<200x16xf32> to vector<8x16xf32>
    %112 = vector.extract_strided_slice %21 {offsets = [352, 0], sizes = [16, 120], strides = [1, 1]} : vector<400x120xf32> to vector<16x120xf32>
    %cst_41 = arith.constant dense<0.000000e+00> : vector<8x120xf32>
    %113 = tpu.matmul %111, %112, %cst_41 {dimension_numbers = #tpu.dot_dimension_numbers<[1], [0], [0], [1], [0, 0, 1, 1], [], []>} : vector<8x16xf32>, vector<16x120xf32>, vector<8x120xf32> -> vector<8x120xf32>
    %114 = arith.addf %110, %113 : vector<8x120xf32>
    %115 = vector.extract_strided_slice %20 {offsets = [184, 0], sizes = [8, 16], strides = [1, 1]} : vector<200x16xf32> to vector<8x16xf32>
    %116 = vector.extract_strided_slice %21 {offsets = [368, 0], sizes = [16, 120], strides = [1, 1]} : vector<400x120xf32> to vector<16x120xf32>
    %cst_42 = arith.constant dense<0.000000e+00> : vector<8x120xf32>
    %117 = tpu.matmul %115, %116, %cst_42 {dimension_numbers = #tpu.dot_dimension_numbers<[1], [0], [0], [1], [0, 0, 1, 1], [], []>} : vector<8x16xf32>, vector<16x120xf32>, vector<8x120xf32> -> vector<8x120xf32>
    %118 = arith.addf %114, %117 : vector<8x120xf32>
    %119 = vector.extract_strided_slice %20 {offsets = [192, 0], sizes = [8, 16], strides = [1, 1]} : vector<200x16xf32> to vector<8x16xf32>
    %120 = vector.extract_strided_slice %21 {offsets = [384, 0], sizes = [16, 120], strides = [1, 1]} : vector<400x120xf32> to vector<16x120xf32>
    %cst_43 = arith.constant dense<0.000000e+00> : vector<8x120xf32>
    %121 = tpu.matmul %119, %120, %cst_43 {dimension_numbers = #tpu.dot_dimension_numbers<[1], [0], [0], [1], [0, 0, 1, 1], [], []>} : vector<8x16xf32>, vector<16x120xf32>, vector<8x120xf32> -> vector<8x120xf32>
    %122 = arith.addf %118, %121 : vector<8x120xf32>
    %c0_44 = arith.constant 0 : index
    %c0_45 = arith.constant 0 : index
    %123 = vector.load %arg5[%c0_44, %c0_45] : memref<1x120xf32, #tpu.memory_space<vmem>>, vector<1x120xf32>
    %124 = vector.broadcast %123 : vector<1x120xf32> to vector<8x120xf32>
    %125 = arith.addf %122, %124 : vector<8x120xf32>
    %cst_46 = arith.constant 0.000000e+00 : f32
    %126 = vector.broadcast %cst_46 : f32 to vector<8x120xf32>
    %127 = arith.maximumf %125, %126 : vector<8x120xf32>
    %c0_47 = arith.constant 0 : index
    %c0_48 = arith.constant 0 : index
    %128 = vector.load %arg6[%c0_47, %c0_48] : memref<120x84xf32, #tpu.memory_space<vmem>>, vector<120x84xf32>
    %cst_49 = arith.constant dense<0.000000e+00> : vector<8x84xf32>
    %129 = tpu.matmul %127, %128, %cst_49 {dimension_numbers = #tpu.dot_dimension_numbers<[1], [0], [0], [1], [0, 0, 1, 1], [], []>} : vector<8x120xf32>, vector<120x84xf32>, vector<8x84xf32> -> vector<8x84xf32>
    %c0_50 = arith.constant 0 : index
    %c0_51 = arith.constant 0 : index
    %130 = vector.load %arg7[%c0_50, %c0_51] : memref<1x84xf32, #tpu.memory_space<vmem>>, vector<1x84xf32>
    %131 = vector.broadcast %130 : vector<1x84xf32> to vector<8x84xf32>
    %132 = arith.addf %129, %131 : vector<8x84xf32>
    %cst_52 = arith.constant 0.000000e+00 : f32
    %133 = vector.broadcast %cst_52 : f32 to vector<8x84xf32>
    %134 = arith.maximumf %132, %133 : vector<8x84xf32>
    %c0_53 = arith.constant 0 : index
    %c0_54 = arith.constant 0 : index
    %135 = vector.load %arg8[%c0_53, %c0_54] : memref<84x10xf32, #tpu.memory_space<vmem>>, vector<84x10xf32>
    %cst_55 = arith.constant dense<0.000000e+00> : vector<8x10xf32>
    %136 = tpu.matmul %134, %135, %cst_55 {dimension_numbers = #tpu.dot_dimension_numbers<[1], [0], [0], [1], [0, 0, 1, 1], [], []>} : vector<8x84xf32>, vector<84x10xf32>, vector<8x10xf32> -> vector<8x10xf32>
    %c0_56 = arith.constant 0 : index
    %c0_57 = arith.constant 0 : index
    %137 = vector.load %arg9[%c0_56, %c0_57] : memref<1x10xf32, #tpu.memory_space<vmem>>, vector<1x10xf32>
    %138 = vector.broadcast %137 : vector<1x10xf32> to vector<8x10xf32>
    %139 = arith.addf %136, %138 : vector<8x10xf32>
    %c0_58 = arith.constant 0 : index
    %c0_59 = arith.constant 0 : index
    %140 = vector.load %arg10[%c0_58, %c0_59] : memref<8x10xf32, #tpu.memory_space<vmem>>, vector<8x10xf32>
    tpu.vector_store %arg10[%c0_58, %c0_59], %139 {strides = array<i32>} : memref<8x10xf32, #tpu.memory_space<vmem>>, vector<8x10xf32>,
    return
  }
  func.func @transform_0(%arg0: i32) -> (i32, i32, i32) {
    %c0_i32 = arith.constant 0 : i32
    %c0_i32_0 = arith.constant 0 : i32
    %c0_i32_1 = arith.constant 0 : i32
    return %c0_i32, %arg0, %c0_i32_0 : i32, i32, i32
  }
  func.func @transform_1(%arg0: i32) -> (i32, i32) {
    %c0_i32 = arith.constant 0 : i32
    %c0_i32_0 = arith.constant 0 : i32
    %c0_i32_1 = arith.constant 0 : i32
    return %c0_i32, %c0_i32_0 : i32, i32
  }
  func.func @transform_2(%arg0: i32) -> (i32, i32) {
    %c0_i32 = arith.constant 0 : i32
    %c0_i32_0 = arith.constant 0 : i32
    %c0_i32_1 = arith.constant 0 : i32
    return %c0_i32, %c0_i32_0 : i32, i32
  }
  func.func @transform_3(%arg0: i32) -> (i32, i32) {
    %c0_i32 = arith.constant 0 : i32
    %c0_i32_0 = arith.constant 0 : i32
    %c0_i32_1 = arith.constant 0 : i32
    return %c0_i32, %c0_i32_0 : i32, i32
  }
  func.func @transform_4(%arg0: i32) -> (i32, i32) {
    %c0_i32 = arith.constant 0 : i32
    %c0_i32_0 = arith.constant 0 : i32
    %c0_i32_1 = arith.constant 0 : i32
    return %c0_i32, %c0_i32_0 : i32, i32
  }
  func.func @transform_5(%arg0: i32) -> (i32, i32) {
    %c0_i32 = arith.constant 0 : i32
    %c0_i32_0 = arith.constant 0 : i32
    %c0_i32_1 = arith.constant 0 : i32
    return %c0_i32, %c0_i32_0 : i32, i32
  }
  func.func @transform_6(%arg0: i32) -> (i32, i32) {
    %c0_i32 = arith.constant 0 : i32
    %c0_i32_0 = arith.constant 0 : i32
    %c0_i32_1 = arith.constant 0 : i32
    return %c0_i32, %c0_i32_0 : i32, i32
  }
  func.func @transform_7(%arg0: i32) -> (i32, i32) {
    %c0_i32 = arith.constant 0 : i32
    %c0_i32_0 = arith.constant 0 : i32
    %c0_i32_1 = arith.constant 0 : i32
    return %c0_i32, %c0_i32_0 : i32, i32
  }
  func.func @transform_8(%arg0: i32) -> (i32, i32) {
    %c0_i32 = arith.constant 0 : i32
    %c0_i32_0 = arith.constant 0 : i32
    %c0_i32_1 = arith.constant 0 : i32
    return %c0_i32, %c0_i32_0 : i32, i32
  }
  func.func @transform_9(%arg0: i32) -> (i32, i32) {
    %c0_i32 = arith.constant 0 : i32
    %c0_i32_0 = arith.constant 0 : i32
    return %arg0, %c0_i32 : i32, i32
  }
}

</mosaic_0001>

<bundles_post_ra>
// kernel: net_forward.2
= control target key start
LH: loop header
LB: loop body
LE: loop exit
PB: predicated region body
PF: predicated region fallthrough
CT: control target
= control target key end

     0   :  { %s2787_s12 = smov 0   ;;  %s2789_s13 = smov 0   ;;  %s3886_s0 = inlined_call_operand.vmem [shape: f32[4,400,75], index: 0, kind: input, shape index: {}]   ;;  %s3887_s1 = inlined_call_operand.vmem [shape: f32[75,6], index: 1, kind: input, shape index: {}]   ;;  %s3888_s2 = inlined_call_operand.vmem [shape: f32[1,6], index: 2, kind: input, shape index: {}]   ;;  %s3889_s3 = inlined_call_operand.vmem [shape: f32[400,6], index: 3, kind: output, shape index: {}]  }
   0x1   :  { %s2791_s14 = smov 0  }
   0x2 LB: > { %s2003_s15 = sadd.s32 4294967295, %s2763_s14   ;;  %s2804_s16 = sadd.s32 1, %s2763_s14   ;;  %s2763_s14 = sphi %s2791_s14, %s3914_s14   ;;  %s2759_s13 = sphi %s2789_s13, %s3913_s13   ;;  %s2755_s12 = sphi %s2787_s12, %s3912_s12  }
   0x3   : > { %s17_s17 = ssub.s32 %s2763_s14, %s2804_s16  ;;  %s20_s18 = sadd.s32 1, %s2759_s13 }
   0x4   : > { %p18_p0 = scmp.eq.s32.totalorder %s17_s17, 0  ;;  %p27_p1 = scmp.ne.s32.totalorder %s2759_s13, %s2755_s12 }
   0x5   : > { %p28_p2 = scmp.eq.s32.totalorder %s2763_s14, 0  ;;  %p2006_p4 = scmp.ge.s32.totalorder %s2763_s14, 2 }
   0x6   : > { %s2813_s19 = scalar_select %p18_p0, %s2759_s13, %s20_s18  }
   0x7   : > { %p29_p3 = por %p28_p2, %p27_p1  ;;  %127 = sbr.rel (%p2006_p4) target bundleno = 67 (0x43), region = 24 }
   0xc   : > { %130 = sbr.rel (!%p29_p3) target bundleno = 67 (0x43), region = 28  ;;  %s132_s20 = sand.u32 (%p29_p3), 1, %s2759_s13  }
   0xd   : > { %s2192_s21 = smul.u32 (%p29_p3), 200, %s2763_s14 }
   0xe   : > { %s2713_s22 = smul.u32 (%p29_p3), 800, %s132_s20 }
   0xf   : > { %s2821_s25 = scalar_lea.vmem (%p29_p3), %s3886_s0, %s2192_s21 }
  0x10   : > { %v364_v0 = vld [vmem:[%s2821_s25] sm:$0xff] (%p29_p3)  ;;  %v366_v1 = vld [vmem:[%s2821_s25 + $0x8] sm:$0xff] (%p29_p3)  ;;  %v368_v2 = vld [vmem:[%s2821_s25 + $0x10] sm:$0xff] (%p29_p3)  ;;  %s2826_s26 = scalar_lea.vmem (%p29_p3), [#allocation2], %s2713_s22 }
  0x11   : > { %365 = vst [vmem:[%s2826_s26] sm:$0xff] %v364_v0  ;;  %367 = vst [vmem:[%s2826_s26 + $0x8] sm:$0xff] %v366_v1  ;;  %v370_v3 = vld [vmem:[%s2821_s25 + $0x18] sm:$0xff]  ;;  %v372_v4 = vld [vmem:[%s2821_s25 + $0x20] sm:$0xff] }
  0x12   : > { %369 = vst [vmem:[%s2826_s26 + $0x10] sm:$0xff] %v368_v2  ;;  %v374_v5 = vld [vmem:[%s2821_s25 + $0x28] sm:$0xff]  ;;  %371 = vst [vmem:[%s2826_s26 + $0x18] sm:$0xff] %v370_v3  ;;  %v376_v6 = vld [vmem:[%s2821_s25 + $0x30] sm:$0xff] }
  0x13   : > { %373 = vst [vmem:[%s2826_s26 + $0x20] sm:$0xff] %v372_v4  ;;  %375 = vst [vmem:[%s2826_s26 + $0x28] sm:$0xff] %v374_v5  ;;  %v378_v7 = vld [vmem:[%s2821_s25 + $0x38] sm:$0xff]  ;;  %v380_v8 = vld [vmem:[%s2821_s25 + $0x40] sm:$0xff] }
  0x14   : > { %377 = vst [vmem:[%s2826_s26 + $0x30] sm:$0xff] %v376_v6  ;;  %379 = vst [vmem:[%s2826_s26 + $0x38] sm:$0xff] %v378_v7  ;;  %v382_v9 = vld [vmem:[%s2821_s25 + $0x48] sm:$0xff]  ;;  %v384_v10 = vld [vmem:[%s2821_s25 + $0x50] sm:$0xff] }
  0x15   : > { %381 = vst [vmem:[%s2826_s26 + $0x40] sm:$0xff] %v380_v8  ;;  %v386_v11 = vld [vmem:[%s2821_s25 + $0x58] sm:$0xff]  ;;  %383 = vst [vmem:[%s2826_s26 + $0x48] sm:$0xff] %v382_v9  ;;  %v388_v12 = vld [vmem:[%s2821_s25 + $0x60] sm:$0xff] }
  0x16   : > { %385 = vst [vmem:[%s2826_s26 + $0x50] sm:$0xff] %v384_v10  ;;  %387 = vst [vmem:[%s2826_s26 + $0x58] sm:$0xff] %v386_v11  ;;  %v390_v13 = vld [vmem:[%s2821_s25 + $0x68] sm:$0xff]  ;;  %v392_v14 = vld [vmem:[%s2821_s25 + $0x70] sm:$0xff] }
  0x17   : > { %389 = vst [vmem:[%s2826_s26 + $0x60] sm:$0xff] %v388_v12  ;;  %391 = vst [vmem:[%s2826_s26 + $0x68] sm:$0xff] %v390_v13  ;;  %v394_v15 = vld [vmem:[%s2821_s25 + $0x78] sm:$0xff]  ;;  %v396_v16 = vld [vmem:[%s2821_s25 + $0x80] sm:$0xff] }
  0x18   : > { %393 = vst [vmem:[%s2826_s26 + $0x70] sm:$0xff] %v392_v14  ;;  %v398_v17 = vld [vmem:[%s2821_s25 + $0x88] sm:$0xff]  ;;  %395 = vst [vmem:[%s2826_s26 + $0x78] sm:$0xff] %v394_v15  ;;  %v400_v18 = vld [vmem:[%s2821_s25 + $0x90] sm:$0xff] }
  0x19   : > { %397 = vst [vmem:[%s2826_s26 + $0x80] sm:$0xff] %v396_v16  ;;  %399 = vst [vmem:[%s2826_s26 + $0x88] sm:$0xff] %v398_v17  ;;  %v402_v19 = vld [vmem:[%s2821_s25 + $0x98] sm:$0xff]  ;;  %v404_v20 = vld [vmem:[%s2821_s25 + $0xa0] sm:$0xff] }
  0x1a   : > { %401 = vst [vmem:[%s2826_s26 + $0x90] sm:$0xff] %v400_v18  ;;  %403 = vst [vmem:[%s2826_s26 + $0x98] sm:$0xff] %v402_v19  ;;  %v406_v21 = vld [vmem:[%s2821_s25 + $0xa8] sm:$0xff]  ;;  %v408_v22 = vld [vmem:[%s2821_s25 + $0xb0] sm:$0xff] }
  0x1b   : > { %405 = vst [vmem:[%s2826_s26 + $0xa0] sm:$0xff] %v404_v20  ;;  %v410_v23 = vld [vmem:[%s2821_s25 + $0xb8] sm:$0xff]  ;;  %407 = vst [vmem:[%s2826_s26 + $0xa8] sm:$0xff] %v406_v21  ;;  %v412_v24 = vld [vmem:[%s2821_s25 + $0xc0] sm:$0xff] }
  0x1c   : > { %409 = vst [vmem:[%s2826_s26 + $0xb0] sm:$0xff] %v408_v22  ;;  %411 = vst [vmem:[%s2826_s26 + $0xb8] sm:$0xff] %v410_v23  ;;  %v414_v25 = vld [vmem:[%s2821_s25 + $0x190] sm:$0xff]  ;;  %v416_v26 = vld [vmem:[%s2821_s25 + $0x198] sm:$0xff] }
  0x1d   : > { %413 = vst [vmem:[%s2826_s26 + $0xc0] sm:$0xff] %v412_v24  ;;  %415 = vst [vmem:[%s2826_s26 + $0xc8] sm:$0xff] %v414_v25  ;;  %v418_v27 = vld [vmem:[%s2821_s25 + $0x1a0] sm:$0xff]  ;;  %v420_v28 = vld [vmem:[%s2821_s25 + $0x1a8] sm:$0xff] }
  0x1e   : > { %417 = vst [vmem:[%s2826_s26 + $0xd0] sm:$0xff] %v416_v26  ;;  %v422_v29 = vld [vmem:[%s2821_s25 + $0x1b0] sm:$0xff]  ;;  %419 = vst [vmem:[%s2826_s26 + $0xd8] sm:$0xff] %v418_v27  ;;  %v424_v30 = vld [vmem:[%s2821_s25 + $0x1b8] sm:$0xff] }
  0x1f   : > { %421 = vst [vmem:[%s2826_s26 + $0xe0] sm:$0xff] %v420_v28  ;;  %423 = vst [vmem:[%s2826_s26 + $0xe8] sm:$0xff] %v422_v29  ;;  %v426_v31 = vld [vmem:[%s2821_s25 + $0x1c0] sm:$0xff]  ;;  %v428_v32 = vld [vmem:[%s2821_s25 + $0x1c8] sm:$0xff] }
  0x20   : > { %425 = vst [vmem:[%s2826_s26 + $0xf0] sm:$0xff] %v424_v30  ;;  %427 = vst [vmem:[%s2826_s26 + $0xf8] sm:$0xff] %v426_v31  ;;  %v430_v33 = vld [vmem:[%s2821_s25 + $0x1d0] sm:$0xff]  ;;  %v432_v34 = vld [vmem:[%s2821_s25 + $0x1d8] sm:$0xff] }
  0x21   : > { %429 = vst [vmem:[%s2826_s26 + $0x100] sm:$0xff] %v428_v32  ;;  %v434_v35 = vld [vmem:[%s2821_s25 + $0x1e0] sm:$0xff]  ;;  %431 = vst [vmem:[%s2826_s26 + $0x108] sm:$0xff] %v430_v33  ;;  %v436_v36 = vld [vmem:[%s2821_s25 + $0x1e8] sm:$0xff] }
  0x22   : > { %433 = vst [vmem:[%s2826_s26 + $0x110] sm:$0xff] %v432_v34  ;;  %435 = vst [vmem:[%s2826_s26 + $0x118] sm:$0xff] %v434_v35  ;;  %v438_v37 = vld [vmem:[%s2821_s25 + $0x1f0] sm:$0xff]  ;;  %v440_v38 = vld [vmem:[%s2821_s25 + $0x1f8] sm:$0xff] }
  0x23   : > { %437 = vst [vmem:[%s2826_s26 + $0x120] sm:$0xff] %v436_v36  ;;  %439 = vst [vmem:[%s2826_s26 + $0x128] sm:$0xff] %v438_v37  ;;  %v442_v39 = vld [vmem:[%s2821_s25 + $0x200] sm:$0xff]  ;;  %v444_v40 = vld [vmem:[%s2821_s25 + $0x208] sm:$0xff] }
  0x24   : > { %441 = vst [vmem:[%s2826_s26 + $0x130] sm:$0xff] %v440_v38  ;;  %v446_v41 = vld [vmem:[%s2821_s25 + $0x210] sm:$0xff]  ;;  %443 = vst [vmem:[%s2826_s26 + $0x138] sm:$0xff] %v442_v39  ;;  %v448_v42 = vld [vmem:[%s2821_s25 + $0x218] sm:$0xff] }
  0x25   : > { %445 = vst [vmem:[%s2826_s26 + $0x140] sm:$0xff] %v444_v40  ;;  %447 = vst [vmem:[%s2826_s26 + $0x148] sm:$0xff] %v446_v41  ;;  %v450_v43 = vld [vmem:[%s2821_s25 + $0x220] sm:$0xff]  ;;  %v452_v44 = vld [vmem:[%s2821_s25 + $0x228] sm:$0xff] }
  0x26   : > { %449 = vst [vmem:[%s2826_s26 + $0x150] sm:$0xff] %v448_v42  ;;  %451 = vst [vmem:[%s2826_s26 + $0x158] sm:$0xff] %v450_v43  ;;  %v454_v45 = vld [vmem:[%s2821_s25 + $0x230] sm:$0xff]  ;;  %v456_v46 = vld [vmem:[%s2821_s25 + $0x238] sm:$0xff] }
  0x27   : > { %453 = vst [vmem:[%s2826_s26 + $0x160] sm:$0xff] %v452_v44  ;;  %v458_v47 = vld [vmem:[%s2821_s25 + $0x240] sm:$0xff]  ;;  %455 = vst [vmem:[%s2826_s26 + $0x168] sm:$0xff] %v454_v45  ;;  %v460_v48 = vld [vmem:[%s2821_s25 + $0x248] sm:$0xff] }
  0x28   : > { %457 = vst [vmem:[%s2826_s26 + $0x170] sm:$0xff] %v456_v46  ;;  %459 = vst [vmem:[%s2826_s26 + $0x178] sm:$0xff] %v458_v47  ;;  %v462_v49 = vld [vmem:[%s2821_s25 + $0x250] sm:$0xff]  ;;  %v464_v50 = vld [vmem:[%s2821_s25 + $0x320] sm:$0xff] }
  0x29   : > { %461 = vst [vmem:[%s2826_s26 + $0x180] sm:$0xff] %v460_v48  ;;  %463 = vst [vmem:[%s2826_s26 + $0x188] sm:$0xff] %v462_v49  ;;  %v466_v51 = vld [vmem:[%s2821_s25 + $0x328] sm:$0xff]  ;;  %v468_v52 = vld [vmem:[%s2821_s25 + $0x330] sm:$0xff] }
  0x2a   : > { %465 = vst [vmem:[%s2826_s26 + $0x190] sm:$0xff] %v464_v50  ;;  %v470_v53 = vld [vmem:[%s2821_s25 + $0x338] sm:$0xff]  ;;  %467 = vst [vmem:[%s2826_s26 + $0x198] sm:$0xff] %v466_v51  ;;  %v472_v54 = vld [vmem:[%s2821_s25 + $0x340] sm:$0xff] }
  0x2b   : > { %469 = vst [vmem:[%s2826_s26 + $0x1a0] sm:$0xff] %v468_v52  ;;  %471 = vst [vmem:[%s2826_s26 + $0x1a8] sm:$0xff] %v470_v53  ;;  %v474_v55 = vld [vmem:[%s2821_s25 + $0x348] sm:$0xff]  ;;  %v476_v56 = vld [vmem:[%s2821_s25 + $0x350] sm:$0xff] }
  0x2c   : > { %473 = vst [vmem:[%s2826_s26 + $0x1b0] sm:$0xff] %v472_v54  ;;  %475 = vst [vmem:[%s2826_s26 + $0x1b8] sm:$0xff] %v474_v55  ;;  %v478_v57 = vld [vmem:[%s2821_s25 + $0x358] sm:$0xff]  ;;  %v480_v58 = vld [vmem:[%s2821_s25 + $0x360] sm:$0xff] }
  0x2d   : > { %477 = vst [vmem:[%s2826_s26 + $0x1c0] sm:$0xff] %v476_v56  ;;  %v482_v59 = vld [vmem:[%s2821_s25 + $0x368] sm:$0xff]  ;;  %479 = vst [vmem:[%s2826_s26 + $0x1c8] sm:$0xff] %v478_v57  ;;  %v484_v60 = vld [vmem:[%s2821_s25 + $0x370] sm:$0xff] }
  0x2e   : > { %481 = vst [vmem:[%s2826_s26 + $0x1d0] sm:$0xff] %v480_v58  ;;  %483 = vst [vmem:[%s2826_s26 + $0x1d8] sm:$0xff] %v482_v59  ;;  %v486_v61 = vld [vmem:[%s2821_s25 + $0x378] sm:$0xff]  ;;  %v488_v62 = vld [vmem:[%s2821_s25 + $0x380] sm:$0xff] }
  0x2f   : > { %485 = vst [vmem:[%s2826_s26 + $0x1e0] sm:$0xff] %v484_v60  ;;  %487 = vst [vmem:[%s2826_s26 + $0x1e8] sm:$0xff] %v486_v61  ;;  %v490_v63 = vld [vmem:[%s2821_s25 + $0x388] sm:$0xff]  ;;  %v492_v0 = vld [vmem:[%s2821_s25 + $0x390] sm:$0xff] }
  0x30   : > { %489 = vst [vmem:[%s2826_s26 + $0x1f0] sm:$0xff] %v488_v62  ;;  %v494_v1 = vld [vmem:[%s2821_s25 + $0x398] sm:$0xff]  ;;  %491 = vst [vmem:[%s2826_s26 + $0x1f8] sm:$0xff] %v490_v63  ;;  %v496_v2 = vld [vmem:[%s2821_s25 + $0x3a0] sm:$0xff] }
  0x31   : > { %493 = vst [vmem:[%s2826_s26 + $0x200] sm:$0xff] %v492_v0  ;;  %495 = vst [vmem:[%s2826_s26 + $0x208] sm:$0xff] %v494_v1  ;;  %v498_v3 = vld [vmem:[%s2821_s25 + $0x3a8] sm:$0xff]  ;;  %v500_v4 = vld [vmem:[%s2821_s25 + $0x3b0] sm:$0xff] }
  0x32   : > { %497 = vst [vmem:[%s2826_s26 + $0x210] sm:$0xff] %v496_v2  ;;  %499 = vst [vmem:[%s2826_s26 + $0x218] sm:$0xff] %v498_v3  ;;  %v502_v5 = vld [vmem:[%s2821_s25 + $0x3b8] sm:$0xff]  ;;  %v504_v6 = vld [vmem:[%s2821_s25 + $0x3c0] sm:$0xff] }
  0x33   : > { %501 = vst [vmem:[%s2826_s26 + $0x220] sm:$0xff] %v500_v4  ;;  %v506_v7 = vld [vmem:[%s2821_s25 + $0x3c8] sm:$0xff]  ;;  %503 = vst [vmem:[%s2826_s26 + $0x228] sm:$0xff] %v502_v5  ;;  %v508_v8 = vld [vmem:[%s2821_s25 + $0x3d0] sm:$0xff] }
  0x34   : > { %505 = vst [vmem:[%s2826_s26 + $0x230] sm:$0xff] %v504_v6  ;;  %507 = vst [vmem:[%s2826_s26 + $0x238] sm:$0xff] %v506_v7  ;;  %v510_v9 = vld [vmem:[%s2821_s25 + $0x3d8] sm:$0xff]  ;;  %v512_v10 = vld [vmem:[%s2821_s25 + $0x3e0] sm:$0xff] }
  0x35   : > { %509 = vst [vmem:[%s2826_s26 + $0x240] sm:$0xff] %v508_v8  ;;  %511 = vst [vmem:[%s2826_s26 + $0x248] sm:$0xff] %v510_v9  ;;  %v514_v11 = vld [vmem:[%s2821_s25 + $0x4b0] sm:$0xff]  ;;  %v516_v12 = vld [vmem:[%s2821_s25 + $0x4b8] sm:$0xff] }
  0x36   : > { %513 = vst [vmem:[%s2826_s26 + $0x250] sm:$0xff] %v512_v10  ;;  %v518_v13 = vld [vmem:[%s2821_s25 + $0x4c0] sm:$0xff]  ;;  %515 = vst [vmem:[%s2826_s26 + $0x258] sm:$0xff] %v514_v11  ;;  %v520_v14 = vld [vmem:[%s2821_s25 + $0x4c8] sm:$0xff] }
  0x37   : > { %517 = vst [vmem:[%s2826_s26 + $0x260] sm:$0xff] %v516_v12  ;;  %519 = vst [vmem:[%s2826_s26 + $0x268] sm:$0xff] %v518_v13  ;;  %v522_v15 = vld [vmem:[%s2821_s25 + $0x4d0] sm:$0xff]  ;;  %v524_v16 = vld [vmem:[%s2821_s25 + $0x4d8] sm:$0xff] }
  0x38   : > { %521 = vst [vmem:[%s2826_s26 + $0x270] sm:$0xff] %v520_v14  ;;  %523 = vst [vmem:[%s2826_s26 + $0x278] sm:$0xff] %v522_v15  ;;  %v526_v17 = vld [vmem:[%s2821_s25 + $0x4e0] sm:$0xff]  ;;  %v528_v18 = vld [vmem:[%s2821_s25 + $0x4e8] sm:$0xff] }
  0x39   : > { %525 = vst [vmem:[%s2826_s26 + $0x280] sm:$0xff] %v524_v16  ;;  %v530_v19 = vld [vmem:[%s2821_s25 + $0x4f0] sm:$0xff]  ;;  %527 = vst [vmem:[%s2826_s26 + $0x288] sm:$0xff] %v526_v17  ;;  %v532_v20 = vld [vmem:[%s2821_s25 + $0x4f8] sm:$0xff] }
  0x3a   : > { %529 = vst [vmem:[%s2826_s26 + $0x290] sm:$0xff] %v528_v18  ;;  %531 = vst [vmem:[%s2826_s26 + $0x298] sm:$0xff] %v530_v19  ;;  %v534_v21 = vld [vmem:[%s2821_s25 + $0x500] sm:$0xff]  ;;  %v536_v22 = vld [vmem:[%s2821_s25 + $0x508] sm:$0xff] }
  0x3b   : > { %533 = vst [vmem:[%s2826_s26 + $0x2a0] sm:$0xff] %v532_v20  ;;  %535 = vst [vmem:[%s2826_s26 + $0x2a8] sm:$0xff] %v534_v21  ;;  %v538_v23 = vld [vmem:[%s2821_s25 + $0x510] sm:$0xff]  ;;  %v540_v24 = vld [vmem:[%s2821_s25 + $0x518] sm:$0xff] }
  0x3c   : > { %537 = vst [vmem:[%s2826_s26 + $0x2b0] sm:$0xff] %v536_v22  ;;  %v542_v25 = vld [vmem:[%s2821_s25 + $0x520] sm:$0xff]  ;;  %539 = vst [vmem:[%s2826_s26 + $0x2b8] sm:$0xff] %v538_v23  ;;  %v544_v26 = vld [vmem:[%s2821_s25 + $0x528] sm:$0xff] }
  0x3d   : > { %541 = vst [vmem:[%s2826_s26 + $0x2c0] sm:$0xff] %v540_v24  ;;  %543 = vst [vmem:[%s2826_s26 + $0x2c8] sm:$0xff] %v542_v25  ;;  %v546_v27 = vld [vmem:[%s2821_s25 + $0x530] sm:$0xff]  ;;  %v548_v28 = vld [vmem:[%s2821_s25 + $0x538] sm:$0xff] }
  0x3e   : > { %545 = vst [vmem:[%s2826_s26 + $0x2d0] sm:$0xff] %v544_v26  ;;  %547 = vst [vmem:[%s2826_s26 + $0x2d8] sm:$0xff] %v546_v27  ;;  %v550_v29 = vld [vmem:[%s2821_s25 + $0x540] sm:$0xff]  ;;  %v552_v30 = vld [vmem:[%s2821_s25 + $0x548] sm:$0xff] }
  0x3f   : > { %549 = vst [vmem:[%s2826_s26 + $0x2e0] sm:$0xff] %v548_v28  ;;  %v554_v31 = vld [vmem:[%s2821_s25 + $0x550] sm:$0xff]  ;;  %551 = vst [vmem:[%s2826_s26 + $0x2e8] sm:$0xff] %v550_v29  ;;  %v556_v32 = vld [vmem:[%s2821_s25 + $0x558] sm:$0xff] }
  0x40   : > { %553 = vst [vmem:[%s2826_s26 + $0x2f0] sm:$0xff] %v552_v30  ;;  %555 = vst [vmem:[%s2826_s26 + $0x2f8] sm:$0xff] %v554_v31  ;;  %v558_v33 = vld [vmem:[%s2821_s25 + $0x560] sm:$0xff]  ;;  %v560_v34 = vld [vmem:[%s2821_s25 + $0x568] sm:$0xff] }
  0x41   : > { %557 = vst [vmem:[%s2826_s26 + $0x300] sm:$0xff] %v556_v32  ;;  %559 = vst [vmem:[%s2826_s26 + $0x308] sm:$0xff] %v558_v33  ;;  %v562_v35 = vld [vmem:[%s2821_s25 + $0x570] sm:$0xff] }
  0x42   : > { %561 = vst [vmem:[%s2826_s26 + $0x310] sm:$0xff] %v560_v34  ;;  %563 = vst [vmem:[%s2826_s26 + $0x318] sm:$0xff] %v562_v35 }
  0x43 PF: > { %p2008_p5 = scmp.ge.s32.totalorder %s2763_s14, 1  ;;  %p568_p6 = scmp.lt.s32.totalorder %s2763_s14, 3 }
  0x45   : > { %p569_p7 = pnand %p2008_p5, %p568_p6 }
  0x46   : > { %s575_s10 = sand.u32 (!%p569_p7), 1, %s2755_s12   ;;  %s599_s28 = smul.u32 (!%p569_p7), 25, %s2003_s15 }
  0x47   : > { %572 = sbr.rel (%p569_p7) target bundleno = 495 (0x1ef), region = 66 }
  0x48   : > { %s2714_s12 = smul.u32 (!%p569_p7), 800, %s575_s10  ;;  %p600_p8 = scmp.lt.s32.totalorder (!%p569_p7), %s599_s28, 49 }
  0x4a   : > { %s3116_s27 = scalar_lea.vmem (!%p569_p7), [#allocation2], %s2714_s12 }
  0x4c   : > { %v3030_v36 = vld [vmem:[%s3887_s1 + $0x48] sm:$0x7]  ;;  %vm716_vm0 = vcmask 1042432   ;;  %v2765_v37 = vmov 0.0   ;;  %v3037_v38 = vld [vmem:[%s3887_s1 + $0x40] sm:$0xff]  ;;  %v3048_v39 = vld [vmem:[%s3887_s1 + $0x38] sm:$0xff] }
  0x4d   : > { %2333 = vmatprep.subr.mxu0 %v2765_v37  ;;  %2428 = vmatprep.subr.mxu1 %v2765_v37  ;;  %v3057_v40 = vld [vmem:[%s3887_s1 + $0x30] sm:$0xff]  ;;  %v3066_v41 = vld [vmem:[%s3887_s1 + $0x28] sm:$0xff]  ;;  %v3076_v42 = vld [vmem:[%s3887_s1 + $0x20] sm:$0xff]  ;;  %vm640_vm1 = vcmask 613376   ;;  %vm2766_vm2 = vmmov 0   ;;  %s3916_s28 = smov (!%p600_p8, %s599_s28), 49 }
  0x4e   : > { %2334 = vmatpush3.msk.msra.mxu0 %vm716_vm0, %v3030_v36  ;;  %2429 = vmatpush3.msk.msra.mxu1 %vm716_vm0, %v3030_v36  ;;  %v3085_v43 = vld [vmem:[%s3887_s1 + $0x18] sm:$0xff]  ;;  %v3094_v44 = vld [vmem:[%s3887_s1 + $0x10] sm:$0xff]  ;;  %v3103_v45 = vld [vmem:[%s3887_s1 + $0x8] sm:$0xff]  ;;  %s2009_s29 = sshll.u32 %s3916_s28, 3  ;;  %vm1915_vm3 = vcmask 48128  }
  0x4f   : > { %2335 = vmatprep.subr.mxu0 %v2765_v37  ;;  %2430 = vmatprep.subr.mxu1 %v2765_v37  ;;  %v3112_v46 = vld [vmem:[%s3887_s1] sm:$0xff]  ;;  %v2036_v48 = vld [vmem:[%s3116_s27 + $0xc8] sm:$0xff]  ;;  %v2037_v50 = vld [vmem:[%s3116_s27 + $0xd0] sm:$0xff]  ;;  %s3731_s5 = scalar_lea.vmem %s3889_s3, %s2009_s29 }
  0x50   : > { %2336 = vmatpush3.msra.mxu0 %v3037_v38  ;;  %2431 = vmatpush3.msra.mxu1 %v3037_v38  ;;  %v615_v47 = vld [vmem:[%s3116_s27] sm:$0xff]  ;;  %v616_v49 = vld [vmem:[%s3116_s27 + $0x8] sm:$0xff]  ;;  %v617_v51 = vld [vmem:[%s3116_s27 + $0x10] sm:$0xff] }
  0x51   : > { %2337 = vmatprep.subr.mxu0 %v2765_v37  ;;  %2432 = vmatprep.subr.mxu1 %v2765_v37  ;;  %v2038_v52 = vld [vmem:[%s3116_s27 + $0xd8] sm:$0xff]  ;;  %v2039_v54 = vld [vmem:[%s3116_s27 + $0xe0] sm:$0xff]  ;;  %v2040_v56 = vld [vmem:[%s3116_s27 + $0xe8] sm:$0xff] }
  0x52   : > { %2338 = vmatpush3.msra.mxu0 %v3048_v39  ;;  %2433 = vmatpush3.msra.mxu1 %v3048_v39  ;;  %v618_v53 = vld [vmem:[%s3116_s27 + $0x18] sm:$0xff]  ;;  %v619_v55 = vld [vmem:[%s3116_s27 + $0x20] sm:$0xff]  ;;  %v620_v57 = vld [vmem:[%s3116_s27 + $0x28] sm:$0xff] }
  0x53   : > { %2339 = vmatprep.subr.mxu0 %v2765_v37  ;;  %2434 = vmatprep.subr.mxu1 %v2765_v37  ;;  %v2041_v58 = vld [vmem:[%s3116_s27 + $0xf0] sm:$0xff]  ;;  %v2042_v60 = vld [vmem:[%s3116_s27 + $0xf8] sm:$0xff]  ;;  %v2043_v62 = vld [vmem:[%s3116_s27 + $0x100] sm:$0xff] }
  0x54   : > { %2340 = vmatpush3.msra.mxu0 %v3057_v40  ;;  %2435 = vmatpush3.msra.mxu1 %v3057_v40  ;;  %v621_v59 = vld [vmem:[%s3116_s27 + $0x30] sm:$0xff]  ;;  %v622_v61 = vld [vmem:[%s3116_s27 + $0x38] sm:$0xff]  ;;  %v623_v63 = vld [vmem:[%s3116_s27 + $0x40] sm:$0xff] }
  0x55   : > { %2341 = vmatprep.subr.mxu0 %v2765_v37  ;;  %2436 = vmatprep.subr.mxu1 %v2765_v37  ;;  %v2044_v0 = vld [vmem:[%s3116_s27 + $0x108] sm:$0xff]  ;;  %v2045_v2 = vld [vmem:[%s3116_s27 + $0x110] sm:$0xff]  ;;  %v2046_v4 = vld [vmem:[%s3116_s27 + $0x118] sm:$0xff] }
  0x56   : > { %2342 = vmatpush3.msra.mxu0 %v3066_v41  ;;  %2437 = vmatpush3.msra.mxu1 %v3066_v41  ;;  %v624_v1 = vld [vmem:[%s3116_s27 + $0x48] sm:$0xff]  ;;  %v625_v3 = vld [vmem:[%s3116_s27 + $0x50] sm:$0xff]  ;;  %v626_v5 = vld [vmem:[%s3116_s27 + $0x58] sm:$0xff] }
  0x57   : > { %2343 = vmatprep.subr.mxu0 %v2765_v37  ;;  %2438 = vmatprep.subr.mxu1 %v2765_v37  ;;  %v2047_v6 = vld [vmem:[%s3116_s27 + $0x120] sm:$0xff]  ;;  %v2048_v8 = vld [vmem:[%s3116_s27 + $0x128] sm:$0xff]  ;;  %v2049_v10 = vld [vmem:[%s3116_s27 + $0x130] sm:$0xff] }
  0x58   : > { %2344 = vmatpush3.msra.mxu0 %v3076_v42  ;;  %2439 = vmatpush3.msra.mxu1 %v3076_v42  ;;  %v627_v7 = vld [vmem:[%s3116_s27 + $0x60] sm:$0xff]  ;;  %v628_v9 = vld [vmem:[%s3116_s27 + $0x68] sm:$0xff]  ;;  %v629_v11 = vld [vmem:[%s3116_s27 + $0x70] sm:$0xff] }
  0x59   : > { %2345 = vmatprep.subr.mxu0 %v2765_v37  ;;  %2440 = vmatprep.subr.mxu1 %v2765_v37  ;;  %v2050_v12 = vld [vmem:[%s3116_s27 + $0x138] sm:$0xff]  ;;  %v2051_v14 = vld [vmem:[%s3116_s27 + $0x140] sm:$0xff]  ;;  %v2052_v16 = vld [vmem:[%s3116_s27 + $0x148] sm:$0xff] }
  0x5a   : > { %2346 = vmatpush3.msra.mxu0 %v3085_v43  ;;  %2441 = vmatpush3.msra.mxu1 %v3085_v43  ;;  %v630_v13 = vld [vmem:[%s3116_s27 + $0x78] sm:$0xff]  ;;  %v631_v15 = vld [vmem:[%s3116_s27 + $0x80] sm:$0xff]  ;;  %v632_v17 = vld [vmem:[%s3116_s27 + $0x88] sm:$0xff] }
  0x5b   : > { %2347 = vmatprep.subr.mxu0 %v2765_v37  ;;  %2442 = vmatprep.subr.mxu1 %v2765_v37  ;;  %v2053_v18 = vld [vmem:[%s3116_s27 + $0x150] sm:$0xff]  ;;  %v2054_v20 = vld [vmem:[%s3116_s27 + $0x158] sm:$0xff]  ;;  %v2055_v22 = vld [vmem:[%s3116_s27 + $0x160] sm:$0xff] }
  0x5c   : > { %2348 = vmatpush3.msra.mxu0 %v3094_v44  ;;  %2443 = vmatpush3.msra.mxu1 %v3094_v44  ;;  %v633_v19 = vld [vmem:[%s3116_s27 + $0x90] sm:$0xff]  ;;  %v634_v21 = vld [vmem:[%s3116_s27 + $0x98] sm:$0xff]  ;;  %v635_v23 = vld [vmem:[%s3116_s27 + $0xa0] sm:$0xff] }
  0x5d   : > { %2349 = vmatprep.subr.mxu0 %v2765_v37  ;;  %2444 = vmatprep.subr.mxu1 %v2765_v37  ;;  %v2056_v24 = vld [vmem:[%s3116_s27 + $0x168] sm:$0xff]  ;;  %v2057_v26 = vld [vmem:[%s3116_s27 + $0x170] sm:$0xff]  ;;  %v2058_v28 = vld [vmem:[%s3116_s27 + $0x178] sm:$0xff] }
  0x5e   : > { %2350 = vmatpush3.msra.mxu0 %v3103_v45  ;;  %2445 = vmatpush3.msra.mxu1 %v3103_v45  ;;  %v636_v25 = vld [vmem:[%s3116_s27 + $0xa8] sm:$0xff]  ;;  %v637_v27 = vld [vmem:[%s3116_s27 + $0xb0] sm:$0xff]  ;;  %v638_v29 = vld [vmem:[%s3116_s27 + $0xb8] sm:$0xff] }
  0x5f   : > { %2351 = vmatprep.subr.mxu0 %v2765_v37  ;;  %2353 = vmatprep.mubr.msk.f32.mxu0 %vm2766_vm2, %v2765_v37  ;;  %v2059_v30 = vld [vmem:[%s3116_s27 + $0x180] sm:$0xff]  ;;  %v2060_v32 = vld [vmem:[%s3116_s27 + $0x188] sm:$0xff]  ;;  %v2087_v33 = vld [vmem:[%s3116_s27 + $0x190] sm:$0xff] }
  0x60   : > { %2352 = vmatpush3.msra.mxu0 %v3112_v46  ;;  %2446 = vmatprep.subr.mxu1 %v2765_v37  ;;  %v639_v31 = vld [vmem:[%s3116_s27 + $0xc0] sm:$0xff]  ;;  %v2138_v34 = vld [vmem:[%s3116_s27 + $0x258] sm:$0xff] }
  0x61   : > { %2354 = vmatmul.mubr.msk.f32.vlgmr.msra.gmra.mxu0 %vm640_vm1, %v615_v47  ;;  %2447 = vmatpush3.msra.mxu1 %v3112_v46  ;;  %v2088_v35 = vld [vmem:[%s3116_s27 + $0x198] sm:$0xff]  ;;  %v2144_v47 = vld [vmem:[%s3116_s27 + $0x288] sm:$0xff] }
  0x62   : > { %2448 = vmatprep.mubr.msk.f32.mxu1 %vm2766_vm2, %v2765_v37  ;;  %2523 = vmatprep.subr.mxu0 %v2765_v37 }
  0x63   : > { %2449 = vmatmul.mubr.msk.f32.vlgmr.msra.gmra.mxu1 %vm640_vm1, %v2036_v48  ;;  %2524 = vmatpush3.msk.msra.mxu0 %vm716_vm0, %v3030_v36  ;;  %v2094_v48 = vld [vmem:[%s3116_s27 + $0x1c8] sm:$0xff] }
  0x64   : > { %2618 = vmatprep.subr.mxu1 %v2765_v37  ;;  %2356 = vmatprep.mubr.msk.f32.mxu0 %vm2766_vm2, %v2765_v37 }
  0x65   : > { %2619 = vmatpush3.msk.msra.mxu1 %vm716_vm0, %v3030_v36  ;;  %2357 = vmatmul.mubr.msk.f32.gmra.mxu0 %vm640_vm1, %v616_v49  ;;  %v2139_v36 = vld [vmem:[%s3116_s27 + $0x260] sm:$0xff]  ;;  %v2145_v49 = vld [vmem:[%s3116_s27 + $0x290] sm:$0xff] }
  0x66   : > { %2451 = vmatprep.mubr.msk.f32.mxu1 %vm2766_vm2, %v2765_v37  ;;  %2359 = vmatprep.mubr.msk.f32.mxu0 %vm2766_vm2, %v2765_v37 }
  0x67   : > { %2452 = vmatmul.mubr.msk.f32.gmra.mxu1 %vm640_vm1, %v2037_v50  ;;  %2525 = vmatprep.subr.mxu0 %v2765_v37  ;;  %v2095_v50 = vld [vmem:[%s3116_s27 + $0x1d0] sm:$0xff] }
  0x68   : > { %2454 = vmatprep.mubr.msk.f32.mxu1 %vm2766_vm2, %v2765_v37  ;;  %2526 = vmatpush3.msra.mxu0 %v3037_v38 }
  0x69   : > { %2360 = vmatmul.mubr.msk.f32.gmra.mxu0 %vm640_vm1, %v617_v51  ;;  %2620 = vmatprep.subr.mxu1 %v2765_v37  ;;  %v2146_v51 = vld [vmem:[%s3116_s27 + $0x298] sm:$0xff] }
  0x6a   : > { %2362 = vmatprep.mubr.msk.f32.mxu0 %vm2766_vm2, %v2765_v37  ;;  %2621 = vmatpush3.msra.mxu1 %v3037_v38  ;;  %v2089_v38 = vld [vmem:[%s3116_s27 + $0x1a0] sm:$0xff] }
  0x6b   : > { %2455 = vmatmul.mubr.msk.f32.gmra.mxu1 %vm640_vm1, %v2038_v52  ;;  %2527 = vmatprep.subr.mxu0 %v2765_v37  ;;  %v2096_v52 = vld [vmem:[%s3116_s27 + $0x1d8] sm:$0xff] }
  0x6c   : > { %2457 = vmatprep.mubr.msk.f32.mxu1 %vm2766_vm2, %v2765_v37  ;;  %2528 = vmatpush3.msra.mxu0 %v3048_v39 }
  0x6d   : > { %2363 = vmatmul.mubr.msk.f32.gmra.mxu0 %vm640_vm1, %v618_v53  ;;  %2622 = vmatprep.subr.mxu1 %v2765_v37  ;;  %v2147_v53 = vld [vmem:[%s3116_s27 + $0x2a0] sm:$0xff] }
  0x6e   : > { %2365 = vmatprep.mubr.msk.f32.mxu0 %vm2766_vm2, %v2765_v37  ;;  %2623 = vmatpush3.msra.mxu1 %v3048_v39  ;;  %v2140_v39 = vld [vmem:[%s3116_s27 + $0x268] sm:$0xff] }
  0x6f   : > { %2458 = vmatmul.mubr.msk.f32.gmra.mxu1 %vm640_vm1, %v2039_v54  ;;  %2529 = vmatprep.subr.mxu0 %v2765_v37  ;;  %v2097_v54 = vld [vmem:[%s3116_s27 + $0x1e0] sm:$0xff] }
  0x70   : > { %2460 = vmatprep.mubr.msk.f32.mxu1 %vm2766_vm2, %v2765_v37  ;;  %2530 = vmatpush3.msra.mxu0 %v3057_v40 }
  0x71   : > { %2366 = vmatmul.mubr.msk.f32.gmra.mxu0 %vm640_vm1, %v619_v55  ;;  %2624 = vmatprep.subr.mxu1 %v2765_v37  ;;  %v2148_v55 = vld [vmem:[%s3116_s27 + $0x2a8] sm:$0xff] }
  0x72   : > { %2368 = vmatprep.mubr.msk.f32.mxu0 %vm2766_vm2, %v2765_v37  ;;  %2625 = vmatpush3.msra.mxu1 %v3057_v40  ;;  %v2090_v40 = vld [vmem:[%s3116_s27 + $0x1a8] sm:$0xff] }
  0x73   : > { %2461 = vmatmul.mubr.msk.f32.gmra.mxu1 %vm640_vm1, %v2040_v56  ;;  %2531 = vmatprep.subr.mxu0 %v2765_v37  ;;  %v2098_v56 = vld [vmem:[%s3116_s27 + $0x1e8] sm:$0xff] }
  0x74   : > { %2463 = vmatprep.mubr.msk.f32.mxu1 %vm2766_vm2, %v2765_v37  ;;  %2532 = vmatpush3.msra.mxu0 %v3066_v41 }
  0x75   : > { %2369 = vmatmul.mubr.msk.f32.gmra.mxu0 %vm640_vm1, %v620_v57  ;;  %2626 = vmatprep.subr.mxu1 %v2765_v37  ;;  %v2149_v57 = vld [vmem:[%s3116_s27 + $0x2b0] sm:$0xff] }
  0x76   : > { %2371 = vmatprep.mubr.msk.f32.mxu0 %vm2766_vm2, %v2765_v37  ;;  %2627 = vmatpush3.msra.mxu1 %v3066_v41  ;;  %v2141_v41 = vld [vmem:[%s3116_s27 + $0x270] sm:$0xff] }
  0x77   : > { %2464 = vmatmul.mubr.msk.f32.gmra.mxu1 %vm640_vm1, %v2041_v58  ;;  %2533 = vmatprep.subr.mxu0 %v2765_v37  ;;  %v2099_v58 = vld [vmem:[%s3116_s27 + $0x1f0] sm:$0xff] }
  0x78   : > { %2466 = vmatprep.mubr.msk.f32.mxu1 %vm2766_vm2, %v2765_v37  ;;  %2534 = vmatpush3.msra.mxu0 %v3076_v42 }
  0x79   : > { %2372 = vmatmul.mubr.msk.f32.gmra.mxu0 %vm640_vm1, %v621_v59  ;;  %2628 = vmatprep.subr.mxu1 %v2765_v37  ;;  %v2150_v59 = vld [vmem:[%s3116_s27 + $0x2b8] sm:$0xff] }
  0x7a   : > { %2374 = vmatprep.mubr.msk.f32.mxu0 %vm2766_vm2, %v2765_v37  ;;  %2629 = vmatpush3.msra.mxu1 %v3076_v42  ;;  %v2091_v42 = vld [vmem:[%s3116_s27 + $0x1b0] sm:$0xff] }
  0x7b   : > { %2467 = vmatmul.mubr.msk.f32.gmra.mxu1 %vm640_vm1, %v2042_v60  ;;  %2535 = vmatprep.subr.mxu0 %v2765_v37  ;;  %v2100_v60 = vld [vmem:[%s3116_s27 + $0x1f8] sm:$0xff] }
  0x7c   : > { %2469 = vmatprep.mubr.msk.f32.mxu1 %vm2766_vm2, %v2765_v37  ;;  %2536 = vmatpush3.msra.mxu0 %v3085_v43 }
  0x7d   : > { %2375 = vmatmul.mubr.msk.f32.gmra.mxu0 %vm640_vm1, %v622_v61  ;;  %2630 = vmatprep.subr.mxu1 %v2765_v37  ;;  %v2151_v61 = vld [vmem:[%s3116_s27 + $0x2c0] sm:$0xff] }
  0x7e   : > { %2377 = vmatprep.mubr.msk.f32.mxu0 %vm2766_vm2, %v2765_v37  ;;  %2631 = vmatpush3.msra.mxu1 %v3085_v43  ;;  %v2142_v43 = vld [vmem:[%s3116_s27 + $0x278] sm:$0xff] }
  0x7f   : > { %2470 = vmatmul.mubr.msk.f32.gmra.mxu1 %vm640_vm1, %v2043_v62  ;;  %2537 = vmatprep.subr.mxu0 %v2765_v37  ;;  %v2101_v62 = vld [vmem:[%s3116_s27 + $0x200] sm:$0xff] }
  0x80   : > { %2472 = vmatprep.mubr.msk.f32.mxu1 %vm2766_vm2, %v2765_v37  ;;  %2538 = vmatpush3.msra.mxu0 %v3094_v44 }
  0x81   : > { %2378 = vmatmul.mubr.msk.f32.gmra.mxu0 %vm640_vm1, %v623_v63  ;;  %2632 = vmatprep.subr.mxu1 %v2765_v37  ;;  %v2152_v63 = vld [vmem:[%s3116_s27 + $0x2c8] sm:$0xff] }
  0x82   : > { %2380 = vmatprep.mubr.msk.f32.mxu0 %vm2766_vm2, %v2765_v37  ;;  %2633 = vmatpush3.msra.mxu1 %v3094_v44  ;;  %v2092_v44 = vld [vmem:[%s3116_s27 + $0x1b8] sm:$0xff] }
  0x83   : > { %2473 = vmatmul.mubr.msk.f32.gmra.mxu1 %vm640_vm1, %v2044_v0  ;;  %2539 = vmatprep.subr.mxu0 %v2765_v37  ;;  %v2102_v0 = vld [vmem:[%s3116_s27 + $0x208] sm:$0xff] }
  0x84   : > { %2475 = vmatprep.mubr.msk.f32.mxu1 %vm2766_vm2, %v2765_v37  ;;  %2540 = vmatpush3.msra.mxu0 %v3103_v45 }
  0x85   : > { %2381 = vmatmul.mubr.msk.f32.gmra.mxu0 %vm640_vm1, %v624_v1  ;;  %2634 = vmatprep.subr.mxu1 %v2765_v37  ;;  %v2153_v1 = vld [vmem:[%s3116_s27 + $0x2d0] sm:$0xff] }
  0x86   : > { %2383 = vmatprep.mubr.msk.f32.mxu0 %vm2766_vm2, %v2765_v37  ;;  %2635 = vmatpush3.msra.mxu1 %v3103_v45  ;;  %v2143_v45 = vld [vmem:[%s3116_s27 + $0x280] sm:$0xff] }
  0x87   : > { %2476 = vmatmul.mubr.msk.f32.gmra.mxu1 %vm640_vm1, %v2045_v2  ;;  %2541 = vmatprep.subr.mxu0 %v2765_v37  ;;  %v2103_v2 = vld [vmem:[%s3116_s27 + $0x210] sm:$0xff] }
  0x88   : > { %2478 = vmatprep.mubr.msk.f32.mxu1 %vm2766_vm2, %v2765_v37  ;;  %2542 = vmatpush3.msra.mxu0 %v3112_v46 }
  0x89   : > { %2384 = vmatmul.mubr.msk.f32.gmra.mxu0 %vm640_vm1, %v625_v3  ;;  %2636 = vmatprep.subr.mxu1 %v2765_v37  ;;  %v2154_v3 = vld [vmem:[%s3116_s27 + $0x2d8] sm:$0xff] }
  0x8a   : > { %2386 = vmatprep.mubr.msk.f32.mxu0 %vm2766_vm2, %v2765_v37  ;;  %2637 = vmatpush3.msra.mxu1 %v3112_v46  ;;  %v2093_v46 = vld [vmem:[%s3116_s27 + $0x1c0] sm:$0xff] }
  0x8b   : > { %2479 = vmatmul.mubr.msk.f32.gmra.mxu1 %vm640_vm1, %v2046_v4  ;;  %v2104_v4 = vld [vmem:[%s3116_s27 + $0x218] sm:$0xff] }
  0x8c   : > { %2481 = vmatprep.mubr.msk.f32.mxu1 %vm2766_vm2, %v2765_v37 }
  0x8d   : > { %2387 = vmatmul.mubr.msk.f32.gmra.mxu0 %vm640_vm1, %v626_v5  ;;  %v2155_v5 = vld [vmem:[%s3116_s27 + $0x2e0] sm:$0xff] }
  0x8e   : > { %2389 = vmatprep.mubr.msk.f32.mxu0 %vm2766_vm2, %v2765_v37 }
  0x8f   : > { %2482 = vmatmul.mubr.msk.f32.gmra.mxu1 %vm640_vm1, %v2047_v6  ;;  %v2105_v6 = vld [vmem:[%s3116_s27 + $0x220] sm:$0xff] }
  0x90   : > { %2484 = vmatprep.mubr.msk.f32.mxu1 %vm2766_vm2, %v2765_v37 }
  0x91   : > { %2390 = vmatmul.mubr.msk.f32.gmra.mxu0 %vm640_vm1, %v627_v7  ;;  %v2156_v7 = vld [vmem:[%s3116_s27 + $0x2e8] sm:$0xff] }
  0x92   : > { %2392 = vmatprep.mubr.msk.f32.mxu0 %vm2766_vm2, %v2765_v37 }
  0x93   : > { %2485 = vmatmul.mubr.msk.f32.gmra.mxu1 %vm640_vm1, %v2048_v8  ;;  %v2106_v8 = vld [vmem:[%s3116_s27 + $0x228] sm:$0xff] }
  0x94   : > { %2487 = vmatprep.mubr.msk.f32.mxu1 %vm2766_vm2, %v2765_v37 }
  0x95   : > { %2393 = vmatmul.mubr.msk.f32.gmra.mxu0 %vm640_vm1, %v628_v9  ;;  %v2157_v9 = vld [vmem:[%s3116_s27 + $0x2f0] sm:$0xff] }
  0x96   : > { %2395 = vmatprep.mubr.msk.f32.mxu0 %vm2766_vm2, %v2765_v37 }
  0x97   : > { %2488 = vmatmul.mubr.msk.f32.gmra.mxu1 %vm640_vm1, %v2049_v10  ;;  %v2107_v10 = vld [vmem:[%s3116_s27 + $0x230] sm:$0xff] }
  0x98   : > { %2490 = vmatprep.mubr.msk.f32.mxu1 %vm2766_vm2, %v2765_v37 }
  0x99   : > { %2396 = vmatmul.mubr.msk.f32.gmra.mxu0 %vm640_vm1, %v629_v11  ;;  %v2158_v11 = vld [vmem:[%s3116_s27 + $0x2f8] sm:$0xff] }
  0x9a   : > { %2398 = vmatprep.mubr.msk.f32.mxu0 %vm2766_vm2, %v2765_v37 }
  0x9b   : > { %2491 = vmatmul.mubr.msk.f32.gmra.mxu1 %vm640_vm1, %v2050_v12  ;;  %v2108_v12 = vld [vmem:[%s3116_s27 + $0x238] sm:$0xff] }
  0x9c   : > { %2493 = vmatprep.mubr.msk.f32.mxu1 %vm2766_vm2, %v2765_v37 }
  0x9d   : > { %2399 = vmatmul.mubr.msk.f32.gmra.mxu0 %vm640_vm1, %v630_v13  ;;  %v2159_v13 = vld [vmem:[%s3116_s27 + $0x300] sm:$0xff] }
  0x9e   : > { %2401 = vmatprep.mubr.msk.f32.mxu0 %vm2766_vm2, %v2765_v37 }
  0x9f   : > { %2494 = vmatmul.mubr.msk.f32.gmra.mxu1 %vm640_vm1, %v2051_v14  ;;  %v2109_v14 = vld [vmem:[%s3116_s27 + $0x240] sm:$0xff] }
  0xa0   : > { %2496 = vmatprep.mubr.msk.f32.mxu1 %vm2766_vm2, %v2765_v37 }
  0xa1   : > { %2402 = vmatmul.mubr.msk.f32.gmra.mxu0 %vm640_vm1, %v631_v15  ;;  %v2160_v15 = vld [vmem:[%s3116_s27 + $0x308] sm:$0xff] }
  0xa2   : > { %2404 = vmatprep.mubr.msk.f32.mxu0 %vm2766_vm2, %v2765_v37 }
  0xa3   : > { %2497 = vmatmul.mubr.msk.f32.gmra.mxu1 %vm640_vm1, %v2052_v16  ;;  %v2110_v16 = vld [vmem:[%s3116_s27 + $0x248] sm:$0xff] }
  0xa4   : > { %2499 = vmatprep.mubr.msk.f32.mxu1 %vm2766_vm2, %v2765_v37 }
  0xa5   : > { %2405 = vmatmul.mubr.msk.f32.gmra.mxu0 %vm640_vm1, %v632_v17  ;;  %v2161_v17 = vld [vmem:[%s3116_s27 + $0x310] sm:$0xff] }
  0xa6   : > { %2407 = vmatprep.mubr.msk.f32.mxu0 %vm2766_vm2, %v2765_v37 }
  0xa7   : > { %2500 = vmatmul.mubr.msk.f32.gmra.mxu1 %vm640_vm1, %v2053_v18 }
  0xa8   : > { %2502 = vmatprep.mubr.msk.f32.mxu1 %vm2766_vm2, %v2765_v37 }
  0xa9   : > { %2408 = vmatmul.mubr.msk.f32.gmra.mxu0 %vm640_vm1, %v633_v19  ;;  %v2111_v19 = vld [vmem:[%s3116_s27 + $0x250] sm:$0xff] }
  0xaa   : > { %2410 = vmatprep.mubr.msk.f32.mxu0 %vm2766_vm2, %v2765_v37 }
  0xab   : > { %2503 = vmatmul.mubr.msk.f32.gmra.mxu1 %vm640_vm1, %v2054_v20 }
  0xac   : > { %2505 = vmatprep.mubr.msk.f32.mxu1 %vm2766_vm2, %v2765_v37 }
  0xad   : > { %2411 = vmatmul.mubr.msk.f32.gmra.mxu0 %vm640_vm1, %v634_v21 }
  0xae   : > { %2413 = vmatprep.mubr.msk.f32.mxu0 %vm2766_vm2, %v2765_v37 }
  0xaf   : > { %2506 = vmatmul.mubr.msk.f32.gmra.mxu1 %vm640_vm1, %v2055_v22 }
  0xb0   : > { %2508 = vmatprep.mubr.msk.f32.mxu1 %vm2766_vm2, %v2765_v37 }
  0xb1   : > { %2414 = vmatmul.mubr.msk.f32.gmra.mxu0 %vm640_vm1, %v635_v23  ;;  %v2162_v23 = vld [vmem:[%s3116_s27 + $0x318] sm:$0xff] }
  0xb2   : > { %2416 = vmatprep.mubr.msk.f32.mxu0 %vm2766_vm2, %v2765_v37 }
  0xb3   : > { %2509 = vmatmul.mubr.msk.f32.gmra.mxu1 %vm640_vm1, %v2056_v24 }
  0xb4   : > { %2511 = vmatprep.mubr.msk.f32.mxu1 %vm2766_vm2, %v2765_v37 }
  0xb5   : > { %2417 = vmatmul.mubr.msk.f32.gmra.mxu0 %vm640_vm1, %v636_v25 }
  0xb6   : > { %2419 = vmatprep.mubr.msk.f32.mxu0 %vm2766_vm2, %v2765_v37 }
  0xb7   : > { %2512 = vmatmul.mubr.msk.f32.gmra.mxu1 %vm640_vm1, %v2057_v26 }
  0xb8   : > { %2514 = vmatprep.mubr.msk.f32.mxu1 %vm2766_vm2, %v2765_v37 }
  0xb9   : > { %2420 = vmatmul.mubr.msk.f32.gmra.mxu0 %vm640_vm1, %v637_v27 }
  0xba   : > { %2422 = vmatprep.mubr.msk.f32.mxu0 %vm2766_vm2, %v2765_v37 }
  0xbb   : > { %2515 = vmatmul.mubr.msk.f32.gmra.mxu1 %vm640_vm1, %v2058_v28 }
  0xbc   : > { %2517 = vmatprep.mubr.msk.f32.mxu1 %vm2766_vm2, %v2765_v37 }
  0xbd   : > { %2423 = vmatmul.mubr.msk.f32.gmra.mxu0 %vm640_vm1, %v638_v29 }
  0xbe   : > { %2425 = vmatprep.mubr.msk.f32.mxu0 %vm2766_vm2, %v2765_v37 }
  0xbf   : > { %2518 = vmatmul.mubr.msk.f32.gmra.mxu1 %vm640_vm1, %v2059_v30 }
  0xc0   : > { %2520 = vmatprep.mubr.msk.f32.mxu1 %vm2766_vm2, %v2765_v37 }
  0xc1   : > { %2426 = vmatmul.mubr.msk.f32.gmra.mxu0 %vm640_vm1, %v639_v31 }
  0xc2   : > { %2543 = vmatprep.mubr.msk.f32.mxu0 %vm2766_vm2, %v2765_v37 }
  0xc3   : > { %2521 = vmatmul.mubr.msk.f32.gmra.mxu1 %vm640_vm1, %v2060_v32 }
  0xc4   : > { %2638 = vmatprep.mubr.msk.f32.mxu1 %vm2766_vm2, %v2765_v37 }
  0xc5   : > { %2544 = vmatmul.mubr.msk.f32.vlgmr.msra.gmra.mxu0 %vm640_vm1, %v2087_v33 }
  0xc6   : > { %2546 = vmatprep.mubr.msk.f32.mxu0 %vm2766_vm2, %v2765_v37 }
  0xc7   : > { %2639 = vmatmul.mubr.msk.f32.vlgmr.msra.gmra.mxu1 %vm640_vm1, %v2138_v34 }
  0xc8   : > { %2641 = vmatprep.mubr.msk.f32.mxu1 %vm2766_vm2, %v2765_v37 }
  0xc9   : > { %2547 = vmatmul.mubr.msk.f32.gmra.mxu0 %vm640_vm1, %v2088_v35 }
  0xca   : > { %2549 = vmatprep.mubr.msk.f32.mxu0 %vm2766_vm2, %v2765_v37 }
  0xcb   : > { %2642 = vmatmul.mubr.msk.f32.gmra.mxu1 %vm640_vm1, %v2139_v36 }
  0xcc   : > { %2644 = vmatprep.mubr.msk.f32.mxu1 %vm2766_vm2, %v2765_v37 }
  0xcd   : > { %2550 = vmatmul.mubr.msk.f32.gmra.mxu0 %vm640_vm1, %v2089_v38 }
  0xce   : > { %2552 = vmatprep.mubr.msk.f32.mxu0 %vm2766_vm2, %v2765_v37 }
  0xcf   : > { %2645 = vmatmul.mubr.msk.f32.gmra.mxu1 %vm640_vm1, %v2140_v39 }
  0xd0   : > { %2647 = vmatprep.mubr.msk.f32.mxu1 %vm2766_vm2, %v2765_v37 }
  0xd1   : > { %2553 = vmatmul.mubr.msk.f32.gmra.mxu0 %vm640_vm1, %v2090_v40 }
  0xd2   : > { %2555 = vmatprep.mubr.msk.f32.mxu0 %vm2766_vm2, %v2765_v37 }
  0xd3   : > { %2648 = vmatmul.mubr.msk.f32.gmra.mxu1 %vm640_vm1, %v2141_v41 }
  0xd4   : > { %2650 = vmatprep.mubr.msk.f32.mxu1 %vm2766_vm2, %v2765_v37 }
  0xd5   : > { %2556 = vmatmul.mubr.msk.f32.gmra.mxu0 %vm640_vm1, %v2091_v42 }
  0xd6   : > { %2558 = vmatprep.mubr.msk.f32.mxu0 %vm2766_vm2, %v2765_v37 }
  0xd7   : > { %2651 = vmatmul.mubr.msk.f32.gmra.mxu1 %vm640_vm1, %v2142_v43 }
  0xd8   : > { %2653 = vmatprep.mubr.msk.f32.mxu1 %vm2766_vm2, %v2765_v37 }
  0xd9   : > { %2559 = vmatmul.mubr.msk.f32.gmra.mxu0 %vm640_vm1, %v2092_v44 }
  0xda   : > { %2561 = vmatprep.mubr.msk.f32.mxu0 %vm2766_vm2, %v2765_v37 }
  0xdb   : > { %2654 = vmatmul.mubr.msk.f32.gmra.mxu1 %vm640_vm1, %v2143_v45 }
  0xdc   : > { %2656 = vmatprep.mubr.msk.f32.mxu1 %vm2766_vm2, %v2765_v37 }
  0xdd   : > { %2562 = vmatmul.mubr.msk.f32.gmra.mxu0 %vm640_vm1, %v2093_v46 }
  0xde   : > { %2564 = vmatprep.mubr.msk.f32.mxu0 %vm2766_vm2, %v2765_v37 }
  0xdf   : > { %2657 = vmatmul.mubr.msk.f32.gmra.mxu1 %vm640_vm1, %v2144_v47 }
  0xe0   : > { %2659 = vmatprep.mubr.msk.f32.mxu1 %vm2766_vm2, %v2765_v37 }
  0xe1   : > { %2565 = vmatmul.mubr.msk.f32.gmra.mxu0 %vm640_vm1, %v2094_v48 }
  0xe2   : > { %2567 = vmatprep.mubr.msk.f32.mxu0 %vm2766_vm2, %v2765_v37 }
  0xe3   : > { %2660 = vmatmul.mubr.msk.f32.gmra.mxu1 %vm640_vm1, %v2145_v49 }
  0xe4   : > { %2662 = vmatprep.mubr.msk.f32.mxu1 %vm2766_vm2, %v2765_v37 }
  0xe5   : > { %2568 = vmatmul.mubr.msk.f32.gmra.mxu0 %vm640_vm1, %v2095_v50 }
  0xe6   : > { %2570 = vmatprep.mubr.msk.f32.mxu0 %vm2766_vm2, %v2765_v37 }
  0xe7   : > { %2663 = vmatmul.mubr.msk.f32.gmra.mxu1 %vm640_vm1, %v2146_v51 }
  0xe8   : > { %2665 = vmatprep.mubr.msk.f32.mxu1 %vm2766_vm2, %v2765_v37 }
  0xe9   : > { %2571 = vmatmul.mubr.msk.f32.gmra.mxu0 %vm640_vm1, %v2096_v52 }
  0xea   : > { %2573 = vmatprep.mubr.msk.f32.mxu0 %vm2766_vm2, %v2765_v37 }
  0xeb   : > { %2666 = vmatmul.mubr.msk.f32.gmra.mxu1 %vm640_vm1, %v2147_v53 }
  0xec   : > { %2668 = vmatprep.mubr.msk.f32.mxu1 %vm2766_vm2, %v2765_v37 }
  0xed   : > { %2574 = vmatmul.mubr.msk.f32.gmra.mxu0 %vm640_vm1, %v2097_v54 }
  0xee   : > { %2576 = vmatprep.mubr.msk.f32.mxu0 %vm2766_vm2, %v2765_v37 }
  0xef   : > { %2669 = vmatmul.mubr.msk.f32.gmra.mxu1 %vm640_vm1, %v2148_v55 }
  0xf0   : > { %2671 = vmatprep.mubr.msk.f32.mxu1 %vm2766_vm2, %v2765_v37 }
  0xf1   : > { %2577 = vmatmul.mubr.msk.f32.gmra.mxu0 %vm640_vm1, %v2098_v56 }
  0xf2   : > { %2579 = vmatprep.mubr.msk.f32.mxu0 %vm2766_vm2, %v2765_v37 }
  0xf3   : > { %2672 = vmatmul.mubr.msk.f32.gmra.mxu1 %vm640_vm1, %v2149_v57 }
  0xf4   : > { %2674 = vmatprep.mubr.msk.f32.mxu1 %vm2766_vm2, %v2765_v37 }
  0xf5   : > { %2580 = vmatmul.mubr.msk.f32.gmra.mxu0 %vm640_vm1, %v2099_v58 }
  0xf6   : > { %2582 = vmatprep.mubr.msk.f32.mxu0 %vm2766_vm2, %v2765_v37 }
  0xf7   : > { %2675 = vmatmul.mubr.msk.f32.gmra.mxu1 %vm640_vm1, %v2150_v59 }
  0xf8   : > { %2677 = vmatprep.mubr.msk.f32.mxu1 %vm2766_vm2, %v2765_v37 }
  0xf9   : > { %2583 = vmatmul.mubr.msk.f32.gmra.mxu0 %vm640_vm1, %v2100_v60 }
  0xfa   : > { %2585 = vmatprep.mubr.msk.f32.mxu0 %vm2766_vm2, %v2765_v37 }
  0xfb   : > { %2678 = vmatmul.mubr.msk.f32.gmra.mxu1 %vm640_vm1, %v2151_v61 }
  0xfc   : > { %2680 = vmatprep.mubr.msk.f32.mxu1 %vm2766_vm2, %v2765_v37 }
  0xfd   : > { %2586 = vmatmul.mubr.msk.f32.gmra.mxu0 %vm640_vm1, %v2101_v62 }
  0xfe   : > { %2588 = vmatprep.mubr.msk.f32.mxu0 %vm2766_vm2, %v2765_v37 }
  0xff   : > { %2681 = vmatmul.mubr.msk.f32.gmra.mxu1 %vm640_vm1, %v2152_v63 }
 0x100   : > { %2683 = vmatprep.mubr.msk.f32.mxu1 %vm2766_vm2, %v2765_v37 }
 0x101   : > { %2589 = vmatmul.mubr.msk.f32.gmra.mxu0 %vm640_vm1, %v2102_v0 }
 0x102   : > { %2591 = vmatprep.mubr.msk.f32.mxu0 %vm2766_vm2, %v2765_v37 }
 0x103   : > { %2684 = vmatmul.mubr.msk.f32.gmra.mxu1 %vm640_vm1, %v2153_v1 }
 0x104   : > { %2686 = vmatprep.mubr.msk.f32.mxu1 %vm2766_vm2, %v2765_v37 }
 0x105   : > { %2592 = vmatmul.mubr.msk.f32.gmra.mxu0 %vm640_vm1, %v2103_v2 }
 0x106   : > { %2594 = vmatprep.mubr.msk.f32.mxu0 %vm2766_vm2, %v2765_v37 }
 0x107   : > { %2687 = vmatmul.mubr.msk.f32.gmra.mxu1 %vm640_vm1, %v2154_v3 }
 0x108   : > { %2689 = vmatprep.mubr.msk.f32.mxu1 %vm2766_vm2, %v2765_v37 }
 0x109   : > { %2595 = vmatmul.mubr.msk.f32.gmra.mxu0 %vm640_vm1, %v2104_v4 }
 0x10a   : > { %2597 = vmatprep.mubr.msk.f32.mxu0 %vm2766_vm2, %v2765_v37 }
 0x10b   : > { %2690 = vmatmul.mubr.msk.f32.gmra.mxu1 %vm640_vm1, %v2155_v5 }
 0x10c   : > { %2692 = vmatprep.mubr.msk.f32.mxu1 %vm2766_vm2, %v2765_v37 }
 0x10d   : > { %2598 = vmatmul.mubr.msk.f32.gmra.mxu0 %vm640_vm1, %v2105_v6 }
 0x10e   : > { %2600 = vmatprep.mubr.msk.f32.mxu0 %vm2766_vm2, %v2765_v37 }
 0x10f   : > { %2693 = vmatmul.mubr.msk.f32.gmra.mxu1 %vm640_vm1, %v2156_v7 }
 0x110   : > { %2695 = vmatprep.mubr.msk.f32.mxu1 %vm2766_vm2, %v2765_v37 }
 0x111   : > { %2601 = vmatmul.mubr.msk.f32.gmra.mxu0 %vm640_vm1, %v2106_v8 }
 0x112   : > { %2603 = vmatprep.mubr.msk.f32.mxu0 %vm2766_vm2, %v2765_v37 }
 0x113   : > { %2696 = vmatmul.mubr.msk.f32.gmra.mxu1 %vm640_vm1, %v2157_v9 }
 0x114   : > { %2698 = vmatprep.mubr.msk.f32.mxu1 %vm2766_vm2, %v2765_v37 }
 0x115   : > { %2604 = vmatmul.mubr.msk.f32.gmra.mxu0 %vm640_vm1, %v2107_v10 }
 0x116   : > { %2606 = vmatprep.mubr.msk.f32.mxu0 %vm2766_vm2, %v2765_v37 }
 0x117   : > { %2699 = vmatmul.mubr.msk.f32.gmra.mxu1 %vm640_vm1, %v2158_v11 }
 0x118   : > { %2701 = vmatprep.mubr.msk.f32.mxu1 %vm2766_vm2, %v2765_v37 }
 0x119   : > { %2607 = vmatmul.mubr.msk.f32.gmra.mxu0 %vm640_vm1, %v2108_v12 }
 0x11a   : > { %2609 = vmatprep.mubr.msk.f32.mxu0 %vm2766_vm2, %v2765_v37 }
 0x11b   : > { %2702 = vmatmul.mubr.msk.f32.gmra.mxu1 %vm640_vm1, %v2159_v13 }
 0x11c   : > { %2704 = vmatprep.mubr.msk.f32.mxu1 %vm2766_vm2, %v2765_v37 }
 0x11d   : > { %2610 = vmatmul.mubr.msk.f32.gmra.mxu0 %vm640_vm1, %v2109_v14 }
 0x11e   : > { %2612 = vmatprep.mubr.msk.f32.mxu0 %vm2766_vm2, %v2765_v37 }
 0x11f   : > { %2705 = vmatmul.mubr.msk.f32.gmra.mxu1 %vm640_vm1, %v2160_v15 }
 0x120   : > { %2707 = vmatprep.mubr.msk.f32.mxu1 %vm2766_vm2, %v2765_v37 }
 0x121   : > { %v3554_v18 = vpop.f32.mrf.mxu0  ;;  %2613 = vmatmul.mubr.msk.f32.gmra.mxu0 %vm640_vm1, %v2110_v16 }
 0x122   : > { %2615 = vmatprep.mubr.msk.f32.mxu0 %vm2766_vm2, %v2765_v37 }
 0x123   : > { %v3560_v20 = vpop.f32.mrf.mxu1  ;;  %2708 = vmatmul.mubr.msk.f32.gmra.mxu1 %vm640_vm1, %v2161_v17  ;;  %v2355_v21 = vpop.f32.mrf.mxu0 }
 0x124   : > { %v1201_v22 = vmax.f32 %v3554_v18, %v3560_v20  ;;  %2710 = vmatprep.mubr.msk.f32.mxu1 %vm2766_vm2, %v2765_v37 }
 0x125   : > { %v2450_v24 = vpop.f32.mrf.mxu1  ;;  %v3568_v25 = vpop.f32.mrf.mxu0  ;;  %2616 = vmatmul.mubr.msk.f32.gmra.mxu0 %vm640_vm1, %v2111_v19 }
 0x127   : > { %v3571_v26 = vpop.f32.mrf.mxu1  ;;  %2711 = vmatmul.mubr.msk.f32.gmra.mxu1 %vm640_vm1, %v2162_v23  ;;  %v2358_v27 = vpop.f32.mrf.mxu0 }
 0x128   : > { %v1202_v28 = vmax.f32 %v3568_v25, %v3571_v26 }
 0x129   : > { %v2453_v29 = vpop.f32.mrf.mxu1  ;;  %v3576_v30 = vpop.f32.mrf.mxu0 }
 0x12b   : > { %v3578_v31 = vpop.f32.mrf.mxu1  ;;  %v2361_v37 = vpop.f32.mrf.mxu0 }
 0x12c   : > { %v1203_v32 = vmax.f32 %v3576_v30, %v3578_v31 }
 0x12d   : > { %v2456_v33 = vpop.f32.mrf.mxu1  ;;  %v3582_v34 = vpop.f32.mrf.mxu0 }
 0x12f   : > { %v3584_v35 = vpop.f32.mrf.mxu1  ;;  %v2364_v36 = vpop.f32.mrf.mxu0 }
 0x131   : > { %v2459_v39 = vpop.f32.mrf.mxu1  ;;  %v3588_v40 = vpop.f32.mrf.mxu0 }
 0x133   : > { %v3590_v41 = vpop.f32.mrf.mxu1  ;;  %v2367_v42 = vpop.f32.mrf.mxu0 }
 0x135   : > { %v2462_v44 = vpop.f32.mrf.mxu1  ;;  %v3594_v45 = vpop.f32.mrf.mxu0 }
 0x137   : > { %v3596_v46 = vpop.f32.mrf.mxu1  ;;  %v2370_v47 = vpop.f32.mrf.mxu0 }
 0x139   : > { %v2465_v49 = vpop.f32.mrf.mxu1  ;;  %v3600_v50 = vpop.f32.mrf.mxu0 }
 0x13b   : > { %v3602_v51 = vpop.f32.mrf.mxu1  ;;  %v2373_v52 = vpop.f32.mrf.mxu0 }
 0x13d   : > { %v2468_v54 = vpop.f32.mrf.mxu1  ;;  %v3606_v55 = vpop.f32.mrf.mxu0 }
 0x13f   : > { %v3608_v56 = vpop.f32.mrf.mxu1  ;;  %v2376_v57 = vpop.f32.mrf.mxu0 }
 0x141   : > { %v2471_v59 = vpop.f32.mrf.mxu1  ;;  %v3612_v60 = vpop.f32.mrf.mxu0 }
 0x143   : > { %v3614_v61 = vpop.f32.mrf.mxu1  ;;  %v2379_v62 = vpop.f32.mrf.mxu0 }
 0x145   : > { %v2474_v0 = vpop.f32.mrf.mxu1  ;;  %v3618_v1 = vpop.f32.mrf.mxu0 }
 0x147   : > { %v3620_v2 = vpop.f32.mrf.mxu1  ;;  %v2382_v3 = vpop.f32.mrf.mxu0 }
 0x149   : > { %v2477_v5 = vpop.f32.mrf.mxu1  ;;  %v3624_v6 = vpop.f32.mrf.mxu0 }
 0x14b   : > { %v3626_v7 = vpop.f32.mrf.mxu1  ;;  %v2385_v8 = vpop.f32.mrf.mxu0 }
 0x14d   : > { %v2480_v10 = vpop.f32.mrf.mxu1  ;;  %v3630_v11 = vpop.f32.mrf.mxu0 }
 0x14f   : > { %v3632_v12 = vpop.f32.mrf.mxu1  ;;  %v2388_v13 = vpop.f32.mrf.mxu0 }
 0x151   : > { %v2483_v15 = vpop.f32.mrf.mxu1  ;;  %v3636_v16 = vpop.f32.mrf.mxu0 }
 0x153   : > { %v3638_v17 = vpop.f32.mrf.mxu1  ;;  %v2391_v19 = vpop.f32.mrf.mxu0 }
 0x155   : > { %v2486_v23 = vpop.f32.mrf.mxu1  ;;  %v3642_v24 = vpop.f32.mrf.mxu0 }
 0x157   : > { %v3644_v27 = vpop.f32.mrf.mxu1  ;;  %v2394_v29 = vpop.f32.mrf.mxu0 }
 0x159   : > { %v2489_v33 = vpop.f32.mrf.mxu1  ;;  %v3648_v36 = vpop.f32.mrf.mxu0 }
 0x15b   : > { %v3650_v39 = vpop.f32.mrf.mxu1  ;;  %v2397_v42 = vpop.f32.mrf.mxu0 }
 0x15d   : > { %v2492_v47 = vpop.f32.mrf.mxu1  ;;  %v3654_v49 = vpop.f32.mrf.mxu0 }
 0x15f   : > { %v3656_v52 = vpop.f32.mrf.mxu1  ;;  %v2400_v54 = vpop.f32.mrf.mxu0 }
 0x161   : > { %v2495_v59 = vpop.f32.mrf.mxu1  ;;  %v3660_v62 = vpop.f32.mrf.mxu0 }
 0x163   : > { %v3662_v0 = vpop.f32.mrf.mxu1  ;;  %v2403_v3 = vpop.f32.mrf.mxu0 }
 0x165   : > { %v2498_v8 = vpop.f32.mrf.mxu1  ;;  %v3666_v10 = vpop.f32.mrf.mxu0 }
 0x167   : > { %v3668_v13 = vpop.f32.mrf.mxu1  ;;  %v2406_v15 = vpop.f32.mrf.mxu0 }
 0x169   : > { %v2501_v23 = vpop.f32.mrf.mxu1  ;;  %v3672_v29 = vpop.f32.mrf.mxu0 }
 0x16b   : > { %v3674_v33 = vpop.f32.mrf.mxu1  ;;  %v2409_v42 = vpop.f32.mrf.mxu0 }
 0x16d   : > { %v2504_v54 = vpop.f32.mrf.mxu1  ;;  %v3678_v59 = vpop.f32.mrf.mxu0 }
 0x16f   : > { %v3680_v3 = vpop.f32.mrf.mxu1  ;;  %v2412_v8 = vpop.f32.mrf.mxu0 }
 0x171   : > { %v2507_v19 = vpop.f32.mrf.mxu1  ;;  %v3684_v23 = vpop.f32.mrf.mxu0 }
 0x173   : > { %v3686_v5 = vpop.f32.mrf.mxu1  ;;  %v2415_v57 = vpop.f32.mrf.mxu0 }
 0x175   : > { %v2510_v47 = vpop.f32.mrf.mxu1  ;;  %v3690_v54 = vpop.f32.mrf.mxu0 }
 0x177   : > { %v3692_v44 = vpop.f32.mrf.mxu1  ;;  %v2418_v37 = vpop.f32.mrf.mxu0 }
 0x179   : > { %v2513_v15 = vpop.f32.mrf.mxu1  ;;  %v3696_v21 = vpop.f32.mrf.mxu0 }
 0x17b   : > { %v3698_v19 = vpop.f32.mrf.mxu1  ;;  %v2421_v14 = vpop.f32.mrf.mxu0 }
 0x17d   : > { %v2516_v47 = vpop.f32.mrf.mxu1  ;;  %v3704_v42 = vpop.f32.mrf.mxu0 }
 0x17f   : > { %v3706_v9 = vpop.f32.mrf.mxu1  ;;  %v2424_v37 = vpop.f32.mrf.mxu0 }
 0x181   : > { %v2519_v15 = vpop.f32.mrf.mxu1  ;;  %v3710_v4 = vpop.f32.mrf.mxu0 }
 0x182   : > { %v3722_v15 = vld [vmem:[%s3888_s2] ss:$0 sm:$0xff] }
 0x183   : > { %v3712_v63 = vpop.f32.mrf.mxu1  ;;  %v2427_v14 = vpop.f32.mrf.mxu0 }
 0x185   : > { %v2522_v47 = vpop.f32.mrf.mxu1  ;;  %v1393_v58 = vpop.f32.mrf.mxu0 }
 0x186   : > { %v1517_v37 = vmax.f32 %v1201_v22, %v1393_v58 }
 0x187   : > { %v1709_v53 = vpop.f32.mrf.mxu1  ;;  %v2545_v8 = vpop.f32.mrf.mxu0 }
 0x188   : > { %v1833_v48 = vmax.f32 %v1517_v37, %v1709_v53 }
 0x189   : > { %v2640_v14 = vpop.f32.mrf.mxu1  ;;  %v1398_v43 = vpop.f32.mrf.mxu0 }
 0x18a   : > { %v1865_v57 = vadd.f32 %v3722_v15, %v1833_v48  ;;  %v1518_v47 = vmax.f32 %v1202_v28, %v1398_v43 }
 0x18b   : > { %v1714_v18 = vpop.f32.mrf.mxu1  ;;  %v2548_v20 = vpop.f32.mrf.mxu0 }
 0x18c   : > { %v1890_v22 = vmax.f32 %v1865_v57, 0.0  ;;  %v1834_v53 = vmax.f32 %v1518_v47, %v1714_v18  ;;  %v3890_v47 = vmax.f32 %v3582_v34, %v3584_v35 }
 0x18d   : > { %v2643_v58 = vpop.f32.mrf.mxu1  ;;  %v1403_v8 = vpop.f32.mrf.mxu0 }
 0x18e   : > { %1916 = vst.msk [vmem:[%s3731_s5] sm:$0xff] %vm1915_vm3, %v1890_v22  ;;  %v1866_v48 = vadd.f32 %v3722_v15, %v1834_v53  ;;  %v1519_v25 = vmax.f32 %v1203_v32, %v1403_v8  ;;  %v3891_v8 = vmax.f32 %v3588_v40, %v3590_v41 }
 0x18f   : > { %v1719_v26 = vpop.f32.mrf.mxu1  ;;  %v2551_v28 = vpop.f32.mrf.mxu0 }
 0x190   : > { %v1891_v43 = vmax.f32 %v1866_v48, 0.0  ;;  %v1835_v37 = vmax.f32 %v1519_v25, %v1719_v26 }
 0x191   : > { %v2646_v14 = vpop.f32.mrf.mxu1  ;;  %v1408_v38 = vpop.f32.mrf.mxu0 }
 0x192   : > { %1917 = vst.msk [vmem:[%s3731_s5 + $0x8] sm:$0xff] %vm1915_vm3, %v1891_v43  ;;  %v1867_v57 = vadd.f32 %v3722_v15, %v1835_v37  ;;  %v1520_v18 = vmax.f32 %v3890_v47, %v1408_v38  ;;  %v3892_v37 = vmax.f32 %v3594_v45, %v3596_v46 }
 0x193   : > { %v1724_v20 = vpop.f32.mrf.mxu1  ;;  %v2554_v22 = vpop.f32.mrf.mxu0 }
 0x194   : > { %v1892_v30 = vmax.f32 %v1867_v57, 0.0  ;;  %v1836_v31 = vmax.f32 %v1520_v18, %v1724_v20 }
 0x195   : > { %v2649_v32 = vpop.f32.mrf.mxu1  ;;  %v1413_v53 = vpop.f32.mrf.mxu0 }
 0x196   : > { %1918 = vst.msk [vmem:[%s3731_s5 + $0x10] sm:$0xff] %vm1915_vm3, %v1892_v30  ;;  %v1868_v58 = vadd.f32 %v3722_v15, %v1836_v31  ;;  %v1521_v48 = vmax.f32 %v3891_v8, %v1413_v53  ;;  %v3893_v30 = vmax.f32 %v3600_v50, %v3602_v51 }
 0x197   : > { %v1729_v25 = vpop.f32.mrf.mxu1  ;;  %v2557_v26 = vpop.f32.mrf.mxu0 }
 0x198   : > { %v1893_v34 = vmax.f32 %v1868_v58, 0.0  ;;  %v1837_v35 = vmax.f32 %v1521_v48, %v1729_v25  ;;  %v3894_v25 = vmax.f32 %v3606_v55, %v3608_v56 }
 0x199   : > { %v2652_v38 = vpop.f32.mrf.mxu1  ;;  %v1418_v28 = vpop.f32.mrf.mxu0 }
 0x19a   : > { %1919 = vst.msk [vmem:[%s3731_s5 + $0x18] sm:$0xff] %vm1915_vm3, %v1893_v34  ;;  %v1869_v43 = vadd.f32 %v3722_v15, %v1837_v35  ;;  %v1522_v14 = vmax.f32 %v3892_v37, %v1418_v28  ;;  %v3895_v37 = vmax.f32 %v3612_v60, %v3614_v61 }
 0x19b   : > { %v1734_v57 = vpop.f32.mrf.mxu1  ;;  %v2560_v47 = vpop.f32.mrf.mxu0 }
 0x19c   : > { %v1894_v40 = vmax.f32 %v1869_v43, 0.0  ;;  %v1838_v41 = vmax.f32 %v1522_v14, %v1734_v57 }
 0x19d   : > { %v2655_v18 = vpop.f32.mrf.mxu1  ;;  %v1423_v20 = vpop.f32.mrf.mxu0 }
 0x19e   : > { %1920 = vst.msk [vmem:[%s3731_s5 + $0x20] sm:$0xff] %vm1915_vm3, %v1894_v40  ;;  %v1870_v22 = vadd.f32 %v3722_v15, %v1838_v41  ;;  %v1523_v31 = vmax.f32 %v3893_v30, %v1423_v20  ;;  %v3896_v20 = vmax.f32 %v3618_v1, %v3620_v2 }
 0x19f   : > { %v1739_v32 = vpop.f32.mrf.mxu1  ;;  %v2563_v53 = vpop.f32.mrf.mxu0 }
 0x1a0   : > { %v1895_v45 = vmax.f32 %v1870_v22, 0.0  ;;  %v1839_v46 = vmax.f32 %v1523_v31, %v1739_v32 }
 0x1a1   : > { %v2658_v58 = vpop.f32.mrf.mxu1  ;;  %v1428_v8 = vpop.f32.mrf.mxu0 }
 0x1a2   : > { %1921 = vst.msk [vmem:[%s3731_s5 + $0x28] sm:$0xff] %vm1915_vm3, %v1895_v45  ;;  %v1871_v48 = vadd.f32 %v3722_v15, %v1839_v46  ;;  %v1524_v26 = vmax.f32 %v3894_v25, %v1428_v8  ;;  %v3897_v46 = vmax.f32 %v3624_v6, %v3626_v7 }
 0x1a3   : > { %v1744_v34 = vpop.f32.mrf.mxu1  ;;  %v2566_v35 = vpop.f32.mrf.mxu0 }
 0x1a4   : > { %v1896_v50 = vmax.f32 %v1871_v48, 0.0  ;;  %v1840_v51 = vmax.f32 %v1524_v26, %v1744_v34  ;;  %v3898_v35 = vmax.f32 %v3630_v11, %v3632_v12 }
 0x1a5   : > { %v2661_v38 = vpop.f32.mrf.mxu1  ;;  %v1433_v28 = vpop.f32.mrf.mxu0 }
 0x1a6   : > { %1922 = vst.msk [vmem:[%s3731_s5 + $0x30] sm:$0xff] %vm1915_vm3, %v1896_v50  ;;  %v1872_v43 = vadd.f32 %v3722_v15, %v1840_v51  ;;  %v1525_v14 = vmax.f32 %v3895_v37, %v1433_v28 }
 0x1a7   : > { %v1749_v57 = vpop.f32.mrf.mxu1  ;;  %v2569_v47 = vpop.f32.mrf.mxu0 }
 0x1a8   : > { %v1897_v55 = vmax.f32 %v1872_v43, 0.0  ;;  %v1841_v56 = vmax.f32 %v1525_v14, %v1749_v57  ;;  %v3899_v14 = vmax.f32 %v3636_v16, %v3638_v17 }
 0x1a9   : > { %v2664_v40 = vpop.f32.mrf.mxu1  ;;  %v1438_v41 = vpop.f32.mrf.mxu0 }
 0x1aa   : > { %1923 = vst.msk [vmem:[%s3731_s5 + $0x38] sm:$0xff] %vm1915_vm3, %v1897_v55  ;;  %v1873_v18 = vadd.f32 %v3722_v15, %v1841_v56  ;;  %v1526_v22 = vmax.f32 %v3896_v20, %v1438_v41 }
 0x1ab   : > { %v1754_v30 = vpop.f32.mrf.mxu1  ;;  %v2572_v31 = vpop.f32.mrf.mxu0 }
 0x1ac   : > { %v1898_v60 = vmax.f32 %v1873_v18, 0.0  ;;  %v1842_v61 = vmax.f32 %v1526_v22, %v1754_v30  ;;  %v3900_v18 = vmax.f32 %v3642_v24, %v3644_v27 }
 0x1ad   : > { %v2667_v32 = vpop.f32.mrf.mxu1  ;;  %v1443_v53 = vpop.f32.mrf.mxu0 }
 0x1ae   : > { %1924 = vst.msk [vmem:[%s3731_s5 + $0x40] sm:$0xff] %vm1915_vm3, %v1898_v60  ;;  %v1874_v45 = vadd.f32 %v3722_v15, %v1842_v61  ;;  %v1527_v58 = vmax.f32 %v3897_v46, %v1443_v53  ;;  %v3901_v32 = vmax.f32 %v3648_v36, %v3650_v39 }
 0x1af   : > { %v1759_v8 = vpop.f32.mrf.mxu1  ;;  %v2575_v48 = vpop.f32.mrf.mxu0 }
 0x1b0   : > { %v1899_v1 = vmax.f32 %v1874_v45, 0.0  ;;  %v1843_v2 = vmax.f32 %v1527_v58, %v1759_v8 }
 0x1b1   : > { %v2670_v25 = vpop.f32.mrf.mxu1  ;;  %v1448_v26 = vpop.f32.mrf.mxu0 }
 0x1b2   : > { %1925 = vst.msk [vmem:[%s3731_s5 + $0x48] sm:$0xff] %vm1915_vm3, %v1899_v1  ;;  %v1875_v34 = vadd.f32 %v3722_v15, %v1843_v2  ;;  %v1528_v50 = vmax.f32 %v3898_v35, %v1448_v26  ;;  %v3902_v1 = vmax.f32 %v3654_v49, %v3656_v52 }
 0x1b3   : > { %v1764_v51 = vpop.f32.mrf.mxu1  ;;  %v2578_v38 = vpop.f32.mrf.mxu0 }
 0x1b4   : > { %v1900_v6 = vmax.f32 %v1875_v34, 0.0  ;;  %v1844_v7 = vmax.f32 %v1528_v50, %v1764_v51  ;;  %v3903_v51 = vmax.f32 %v3660_v62, %v3662_v0 }
 0x1b5   : > { %v2673_v28 = vpop.f32.mrf.mxu1  ;;  %v1453_v43 = vpop.f32.mrf.mxu0 }
 0x1b6   : > { %1926 = vst.msk [vmem:[%s3731_s5 + $0x50] sm:$0xff] %vm1915_vm3, %v1900_v6  ;;  %v1876_v37 = vadd.f32 %v3722_v15, %v1844_v7  ;;  %v1529_v57 = vmax.f32 %v3899_v14, %v1453_v43  ;;  %v3904_v14 = vmax.f32 %v3666_v10, %v3668_v13 }
 0x1b7   : > { %v1769_v47 = vpop.f32.mrf.mxu1  ;;  %v2581_v55 = vpop.f32.mrf.mxu0 }
 0x1b8   : > { %v1901_v11 = vmax.f32 %v1876_v37, 0.0  ;;  %v1845_v12 = vmax.f32 %v1529_v57, %v1769_v47 }
 0x1b9   : > { %v2676_v56 = vpop.f32.mrf.mxu1  ;;  %v1458_v40 = vpop.f32.mrf.mxu0 }
 0x1ba   : > { %1927 = vst.msk [vmem:[%s3731_s5 + $0x58] sm:$0xff] %vm1915_vm3, %v1901_v11  ;;  %v1877_v41 = vadd.f32 %v3722_v15, %v1845_v12  ;;  %v1530_v20 = vmax.f32 %v3900_v18, %v1458_v40  ;;  %v3905_v40 = vmax.f32 %v3672_v29, %v3674_v33 }
 0x1bb   : > { %v1774_v22 = vpop.f32.mrf.mxu1  ;;  %v2584_v30 = vpop.f32.mrf.mxu0 }
 0x1bc   : > { %v1902_v16 = vmax.f32 %v1877_v41, 0.0  ;;  %v1846_v17 = vmax.f32 %v1530_v20, %v1774_v22 }
 0x1bd   : > { %v2679_v31 = vpop.f32.mrf.mxu1  ;;  %v1463_v60 = vpop.f32.mrf.mxu0 }
 0x1be   : > { %1928 = vst.msk [vmem:[%s3731_s5 + $0x60] sm:$0xff] %vm1915_vm3, %v1902_v16  ;;  %v1878_v61 = vadd.f32 %v3722_v15, %v1846_v17  ;;  %v1531_v53 = vmax.f32 %v3901_v32, %v1463_v60  ;;  %v3906_v17 = vmax.f32 %v3678_v59, %v3680_v3 }
 0x1bf   : > { %v1779_v45 = vpop.f32.mrf.mxu1  ;;  %v2587_v46 = vpop.f32.mrf.mxu0 }
 0x1c0   : > { %v1903_v24 = vmax.f32 %v1878_v61, 0.0  ;;  %v1847_v27 = vmax.f32 %v1531_v53, %v1779_v45  ;;  %v3907_v46 = vmax.f32 %v3684_v23, %v3686_v5 }
 0x1c1   : > { %v2682_v58 = vpop.f32.mrf.mxu1  ;;  %v1468_v8 = vpop.f32.mrf.mxu0 }
 0x1c2   : > { %1929 = vst.msk [vmem:[%s3731_s5 + $0x68] sm:$0xff] %vm1915_vm3, %v1903_v24  ;;  %v1879_v48 = vadd.f32 %v3722_v15, %v1847_v27  ;;  %v1532_v2 = vmax.f32 %v3902_v1, %v1468_v8 }
 0x1c3   : > { %v1784_v25 = vpop.f32.mrf.mxu1  ;;  %v2590_v26 = vpop.f32.mrf.mxu0 }
 0x1c4   : > { %v1904_v36 = vmax.f32 %v1879_v48, 0.0  ;;  %v1848_v39 = vmax.f32 %v1532_v2, %v1784_v25  ;;  %v3908_v2 = vmax.f32 %v3690_v54, %v3692_v44 }
 0x1c5   : > { %v2685_v34 = vpop.f32.mrf.mxu1  ;;  %v1473_v35 = vpop.f32.mrf.mxu0 }
 0x1c6   : > { %1930 = vst.msk [vmem:[%s3731_s5 + $0x70] sm:$0xff] %vm1915_vm3, %v1904_v36  ;;  %v1880_v50 = vadd.f32 %v3722_v15, %v1848_v39  ;;  %v1533_v38 = vmax.f32 %v3903_v51, %v1473_v35 }
 0x1c7   : > { %v1789_v6 = vpop.f32.mrf.mxu1  ;;  %v2593_v7 = vpop.f32.mrf.mxu0 }
 0x1c8   : > { %v1905_v49 = vmax.f32 %v1880_v50, 0.0  ;;  %v1849_v52 = vmax.f32 %v1533_v38, %v1789_v6  ;;  %v3909_v50 = vmax.f32 %v3696_v21, %v3698_v19 }
 0x1c9   : > { %v2688_v28 = vpop.f32.mrf.mxu1  ;;  %v1478_v43 = vpop.f32.mrf.mxu0 }
 0x1ca   : > { %1931 = vst.msk [vmem:[%s3731_s5 + $0x78] sm:$0xff] %vm1915_vm3, %v1905_v49  ;;  %v1881_v37 = vadd.f32 %v3722_v15, %v1849_v52  ;;  %v1534_v57 = vmax.f32 %v3904_v14, %v1478_v43  ;;  %v3910_v28 = vmax.f32 %v3704_v42, %v3706_v9 }
 0x1cb   : > { %v1794_v47 = vpop.f32.mrf.mxu1  ;;  %v2596_v55 = vpop.f32.mrf.mxu0 }
 0x1cc   : > { %v1906_v62 = vmax.f32 %v1881_v37, 0.0  ;;  %v1850_v0 = vmax.f32 %v1534_v57, %v1794_v47 }
 0x1cd   : > { %v2691_v11 = vpop.f32.mrf.mxu1  ;;  %v1483_v12 = vpop.f32.mrf.mxu0 }
 0x1ce   : > { %1932 = vst.msk [vmem:[%s3731_s5 + $0x80] sm:$0xff] %vm1915_vm3, %v1906_v62  ;;  %v1882_v56 = vadd.f32 %v3722_v15, %v1850_v0  ;;  %v1535_v41 = vmax.f32 %v3905_v40, %v1483_v12  ;;  %v3911_v62 = vmax.f32 %v3710_v4, %v3712_v63 }
 0x1cf   : > { %v1799_v18 = vpop.f32.mrf.mxu1  ;;  %v2599_v20 = vpop.f32.mrf.mxu0 }
 0x1d0   : > { %v1907_v10 = vmax.f32 %v1882_v56, 0.0  ;;  %v1851_v13 = vmax.f32 %v1535_v41, %v1799_v18 }
 0x1d1   : > { %v2694_v22 = vpop.f32.mrf.mxu1  ;;  %v1488_v30 = vpop.f32.mrf.mxu0 }
 0x1d2   : > { %1933 = vst.msk [vmem:[%s3731_s5 + $0x88] sm:$0xff] %vm1915_vm3, %v1907_v10  ;;  %v1883_v16 = vadd.f32 %v3722_v15, %v1851_v13  ;;  %v1536_v31 = vmax.f32 %v3906_v17, %v1488_v30 }
 0x1d3   : > { %v1804_v60 = vpop.f32.mrf.mxu1  ;;  %v2602_v61 = vpop.f32.mrf.mxu0 }
 0x1d4   : > { %v1908_v29 = vmax.f32 %v1883_v16, 0.0  ;;  %v1852_v33 = vmax.f32 %v1536_v31, %v1804_v60 }
 0x1d5   : > { %v2697_v32 = vpop.f32.mrf.mxu1  ;;  %v1493_v53 = vpop.f32.mrf.mxu0 }
 0x1d6   : > { %1934 = vst.msk [vmem:[%s3731_s5 + $0x90] sm:$0xff] %vm1915_vm3, %v1908_v29  ;;  %v1884_v45 = vadd.f32 %v3722_v15, %v1852_v33  ;;  %v1537_v24 = vmax.f32 %v3907_v46, %v1493_v53 }
 0x1d7   : > { %v1809_v27 = vpop.f32.mrf.mxu1  ;;  %v2605_v58 = vpop.f32.mrf.mxu0 }
 0x1d8   : > { %v1909_v59 = vmax.f32 %v1884_v45, 0.0  ;;  %v1853_v3 = vmax.f32 %v1537_v24, %v1809_v27 }
 0x1d9   : > { %v2700_v8 = vpop.f32.mrf.mxu1  ;;  %v1498_v48 = vpop.f32.mrf.mxu0 }
 0x1da   : > { %1935 = vst.msk [vmem:[%s3731_s5 + $0x98] sm:$0xff] %vm1915_vm3, %v1909_v59  ;;  %v1885_v1 = vadd.f32 %v3722_v15, %v1853_v3  ;;  %v1538_v25 = vmax.f32 %v3908_v2, %v1498_v48 }
 0x1db   : > { %v1814_v26 = vpop.f32.mrf.mxu1  ;;  %v2608_v36 = vpop.f32.mrf.mxu0 }
 0x1dc   : > { %v1910_v5 = vmax.f32 %v1885_v1, 0.0  ;;  %v1854_v23 = vmax.f32 %v1538_v25, %v1814_v26 }
 0x1dd   : > { %v2703_v39 = vpop.f32.mrf.mxu1  ;;  %v1503_v34 = vpop.f32.mrf.mxu0 }
 0x1de   : > { %1936 = vst.msk [vmem:[%s3731_s5 + $0xa0] sm:$0xff] %vm1915_vm3, %v1910_v5  ;;  %v1886_v35 = vadd.f32 %v3722_v15, %v1854_v23  ;;  %v1539_v51 = vmax.f32 %v3909_v50, %v1503_v34 }
 0x1df   : > { %v1819_v38 = vpop.f32.mrf.mxu1  ;;  %v2611_v6 = vpop.f32.mrf.mxu0 }
 0x1e0   : > { %v1911_v44 = vmax.f32 %v1886_v35, 0.0  ;;  %v1855_v54 = vmax.f32 %v1539_v51, %v1819_v38 }
 0x1e1   : > { %v2706_v7 = vpop.f32.mrf.mxu1  ;;  %v1508_v49 = vpop.f32.mrf.mxu0 }
 0x1e2   : > { %1937 = vst.msk [vmem:[%s3731_s5 + $0xa8] sm:$0xff] %vm1915_vm3, %v1911_v44  ;;  %v1887_v52 = vadd.f32 %v3722_v15, %v1855_v54  ;;  %v1540_v43 = vmax.f32 %v3910_v28, %v1508_v49 }
 0x1e3   : > { %v1824_v37 = vpop.f32.mrf.mxu1  ;;  %v2614_v14 = vpop.f32.mrf.mxu0 }
 0x1e4   : > { %v1912_v21 = vmax.f32 %v1887_v52, 0.0  ;;  %v1856_v19 = vmax.f32 %v1540_v43, %v1824_v37 }
 0x1e5   : > { %v2709_v57 = vpop.f32.mrf.mxu1  ;;  %v1513_v47 = vpop.f32.mrf.mxu0 }
 0x1e6   : > { %1938 = vst.msk [vmem:[%s3731_s5 + $0xb0] sm:$0xff] %vm1915_vm3, %v1912_v21  ;;  %v1888_v55 = vadd.f32 %v3722_v15, %v1856_v19  ;;  %v1541_v0 = vmax.f32 %v3911_v62, %v1513_v47 }
 0x1e7   : > { %v1829_v11 = vpop.f32.mrf.mxu1  ;;  %v2617_v12 = vpop.f32.mrf.mxu0 }
 0x1e8   : > { %v1913_v9 = vmax.f32 %v1888_v55, 0.0  ;;  %v1857_v42 = vmax.f32 %v1541_v0, %v1829_v11 }
 0x1e9   : > { %v2712_v56 = vpop.f32.mrf.mxu1 }
 0x1ea   : > { %1939 = vst.msk [vmem:[%s3731_s5 + $0xb8] sm:$0xff] %vm1915_vm3, %v1913_v9  ;;  %v1889_v40 = vadd.f32 %v3722_v15, %v1857_v42 }
 0x1ec   : > { %v1914_v41 = vmax.f32 %v1889_v40, 0.0 }
 0x1ee   : > { %1940 = vst.msk [vmem:[%s3731_s5 + $0xc0] sm:$0xff] %vm1915_vm3, %v1914_v41 }
 0x1ef PF: > { %p10_p9 = scmp.ge.s32.totalorder %s2804_s16, 4   ;;  %s3912_s12 = smov %s2759_s13 }
 0x1f0   : > { %s3913_s13 = smov %s2813_s19  ;;  %s3914_s14 = smov %s2804_s16 }
 0x1f1   :  { %12 = sbr.rel (!%p10_p9) target bundleno = 2 (0x2), region = 108 }

// kernel: net_forward.3
= control target key start
LH: loop header
LB: loop body
LE: loop exit
PB: predicated region body
PF: predicated region fallthrough
CT: control target
= control target key end

     0   :  { %v5845_v0 = vmov 0.0   ;;  %vm177_vm0 = vcmask 1045504   ;;  %vm101_vm1 = vcmask 179200   ;;  %vm4183_vm2 = vmmov 0   ;;  %s5835_s1 = inlined_call_operand.vmem [shape: f32[150,16], index: 1, kind: input, shape index: {}]   ;;  %s5836_s0 = inlined_call_operand.vmem [shape: f32[4,200,150], index: 0, kind: input, shape index: {}]   ;;  %s5837_s3 = inlined_call_operand.vmem [shape: f32[400,120], index: 3, kind: input, shape index: {}]   ;;  %s5838_s2 = inlined_call_operand.vmem [shape: f32[1,16], index: 2, kind: input, shape index: {}]   ;;  %s5839_s5 = inlined_call_operand.vmem [shape: f32[120,84], index: 5, kind: input, shape index: {}]   ;;  %s5840_s7 = inlined_call_operand.vmem [shape: f32[84,10], index: 7, kind: input, shape index: {}]   ;;  %s5841_s4 = inlined_call_operand.vmem [shape: f32[1,120], index: 4, kind: input, shape index: {}]   ;;  %s5842_s6 = inlined_call_operand.vmem [shape: f32[1,84], index: 6, kind: input, shape index: {}]   ;;  %s5843_s8 = inlined_call_operand.vmem [shape: f32[1,10], index: 8, kind: input, shape index: {}]   ;;  %s5844_s9 = inlined_call_operand.vmem [shape: f32[8,10], index: 9, kind: output, shape index: {}]  }
   0x1   :  { %181 = vmatprep.subr.mxu0 %v5845_v0  ;;  %v4238_v1 = vld [vmem:[%s5835_s1 + $0x78] sm:$0xff]  ;;  %497 = vmatprep.subr.mxu1 %v5845_v0  ;;  %v4244_v2 = vld [vmem:[%s5835_s1 + $0x70] sm:$0xff]  ;;  %v4253_v3 = vld [vmem:[%s5835_s1 + $0x68] sm:$0xff]  ;;  %vm1501_vm3 = vcmask 130048   ;;  %vm3478_vm4 = vcmask 1043456   ;;  %vm3381_vm5 = vcmask 982016  }
   0x2   :  { %182 = vmatpush1.msra.mxu0 %v4238_v1  ;;  %498 = vmatpush1.msra.mxu1 %v4238_v1  ;;  %v4262_v4 = vld [vmem:[%s5835_s1 + $0x60] sm:$0xff]  ;;  %v4271_v5 = vld [vmem:[%s5835_s1 + $0x58] sm:$0xff]  ;;  %v4280_v6 = vld [vmem:[%s5835_s1 + $0x50] sm:$0xff]  ;;  %vm3474_vm6 = vcmask 687104   ;;  %vm3552_vm7 = vcmask 80896  }
   0x3   :  { %183 = vmatprep.subr.mxu0 %v5845_v0  ;;  %499 = vmatprep.subr.mxu1 %v5845_v0  ;;  %v4289_v7 = vld [vmem:[%s5835_s1 + $0x48] sm:$0xff]  ;;  %v4298_v8 = vld [vmem:[%s5835_s1 + $0x40] sm:$0xff]  ;;  %v4307_v9 = vld [vmem:[%s5835_s1 + $0x38] sm:$0xff] }
   0x4   :  { %184 = vmatpush1.msra.mxu0 %v4244_v2  ;;  %500 = vmatpush1.msra.mxu1 %v4244_v2  ;;  %v4316_v10 = vld [vmem:[%s5835_s1 + $0x30] sm:$0xff]  ;;  %v4325_v11 = vld [vmem:[%s5835_s1 + $0x28] sm:$0xff]  ;;  %v4334_v12 = vld [vmem:[%s5835_s1 + $0x20] sm:$0xff] }
   0x5   :  { %185 = vmatprep.subr.mxu0 %v5845_v0  ;;  %501 = vmatprep.subr.mxu1 %v5845_v0  ;;  %v4343_v13 = vld [vmem:[%s5835_s1 + $0x18] sm:$0xff]  ;;  %v4352_v14 = vld [vmem:[%s5835_s1 + $0x10] sm:$0xff]  ;;  %v4361_v15 = vld [vmem:[%s5835_s1 + $0x8] sm:$0xff] }
   0x6   :  { %186 = vmatpush1.msra.mxu0 %v4253_v3  ;;  %502 = vmatpush1.msra.mxu1 %v4253_v3  ;;  %v4370_v16 = vld [vmem:[%s5835_s1] sm:$0xff]  ;;  %v4379_v17 = vld [vmem:[%s5835_s1 + $0x90] sm:$0x3f]  ;;  %v4388_v18 = vld [vmem:[%s5835_s1 + $0x88] sm:$0xff] }
   0x7   :  { %187 = vmatprep.subr.mxu0 %v5845_v0  ;;  %503 = vmatprep.subr.mxu1 %v5845_v0  ;;  %v52_v19 = vld [vmem:[%s5836_s0 + $0x8] sm:$0xff]  ;;  %v4402_v20 = vld [vmem:[%s5835_s1 + $0x80] sm:$0xff]  ;;  %v3585_v22 = vld [vmem:[%s5836_s0 + $0x198] sm:$0xff] }
   0x8   :  { %188 = vmatpush1.msra.mxu0 %v4262_v4  ;;  %504 = vmatpush1.msra.mxu1 %v4262_v4  ;;  %v51_v21 = vld [vmem:[%s5836_s0] sm:$0xff]  ;;  %v3584_v23 = vld [vmem:[%s5836_s0 + $0x190] sm:$0xff]  ;;  %v54_v24 = vld [vmem:[%s5836_s0 + $0x18] sm:$0xff] }
   0x9   :  { %189 = vmatprep.subr.mxu0 %v5845_v0  ;;  %505 = vmatprep.subr.mxu1 %v5845_v0  ;;  %v53_v25 = vld [vmem:[%s5836_s0 + $0x10] sm:$0xff]  ;;  %v3587_v26 = vld [vmem:[%s5836_s0 + $0x1a8] sm:$0xff]  ;;  %v3586_v27 = vld [vmem:[%s5836_s0 + $0x1a0] sm:$0xff] }
   0xa   :  { %190 = vmatpush1.msra.mxu0 %v4271_v5  ;;  %506 = vmatpush1.msra.mxu1 %v4271_v5  ;;  %v56_v28 = vld [vmem:[%s5836_s0 + $0x28] sm:$0xff]  ;;  %v3589_v29 = vld [vmem:[%s5836_s0 + $0x1b8] sm:$0xff]  ;;  %v55_v30 = vld [vmem:[%s5836_s0 + $0x20] sm:$0xff] }
   0xb   :  { %191 = vmatprep.subr.mxu0 %v5845_v0  ;;  %507 = vmatprep.subr.mxu1 %v5845_v0  ;;  %v58_v31 = vld [vmem:[%s5836_s0 + $0x38] sm:$0xff]  ;;  %v3588_v32 = vld [vmem:[%s5836_s0 + $0x1b0] sm:$0xff]  ;;  %v3591_v33 = vld [vmem:[%s5836_s0 + $0x1c8] sm:$0xff] }
   0xc   :  { %192 = vmatpush1.msra.mxu0 %v4280_v6  ;;  %508 = vmatpush1.msra.mxu1 %v4280_v6  ;;  %v57_v34 = vld [vmem:[%s5836_s0 + $0x30] sm:$0xff]  ;;  %v60_v35 = vld [vmem:[%s5836_s0 + $0x48] sm:$0xff]  ;;  %v3590_v36 = vld [vmem:[%s5836_s0 + $0x1c0] sm:$0xff] }
   0xd   :  { %193 = vmatprep.subr.mxu0 %v5845_v0  ;;  %509 = vmatprep.subr.mxu1 %v5845_v0  ;;  %v3593_v37 = vld [vmem:[%s5836_s0 + $0x1d8] sm:$0xff]  ;;  %v59_v38 = vld [vmem:[%s5836_s0 + $0x40] sm:$0xff]  ;;  %v3592_v40 = vld [vmem:[%s5836_s0 + $0x1d0] sm:$0xff] }
   0xe   :  { %194 = vmatpush1.msra.mxu0 %v4289_v7  ;;  %510 = vmatpush1.msra.mxu1 %v4289_v7  ;;  %v62_v39 = vld [vmem:[%s5836_s0 + $0x58] sm:$0xff]  ;;  %v3595_v41 = vld [vmem:[%s5836_s0 + $0x1e8] sm:$0xff]  ;;  %v61_v42 = vld [vmem:[%s5836_s0 + $0x50] sm:$0xff] }
   0xf   :  { %195 = vmatprep.subr.mxu0 %v5845_v0  ;;  %511 = vmatprep.subr.mxu1 %v5845_v0  ;;  %v64_v43 = vld [vmem:[%s5836_s0 + $0x68] sm:$0xff]  ;;  %v3594_v44 = vld [vmem:[%s5836_s0 + $0x1e0] sm:$0xff]  ;;  %v3597_v45 = vld [vmem:[%s5836_s0 + $0x1f8] sm:$0xff] }
  0x10   :  { %196 = vmatpush1.msra.mxu0 %v4298_v8  ;;  %512 = vmatpush1.msra.mxu1 %v4298_v8  ;;  %v63_v46 = vld [vmem:[%s5836_s0 + $0x60] sm:$0xff]  ;;  %v66_v47 = vld [vmem:[%s5836_s0 + $0x78] sm:$0xff]  ;;  %v3596_v48 = vld [vmem:[%s5836_s0 + $0x1f0] sm:$0xff] }
  0x11   :  { %197 = vmatprep.subr.mxu0 %v5845_v0  ;;  %513 = vmatprep.subr.mxu1 %v5845_v0  ;;  %v3599_v49 = vld [vmem:[%s5836_s0 + $0x208] sm:$0xff]  ;;  %v65_v50 = vld [vmem:[%s5836_s0 + $0x70] sm:$0xff]  ;;  %v3598_v52 = vld [vmem:[%s5836_s0 + $0x200] sm:$0xff] }
  0x12   :  { %198 = vmatpush1.msra.mxu0 %v4307_v9  ;;  %514 = vmatpush1.msra.mxu1 %v4307_v9  ;;  %v68_v51 = vld [vmem:[%s5836_s0 + $0x88] sm:$0xff]  ;;  %v3601_v53 = vld [vmem:[%s5836_s0 + $0x218] sm:$0xff]  ;;  %v67_v54 = vld [vmem:[%s5836_s0 + $0x80] sm:$0xff] }
  0x13   :  { %199 = vmatprep.subr.mxu0 %v5845_v0  ;;  %515 = vmatprep.subr.mxu1 %v5845_v0  ;;  %v70_v55 = vld [vmem:[%s5836_s0 + $0x98] sm:$0xff]  ;;  %v3600_v56 = vld [vmem:[%s5836_s0 + $0x210] sm:$0xff]  ;;  %v3603_v57 = vld [vmem:[%s5836_s0 + $0x228] sm:$0xff] }
  0x14   :  { %200 = vmatpush1.msra.mxu0 %v4316_v10  ;;  %516 = vmatpush1.msra.mxu1 %v4316_v10  ;;  %v69_v58 = vld [vmem:[%s5836_s0 + $0x90] sm:$0xff]  ;;  %v72_v59 = vld [vmem:[%s5836_s0 + $0xa8] sm:$0xff]  ;;  %v3602_v60 = vld [vmem:[%s5836_s0 + $0x220] sm:$0xff] }
  0x15   :  { %201 = vmatprep.subr.mxu0 %v5845_v0  ;;  %517 = vmatprep.subr.mxu1 %v5845_v0  ;;  %v3605_v61 = vld [vmem:[%s5836_s0 + $0x238] sm:$0xff]  ;;  %v71_v62 = vld [vmem:[%s5836_s0 + $0xa0] sm:$0xff] }
  0x16   :  { %202 = vmatpush1.msra.mxu0 %v4325_v11  ;;  %518 = vmatpush1.msra.mxu1 %v4325_v11  ;;  %v74_v63 = vld [vmem:[%s5836_s0 + $0xb8] sm:$0xff] }
  0x17   :  { %203 = vmatprep.subr.mxu0 %v5845_v0  ;;  %519 = vmatprep.subr.mxu1 %v5845_v0 }
  0x18   :  { %204 = vmatpush1.msra.mxu0 %v4334_v12  ;;  %520 = vmatpush1.msra.mxu1 %v4334_v12 }
  0x19   :  { %205 = vmatprep.subr.mxu0 %v5845_v0  ;;  %521 = vmatprep.subr.mxu1 %v5845_v0 }
  0x1a   :  { %206 = vmatpush1.msra.mxu0 %v4343_v13  ;;  %522 = vmatpush1.msra.mxu1 %v4343_v13 }
  0x1b   :  { %207 = vmatprep.subr.mxu0 %v5845_v0  ;;  %523 = vmatprep.subr.mxu1 %v5845_v0 }
  0x1c   :  { %208 = vmatpush1.msra.mxu0 %v4352_v14  ;;  %524 = vmatpush1.msra.mxu1 %v4352_v14 }
  0x1d   :  { %209 = vmatprep.subr.mxu0 %v5845_v0  ;;  %525 = vmatprep.subr.mxu1 %v5845_v0 }
  0x1e   :  { %210 = vmatpush1.msra.mxu0 %v4361_v15  ;;  %526 = vmatpush1.msra.mxu1 %v4361_v15 }
  0x1f   :  { %211 = vmatprep.subr.mxu0 %v5845_v0  ;;  %527 = vmatprep.subr.mxu1 %v5845_v0 }
  0x20   :  { %212 = vmatpush1.msra.mxu0 %v4370_v16  ;;  %528 = vmatpush1.msra.mxu1 %v4370_v16 }
  0x21   :  { %239 = vmatprep.subr.mxu0 %v5845_v0  ;;  %555 = vmatprep.subr.mxu1 %v5845_v0 }
  0x22   :  { %3558 = vmatpush2.msk.msra.mxu0 %vm177_vm0, %v4379_v17  ;;  %3634 = vmatpush2.msk.msra.mxu1 %vm177_vm0, %v4379_v17 }
  0x23   :  { %241 = vmatprep.subr.mxu0 %v5845_v0  ;;  %557 = vmatprep.subr.mxu1 %v5845_v0 }
  0x24   :  { %242 = vmatpush2.msra.mxu0 %v4388_v18  ;;  %558 = vmatpush2.msra.mxu1 %v4388_v18 }
  0x25   :  { %243 = vmatprep.subr.mxu0 %v5845_v0  ;;  %3559 = vmatprep.mubr.msk.f32.mxu0 %vm101_vm1, %v52_v19  ;;  %v80_v19 = vld [vmem:[%s5836_s0 + $0xe8] sm:$0xff] }
  0x26   :  { %244 = vmatpush2.msra.mxu0 %v4402_v20  ;;  %559 = vmatprep.subr.mxu1 %v5845_v0 }
  0x27   :  { %246 = vmatmul.mubr.f32.vlgmr.msra.gmra.mxu0 %v51_v21  ;;  %560 = vmatpush2.msra.mxu1 %v4402_v20  ;;  %v3610_v21 = vld [vmem:[%s5836_s0 + $0x260] sm:$0xff] }
  0x28   :  { %3635 = vmatprep.mubr.msk.f32.mxu1 %vm101_vm1, %v3585_v22  ;;  %838 = vmatprep.subr.mxu0 %v5845_v0  ;;  %v79_v22 = vld [vmem:[%s5836_s0 + $0xe0] sm:$0xff] }
  0x29   :  { %562 = vmatmul.mubr.f32.vlgmr.msra.gmra.mxu1 %v3584_v23  ;;  %839 = vmatpush1.msra.mxu0 %v4238_v1  ;;  %v82_v23 = vld [vmem:[%s5836_s0 + $0xf8] sm:$0xff] }
  0x2a   :  { %1179 = vmatprep.subr.mxu1 %v5845_v0  ;;  %3560 = vmatprep.mubr.msk.f32.mxu0 %vm101_vm1, %v54_v24  ;;  %v3612_v24 = vld [vmem:[%s5836_s0 + $0x270] sm:$0xff] }
  0x2b   :  { %1180 = vmatpush1.msra.mxu1 %v4238_v1  ;;  %251 = vmatmul.mubr.f32.gmra.mxu0 %v53_v25  ;;  %v3604_v1 = vld [vmem:[%s5836_s0 + $0x230] sm:$0xff] }
  0x2c   :  { %3636 = vmatprep.mubr.msk.f32.mxu1 %vm101_vm1, %v3587_v26  ;;  %840 = vmatprep.subr.mxu0 %v5845_v0  ;;  %v81_v25 = vld [vmem:[%s5836_s0 + $0xf0] sm:$0xff]  ;;  %v84_v26 = vld [vmem:[%s5836_s0 + $0x108] sm:$0xff] }
  0x2d   :  { %567 = vmatmul.mubr.f32.gmra.mxu1 %v3586_v27  ;;  %3561 = vmatprep.mubr.msk.f32.mxu0 %vm101_vm1, %v56_v28  ;;  %v3614_v27 = vld [vmem:[%s5836_s0 + $0x280] sm:$0xff] }
  0x2e   :  { %841 = vmatpush1.msra.mxu0 %v4244_v2  ;;  %3637 = vmatprep.mubr.msk.f32.mxu1 %vm101_vm1, %v3589_v29  ;;  %v83_v28 = vld [vmem:[%s5836_s0 + $0x100] sm:$0xff]  ;;  %v86_v29 = vld [vmem:[%s5836_s0 + $0x118] sm:$0xff] }
  0x2f   :  { %256 = vmatmul.mubr.f32.gmra.mxu0 %v55_v30  ;;  %1181 = vmatprep.subr.mxu1 %v5845_v0  ;;  %v3616_v30 = vld [vmem:[%s5836_s0 + $0x290] sm:$0xff] }
  0x30   :  { %1182 = vmatpush1.msra.mxu1 %v4244_v2  ;;  %3562 = vmatprep.mubr.msk.f32.mxu0 %vm101_vm1, %v58_v31  ;;  %v3607_v2 = vld [vmem:[%s5836_s0 + $0x248] sm:$0xff]  ;;  %v85_v31 = vld [vmem:[%s5836_s0 + $0x110] sm:$0xff] }
  0x31   :  { %572 = vmatmul.mubr.f32.gmra.mxu1 %v3588_v32  ;;  %842 = vmatprep.subr.mxu0 %v5845_v0  ;;  %v88_v32 = vld [vmem:[%s5836_s0 + $0x128] sm:$0xff] }
  0x32   :  { %3638 = vmatprep.mubr.msk.f32.mxu1 %vm101_vm1, %v3591_v33  ;;  %843 = vmatpush1.msra.mxu0 %v4253_v3  ;;  %v3618_v33 = vld [vmem:[%s5836_s0 + $0x2a0] sm:$0xff] }
  0x33   :  { %261 = vmatmul.mubr.f32.gmra.mxu0 %v57_v34  ;;  %1183 = vmatprep.subr.mxu1 %v5845_v0  ;;  %v87_v34 = vld [vmem:[%s5836_s0 + $0x120] sm:$0xff] }
  0x34   :  { %1184 = vmatpush1.msra.mxu1 %v4253_v3  ;;  %3563 = vmatprep.mubr.msk.f32.mxu0 %vm101_vm1, %v60_v35  ;;  %v73_v3 = vld [vmem:[%s5836_s0 + $0xb0] sm:$0xff]  ;;  %v90_v35 = vld [vmem:[%s5836_s0 + $0x138] sm:$0xff] }
  0x35   :  { %577 = vmatmul.mubr.f32.gmra.mxu1 %v3590_v36  ;;  %844 = vmatprep.subr.mxu0 %v5845_v0  ;;  %v3620_v36 = vld [vmem:[%s5836_s0 + $0x2b0] sm:$0xff] }
  0x36   :  { %3639 = vmatprep.mubr.msk.f32.mxu1 %vm101_vm1, %v3593_v37  ;;  %845 = vmatpush1.msra.mxu0 %v4262_v4  ;;  %v89_v37 = vld [vmem:[%s5836_s0 + $0x130] sm:$0xff] }
  0x37   :  { %266 = vmatmul.mubr.f32.gmra.mxu0 %v59_v38  ;;  %1185 = vmatprep.subr.mxu1 %v5845_v0  ;;  %v92_v38 = vld [vmem:[%s5836_s0 + $0x148] sm:$0xff] }
  0x38   :  { %3564 = vmatprep.mubr.msk.f32.mxu0 %vm101_vm1, %v62_v39  ;;  %1186 = vmatpush1.msra.mxu1 %v4262_v4  ;;  %v76_v4 = vld [vmem:[%s5836_s0 + $0xc8] sm:$0xff]  ;;  %v3622_v39 = vld [vmem:[%s5836_s0 + $0x2c0] sm:$0xff] }
  0x39   :  { %582 = vmatmul.mubr.f32.gmra.mxu1 %v3592_v40  ;;  %846 = vmatprep.subr.mxu0 %v5845_v0  ;;  %v91_v40 = vld [vmem:[%s5836_s0 + $0x140] sm:$0xff] }
  0x3a   :  { %3640 = vmatprep.mubr.msk.f32.mxu1 %vm101_vm1, %v3595_v41  ;;  %847 = vmatpush1.msra.mxu0 %v4271_v5  ;;  %v94_v41 = vld [vmem:[%s5836_s0 + $0x158] sm:$0xff] }
  0x3b   :  { %271 = vmatmul.mubr.f32.gmra.mxu0 %v61_v42  ;;  %1187 = vmatprep.subr.mxu1 %v5845_v0  ;;  %v3624_v42 = vld [vmem:[%s5836_s0 + $0x2d0] sm:$0xff] }
  0x3c   :  { %3565 = vmatprep.mubr.msk.f32.mxu0 %vm101_vm1, %v64_v43  ;;  %1188 = vmatpush1.msra.mxu1 %v4271_v5  ;;  %v3606_v5 = vld [vmem:[%s5836_s0 + $0x240] sm:$0xff]  ;;  %v93_v43 = vld [vmem:[%s5836_s0 + $0x150] sm:$0xff] }
  0x3d   :  { %587 = vmatmul.mubr.f32.gmra.mxu1 %v3594_v44  ;;  %848 = vmatprep.subr.mxu0 %v5845_v0  ;;  %v96_v44 = vld [vmem:[%s5836_s0 + $0x168] sm:$0xff] }
  0x3e   :  { %3641 = vmatprep.mubr.msk.f32.mxu1 %vm101_vm1, %v3597_v45  ;;  %849 = vmatpush1.msra.mxu0 %v4280_v6  ;;  %v3626_v45 = vld [vmem:[%s5836_s0 + $0x2e0] sm:$0xff] }
  0x3f   :  { %276 = vmatmul.mubr.f32.gmra.mxu0 %v63_v46  ;;  %1189 = vmatprep.subr.mxu1 %v5845_v0  ;;  %v3629_v46 = vld [vmem:[%s5836_s0 + $0x2f8] sm:$0xff] }
  0x40   :  { %3566 = vmatprep.mubr.msk.f32.mxu0 %vm101_vm1, %v66_v47  ;;  %1190 = vmatpush1.msra.mxu1 %v4280_v6  ;;  %v3609_v6 = vld [vmem:[%s5836_s0 + $0x258] sm:$0xff]  ;;  %v95_v47 = vld [vmem:[%s5836_s0 + $0x160] sm:$0xff] }
  0x41   :  { %592 = vmatmul.mubr.f32.gmra.mxu1 %v3596_v48  ;;  %850 = vmatprep.subr.mxu0 %v5845_v0  ;;  %v98_v48 = vld [vmem:[%s5836_s0 + $0x178] sm:$0xff] }
  0x42   :  { %3642 = vmatprep.mubr.msk.f32.mxu1 %vm101_vm1, %v3599_v49  ;;  %851 = vmatpush1.msra.mxu0 %v4289_v7  ;;  %v3628_v49 = vld [vmem:[%s5836_s0 + $0x2f0] sm:$0xff] }
  0x43   :  { %281 = vmatmul.mubr.f32.gmra.mxu0 %v65_v50  ;;  %1191 = vmatprep.subr.mxu1 %v5845_v0  ;;  %v3631_v50 = vld [vmem:[%s5836_s0 + $0x308] sm:$0xff] }
  0x44   :  { %3567 = vmatprep.mubr.msk.f32.mxu0 %vm101_vm1, %v68_v51  ;;  %1192 = vmatpush1.msra.mxu1 %v4289_v7  ;;  %v75_v7 = vld [vmem:[%s5836_s0 + $0xc0] sm:$0xff]  ;;  %v97_v51 = vld [vmem:[%s5836_s0 + $0x170] sm:$0xff] }
  0x45   :  { %597 = vmatmul.mubr.f32.gmra.mxu1 %v3598_v52  ;;  %852 = vmatprep.subr.mxu0 %v5845_v0  ;;  %v100_v52 = vld [vmem:[%s5836_s0 + $0x188] sm:$0xff] }
  0x46   :  { %3643 = vmatprep.mubr.msk.f32.mxu1 %vm101_vm1, %v3601_v53  ;;  %853 = vmatpush1.msra.mxu0 %v4298_v8  ;;  %v3630_v53 = vld [vmem:[%s5836_s0 + $0x300] sm:$0xff] }
  0x47   :  { %286 = vmatmul.mubr.f32.gmra.mxu0 %v67_v54  ;;  %1193 = vmatprep.subr.mxu1 %v5845_v0  ;;  %v3633_v54 = vld [vmem:[%s5836_s0 + $0x318] sm:$0xff] }
  0x48   :  { %3568 = vmatprep.mubr.msk.f32.mxu0 %vm101_vm1, %v70_v55  ;;  %1194 = vmatpush1.msra.mxu1 %v4298_v8  ;;  %v78_v8 = vld [vmem:[%s5836_s0 + $0xd8] sm:$0xff]  ;;  %v99_v55 = vld [vmem:[%s5836_s0 + $0x180] sm:$0xff] }
  0x49   :  { %602 = vmatmul.mubr.f32.gmra.mxu1 %v3600_v56  ;;  %854 = vmatprep.subr.mxu0 %v5845_v0  ;;  %v3661_v56 = vld [vmem:[%s5836_s0 + $0x328] sm:$0xff] }
  0x4a   :  { %3644 = vmatprep.mubr.msk.f32.mxu1 %vm101_vm1, %v3603_v57  ;;  %855 = vmatpush1.msra.mxu0 %v4307_v9  ;;  %v3632_v57 = vld [vmem:[%s5836_s0 + $0x310] sm:$0xff] }
  0x4b   :  { %291 = vmatmul.mubr.f32.gmra.mxu0 %v69_v58  ;;  %1195 = vmatprep.subr.mxu1 %v5845_v0  ;;  %v3737_v58 = vld [vmem:[%s5836_s0 + $0x4b8] sm:$0xff] }
  0x4c   :  { %3569 = vmatprep.mubr.msk.f32.mxu0 %vm101_vm1, %v72_v59  ;;  %1196 = vmatpush1.msra.mxu1 %v4307_v9  ;;  %v3608_v9 = vld [vmem:[%s5836_s0 + $0x250] sm:$0xff]  ;;  %v3660_v59 = vld [vmem:[%s5836_s0 + $0x320] sm:$0xff] }
  0x4d   :  { %607 = vmatmul.mubr.f32.gmra.mxu1 %v3602_v60  ;;  %856 = vmatprep.subr.mxu0 %v5845_v0  ;;  %v3663_v60 = vld [vmem:[%s5836_s0 + $0x338] sm:$0xff] }
  0x4e   :  { %3645 = vmatprep.mubr.msk.f32.mxu1 %vm101_vm1, %v3605_v61  ;;  %857 = vmatpush1.msra.mxu0 %v4316_v10  ;;  %v3736_v61 = vld [vmem:[%s5836_s0 + $0x4b0] sm:$0xff] }
  0x4f   :  { %296 = vmatmul.mubr.f32.gmra.mxu0 %v71_v62  ;;  %1197 = vmatprep.subr.mxu1 %v5845_v0  ;;  %v3739_v62 = vld [vmem:[%s5836_s0 + $0x4c8] sm:$0xff] }
  0x50   :  { %3570 = vmatprep.mubr.msk.f32.mxu0 %vm101_vm1, %v74_v63  ;;  %1198 = vmatpush1.msra.mxu1 %v4316_v10  ;;  %v3611_v10 = vld [vmem:[%s5836_s0 + $0x268] sm:$0xff]  ;;  %v3662_v63 = vld [vmem:[%s5836_s0 + $0x330] sm:$0xff] }
  0x51   :  { %612 = vmatmul.mubr.f32.gmra.mxu1 %v3604_v1  ;;  %858 = vmatprep.subr.mxu0 %v5845_v0  ;;  %v3665_v1 = vld [vmem:[%s5836_s0 + $0x348] sm:$0xff] }
  0x52   :  { %3646 = vmatprep.mubr.msk.f32.mxu1 %vm101_vm1, %v3607_v2  ;;  %859 = vmatpush1.msra.mxu0 %v4325_v11  ;;  %v3738_v2 = vld [vmem:[%s5836_s0 + $0x4c0] sm:$0xff] }
  0x53   :  { %301 = vmatmul.mubr.f32.gmra.mxu0 %v73_v3  ;;  %1199 = vmatprep.subr.mxu1 %v5845_v0  ;;  %v3741_v3 = vld [vmem:[%s5836_s0 + $0x4d8] sm:$0xff] }
  0x54   :  { %3571 = vmatprep.mubr.msk.f32.mxu0 %vm101_vm1, %v76_v4  ;;  %1200 = vmatpush1.msra.mxu1 %v4325_v11  ;;  %v77_v11 = vld [vmem:[%s5836_s0 + $0xd0] sm:$0xff]  ;;  %v3664_v4 = vld [vmem:[%s5836_s0 + $0x340] sm:$0xff] }
  0x55   :  { %617 = vmatmul.mubr.f32.gmra.mxu1 %v3606_v5  ;;  %860 = vmatprep.subr.mxu0 %v5845_v0  ;;  %v3667_v5 = vld [vmem:[%s5836_s0 + $0x358] sm:$0xff] }
  0x56   :  { %3647 = vmatprep.mubr.msk.f32.mxu1 %vm101_vm1, %v3609_v6  ;;  %861 = vmatpush1.msra.mxu0 %v4334_v12  ;;  %v3740_v6 = vld [vmem:[%s5836_s0 + $0x4d0] sm:$0xff] }
  0x57   :  { %306 = vmatmul.mubr.f32.gmra.mxu0 %v75_v7  ;;  %1201 = vmatprep.subr.mxu1 %v5845_v0  ;;  %v3743_v7 = vld [vmem:[%s5836_s0 + $0x4e8] sm:$0xff] }
  0x58   :  { %3572 = vmatprep.mubr.msk.f32.mxu0 %vm101_vm1, %v78_v8  ;;  %1202 = vmatpush1.msra.mxu1 %v4334_v12  ;;  %v3613_v12 = vld [vmem:[%s5836_s0 + $0x278] sm:$0xff]  ;;  %v3666_v8 = vld [vmem:[%s5836_s0 + $0x350] sm:$0xff] }
  0x59   :  { %622 = vmatmul.mubr.f32.gmra.mxu1 %v3608_v9  ;;  %862 = vmatprep.subr.mxu0 %v5845_v0  ;;  %v3669_v9 = vld [vmem:[%s5836_s0 + $0x368] sm:$0xff] }
  0x5a   :  { %3648 = vmatprep.mubr.msk.f32.mxu1 %vm101_vm1, %v3611_v10  ;;  %863 = vmatpush1.msra.mxu0 %v4343_v13  ;;  %v3742_v10 = vld [vmem:[%s5836_s0 + $0x4e0] sm:$0xff] }
  0x5b   :  { %311 = vmatmul.mubr.f32.gmra.mxu0 %v77_v11  ;;  %1203 = vmatprep.subr.mxu1 %v5845_v0  ;;  %v3745_v11 = vld [vmem:[%s5836_s0 + $0x4f8] sm:$0xff] }
  0x5c   :  { %3573 = vmatprep.mubr.msk.f32.mxu0 %vm101_vm1, %v80_v19  ;;  %1204 = vmatpush1.msra.mxu1 %v4343_v13  ;;  %v3615_v13 = vld [vmem:[%s5836_s0 + $0x288] sm:$0xff]  ;;  %v3668_v19 = vld [vmem:[%s5836_s0 + $0x360] sm:$0xff] }
  0x5d   :  { %627 = vmatmul.mubr.f32.gmra.mxu1 %v3610_v21  ;;  %864 = vmatprep.subr.mxu0 %v5845_v0  ;;  %v3671_v21 = vld [vmem:[%s5836_s0 + $0x378] sm:$0xff] }
  0x5e   :  { %3649 = vmatprep.mubr.msk.f32.mxu1 %vm101_vm1, %v3613_v12  ;;  %865 = vmatpush1.msra.mxu0 %v4352_v14  ;;  %v3744_v12 = vld [vmem:[%s5836_s0 + $0x4f0] sm:$0xff] }
  0x5f   :  { %316 = vmatmul.mubr.f32.gmra.mxu0 %v79_v22  ;;  %1205 = vmatprep.subr.mxu1 %v5845_v0  ;;  %v3747_v22 = vld [vmem:[%s5836_s0 + $0x508] sm:$0xff] }
  0x60   :  { %3574 = vmatprep.mubr.msk.f32.mxu0 %vm101_vm1, %v82_v23  ;;  %1206 = vmatpush1.msra.mxu1 %v4352_v14  ;;  %v3617_v14 = vld [vmem:[%s5836_s0 + $0x298] sm:$0xff]  ;;  %v3670_v23 = vld [vmem:[%s5836_s0 + $0x370] sm:$0xff] }
  0x61   :  { %632 = vmatmul.mubr.f32.gmra.mxu1 %v3612_v24  ;;  %866 = vmatprep.subr.mxu0 %v5845_v0  ;;  %v3673_v24 = vld [vmem:[%s5836_s0 + $0x388] sm:$0xff] }
  0x62   :  { %3650 = vmatprep.mubr.msk.f32.mxu1 %vm101_vm1, %v3615_v13  ;;  %867 = vmatpush1.msra.mxu0 %v4361_v15  ;;  %v3746_v13 = vld [vmem:[%s5836_s0 + $0x500] sm:$0xff] }
  0x63   :  { %321 = vmatmul.mubr.f32.gmra.mxu0 %v81_v25  ;;  %1207 = vmatprep.subr.mxu1 %v5845_v0  ;;  %v3749_v25 = vld [vmem:[%s5836_s0 + $0x518] sm:$0xff] }
  0x64   :  { %3575 = vmatprep.mubr.msk.f32.mxu0 %vm101_vm1, %v84_v26  ;;  %1208 = vmatpush1.msra.mxu1 %v4361_v15  ;;  %v3619_v15 = vld [vmem:[%s5836_s0 + $0x2a8] sm:$0xff]  ;;  %v3672_v26 = vld [vmem:[%s5836_s0 + $0x380] sm:$0xff] }
  0x65   :  { %637 = vmatmul.mubr.f32.gmra.mxu1 %v3614_v27  ;;  %868 = vmatprep.subr.mxu0 %v5845_v0  ;;  %v3675_v27 = vld [vmem:[%s5836_s0 + $0x398] sm:$0xff] }
  0x66   :  { %3651 = vmatprep.mubr.msk.f32.mxu1 %vm101_vm1, %v3617_v14  ;;  %869 = vmatpush1.msra.mxu0 %v4370_v16  ;;  %v3748_v14 = vld [vmem:[%s5836_s0 + $0x510] sm:$0xff] }
  0x67   :  { %326 = vmatmul.mubr.f32.gmra.mxu0 %v83_v28  ;;  %1209 = vmatprep.subr.mxu1 %v5845_v0  ;;  %v3751_v28 = vld [vmem:[%s5836_s0 + $0x528] sm:$0xff] }
  0x68   :  { %3576 = vmatprep.mubr.msk.f32.mxu0 %vm101_vm1, %v86_v29  ;;  %1210 = vmatpush1.msra.mxu1 %v4370_v16  ;;  %v3621_v16 = vld [vmem:[%s5836_s0 + $0x2b8] sm:$0xff] }
  0x69   :  { %642 = vmatmul.mubr.f32.gmra.mxu1 %v3616_v30  ;;  %896 = vmatprep.subr.mxu0 %v5845_v0  ;;  %v1454_v29 = vld [vmem:[%s5837_s3 + $0x18] sm:$0xff]  ;;  %v1452_v30 = vld [vmem:[%s5837_s3 + $0x8] sm:$0xff] }
  0x6a   :  { %3652 = vmatprep.mubr.msk.f32.mxu1 %vm101_vm1, %v3619_v15  ;;  %3710 = vmatpush2.msk.msra.mxu0 %vm177_vm0, %v4379_v17  ;;  %v3674_v15 = vld [vmem:[%s5836_s0 + $0x390] sm:$0xff] }
  0x6b   :  { %331 = vmatmul.mubr.f32.gmra.mxu0 %v85_v31  ;;  %1237 = vmatprep.subr.mxu1 %v5845_v0  ;;  %v3677_v31 = vld [vmem:[%s5836_s0 + $0x3a8] sm:$0xff] }
  0x6c   :  { %3577 = vmatprep.mubr.msk.f32.mxu0 %vm101_vm1, %v88_v32  ;;  %3786 = vmatpush2.msk.msra.mxu1 %vm177_vm0, %v4379_v17  ;;  %v3623_v17 = vld [vmem:[%s5836_s0 + $0x2c8] sm:$0xff]  ;;  %v3750_v32 = vld [vmem:[%s5836_s0 + $0x520] sm:$0xff] }
  0x6d   :  { %647 = vmatmul.mubr.f32.gmra.mxu1 %v3618_v33  ;;  %898 = vmatprep.subr.mxu0 %v5845_v0  ;;  %v3753_v33 = vld [vmem:[%s5836_s0 + $0x538] sm:$0xff] }
  0x6e   :  { %3653 = vmatprep.mubr.msk.f32.mxu1 %vm101_vm1, %v3621_v16  ;;  %899 = vmatpush2.msra.mxu0 %v4388_v18  ;;  %v3676_v16 = vld [vmem:[%s5836_s0 + $0x3a0] sm:$0xff] }
  0x6f   :  { %336 = vmatmul.mubr.f32.gmra.mxu0 %v87_v34  ;;  %1239 = vmatprep.subr.mxu1 %v5845_v0  ;;  %v3679_v34 = vld [vmem:[%s5836_s0 + $0x3b8] sm:$0xff] }
  0x70   :  { %3578 = vmatprep.mubr.msk.f32.mxu0 %vm101_vm1, %v90_v35  ;;  %1240 = vmatpush2.msra.mxu1 %v4388_v18  ;;  %v3625_v18 = vld [vmem:[%s5836_s0 + $0x2d8] sm:$0xff]  ;;  %v3752_v35 = vld [vmem:[%s5836_s0 + $0x530] sm:$0xff] }
  0x71   :  { %652 = vmatmul.mubr.f32.gmra.mxu1 %v3620_v36  ;;  %900 = vmatprep.subr.mxu0 %v5845_v0  ;;  %v3755_v36 = vld [vmem:[%s5836_s0 + $0x548] sm:$0xff] }
  0x72   :  { %3654 = vmatprep.mubr.msk.f32.mxu1 %vm101_vm1, %v3623_v17  ;;  %901 = vmatpush2.msra.mxu0 %v4402_v20  ;;  %v3678_v17 = vld [vmem:[%s5836_s0 + $0x3b0] sm:$0xff] }
  0x73   :  { %341 = vmatmul.mubr.f32.gmra.mxu0 %v89_v37  ;;  %1241 = vmatprep.subr.mxu1 %v5845_v0  ;;  %v3681_v37 = vld [vmem:[%s5836_s0 + $0x3c8] sm:$0xff] }
  0x74   :  { %3579 = vmatprep.mubr.msk.f32.mxu0 %vm101_vm1, %v92_v38  ;;  %1242 = vmatpush2.msra.mxu1 %v4402_v20  ;;  %v3627_v20 = vld [vmem:[%s5836_s0 + $0x2e8] sm:$0xff]  ;;  %v3754_v38 = vld [vmem:[%s5836_s0 + $0x540] sm:$0xff] }
  0x75   :  { %657 = vmatmul.mubr.f32.gmra.mxu1 %v3622_v39  ;;  %3947 = vmatprep.subr.mxu0 %v5845_v0  ;;  %v3757_v39 = vld [vmem:[%s5836_s0 + $0x558] sm:$0xff] }
  0x76   :  { %3655 = vmatprep.mubr.msk.f32.mxu1 %vm101_vm1, %v3625_v18  ;;  %3954 = vmatprep.subr.mxu1 %v5845_v0  ;;  %v3680_v18 = vld [vmem:[%s5836_s0 + $0x3c0] sm:$0xff] }
  0x77   :  { %346 = vmatmul.mubr.f32.gmra.mxu0 %v91_v40  ;;  %v3683_v40 = vld [vmem:[%s5836_s0 + $0x3d8] sm:$0xff] }
  0x78   :  { %3580 = vmatprep.mubr.msk.f32.mxu0 %vm101_vm1, %v94_v41  ;;  %v3756_v41 = vld [vmem:[%s5836_s0 + $0x550] sm:$0xff] }
  0x79   :  { %662 = vmatmul.mubr.f32.gmra.mxu1 %v3624_v42  ;;  %v3759_v42 = vld [vmem:[%s5836_s0 + $0x568] sm:$0xff] }
  0x7a   :  { %3656 = vmatprep.mubr.msk.f32.mxu1 %vm101_vm1, %v3627_v20  ;;  %v3682_v20 = vld [vmem:[%s5836_s0 + $0x3d0] sm:$0xff] }
  0x7b   :  { %351 = vmatmul.mubr.f32.gmra.mxu0 %v93_v43  ;;  %v3685_v43 = vld [vmem:[%s5836_s0 + $0x3e8] sm:$0xff] }
  0x7c   :  { %3581 = vmatprep.mubr.msk.f32.mxu0 %vm101_vm1, %v96_v44  ;;  %v3758_v44 = vld [vmem:[%s5836_s0 + $0x560] sm:$0xff] }
  0x7d   :  { %667 = vmatmul.mubr.f32.gmra.mxu1 %v3626_v45  ;;  %v3761_v45 = vld [vmem:[%s5836_s0 + $0x578] sm:$0xff] }
  0x7e   :  { %3657 = vmatprep.mubr.msk.f32.mxu1 %vm101_vm1, %v3629_v46  ;;  %v3684_v46 = vld [vmem:[%s5836_s0 + $0x3e0] sm:$0xff] }
  0x7f   :  { %356 = vmatmul.mubr.f32.gmra.mxu0 %v95_v47  ;;  %v3687_v47 = vld [vmem:[%s5836_s0 + $0x3f8] sm:$0xff] }
  0x80   :  { %3582 = vmatprep.mubr.msk.f32.mxu0 %vm101_vm1, %v98_v48  ;;  %v3760_v48 = vld [vmem:[%s5836_s0 + $0x570] sm:$0xff] }
  0x81   :  { %672 = vmatmul.mubr.f32.gmra.mxu1 %v3628_v49  ;;  %v3763_v49 = vld [vmem:[%s5836_s0 + $0x588] sm:$0xff] }
  0x82   :  { %3658 = vmatprep.mubr.msk.f32.mxu1 %vm101_vm1, %v3631_v50  ;;  %v3686_v50 = vld [vmem:[%s5836_s0 + $0x3f0] sm:$0xff] }
  0x83   :  { %361 = vmatmul.mubr.f32.gmra.mxu0 %v97_v51  ;;  %v3689_v51 = vld [vmem:[%s5836_s0 + $0x408] sm:$0xff] }
  0x84   :  { %3583 = vmatprep.mubr.msk.f32.mxu0 %vm101_vm1, %v100_v52  ;;  %v3762_v52 = vld [vmem:[%s5836_s0 + $0x580] sm:$0xff] }
  0x85   :  { %677 = vmatmul.mubr.f32.gmra.mxu1 %v3630_v53  ;;  %v3765_v53 = vld [vmem:[%s5836_s0 + $0x598] sm:$0xff] }
  0x86   :  { %3659 = vmatprep.mubr.msk.f32.mxu1 %vm101_vm1, %v3633_v54  ;;  %v3688_v54 = vld [vmem:[%s5836_s0 + $0x400] sm:$0xff] }
  0x87   :  { %366 = vmatmul.mubr.f32.gmra.mxu0 %v99_v55  ;;  %v3691_v55 = vld [vmem:[%s5836_s0 + $0x418] sm:$0xff] }
  0x88   :  { %3711 = vmatprep.mubr.msk.f32.mxu0 %vm101_vm1, %v3661_v56  ;;  %v3764_v56 = vld [vmem:[%s5836_s0 + $0x590] sm:$0xff] }
  0x89   :  { %682 = vmatmul.mubr.f32.gmra.mxu1 %v3632_v57  ;;  %v3767_v57 = vld [vmem:[%s5836_s0 + $0x5a8] sm:$0xff] }
  0x8a   :  { %3787 = vmatprep.mubr.msk.f32.mxu1 %vm101_vm1, %v3737_v58  ;;  %v3690_v58 = vld [vmem:[%s5836_s0 + $0x410] sm:$0xff] }
  0x8b   :  { %903 = vmatmul.mubr.f32.vlgmr.msra.gmra.mxu0 %v3660_v59  ;;  %v3693_v59 = vld [vmem:[%s5836_s0 + $0x428] sm:$0xff] }
  0x8c   :  { %3712 = vmatprep.mubr.msk.f32.mxu0 %vm101_vm1, %v3663_v60  ;;  %3948 = vmatpush3.msra.mxu0 %v1454_v29  ;;  %v3766_v60 = vld [vmem:[%s5836_s0 + $0x5a0] sm:$0xff]  ;;  %v3781_v29 = vld [vmem:[%s5836_s0 + $0x618] sm:$0xff] }
  0x8d   :  { %1244 = vmatmul.mubr.f32.vlgmr.msra.gmra.mxu1 %v3736_v61  ;;  %3949 = vmatprep.subr.mxu0 %v5845_v0  ;;  %v3769_v61 = vld [vmem:[%s5836_s0 + $0x5b8] sm:$0xff] }
  0x8e   :  { %3788 = vmatprep.mubr.msk.f32.mxu1 %vm101_vm1, %v3739_v62  ;;  %3955 = vmatpush3.msra.mxu1 %v1452_v30  ;;  %v3692_v62 = vld [vmem:[%s5836_s0 + $0x420] sm:$0xff] }
  0x8f   :  { %908 = vmatmul.mubr.f32.gmra.mxu0 %v3662_v63  ;;  %3956 = vmatprep.subr.mxu1 %v5845_v0  ;;  %v3695_v63 = vld [vmem:[%s5836_s0 + $0x438] sm:$0xff]  ;;  %v3704_v30 = vld [vmem:[%s5836_s0 + $0x480] sm:$0xff] }
  0x90   :  { %3713 = vmatprep.mubr.msk.f32.mxu0 %vm101_vm1, %v3665_v1  ;;  %v3768_v1 = vld [vmem:[%s5836_s0 + $0x5b0] sm:$0xff] }
  0x91   :  { %1249 = vmatmul.mubr.f32.gmra.mxu1 %v3738_v2  ;;  %v3771_v2 = vld [vmem:[%s5836_s0 + $0x5c8] sm:$0xff] }
  0x92   :  { %3789 = vmatprep.mubr.msk.f32.mxu1 %vm101_vm1, %v3741_v3  ;;  %v3694_v3 = vld [vmem:[%s5836_s0 + $0x430] sm:$0xff] }
  0x93   :  { %913 = vmatmul.mubr.f32.gmra.mxu0 %v3664_v4  ;;  %v3697_v4 = vld [vmem:[%s5836_s0 + $0x448] sm:$0xff] }
  0x94   :  { %3714 = vmatprep.mubr.msk.f32.mxu0 %vm101_vm1, %v3667_v5  ;;  %v3770_v5 = vld [vmem:[%s5836_s0 + $0x5c0] sm:$0xff] }
  0x95   :  { %1254 = vmatmul.mubr.f32.gmra.mxu1 %v3740_v6  ;;  %v3773_v6 = vld [vmem:[%s5836_s0 + $0x5d8] sm:$0xff] }
  0x96   :  { %3790 = vmatprep.mubr.msk.f32.mxu1 %vm101_vm1, %v3743_v7  ;;  %v3696_v7 = vld [vmem:[%s5836_s0 + $0x440] sm:$0xff] }
  0x97   :  { %918 = vmatmul.mubr.f32.gmra.mxu0 %v3666_v8  ;;  %v3699_v8 = vld [vmem:[%s5836_s0 + $0x458] sm:$0xff] }
  0x98   :  { %3715 = vmatprep.mubr.msk.f32.mxu0 %vm101_vm1, %v3669_v9  ;;  %v3772_v9 = vld [vmem:[%s5836_s0 + $0x5d0] sm:$0xff] }
  0x99   :  { %1259 = vmatmul.mubr.f32.gmra.mxu1 %v3742_v10  ;;  %v3775_v10 = vld [vmem:[%s5836_s0 + $0x5e8] sm:$0xff] }
  0x9a   :  { %3791 = vmatprep.mubr.msk.f32.mxu1 %vm101_vm1, %v3745_v11  ;;  %v3698_v11 = vld [vmem:[%s5836_s0 + $0x450] sm:$0xff] }
  0x9b   :  { %923 = vmatmul.mubr.f32.gmra.mxu0 %v3668_v19  ;;  %v1451_v19 = vld [vmem:[%s5837_s3] sm:$0xff] }
  0x9c   :  { %3716 = vmatprep.mubr.msk.f32.mxu0 %vm101_vm1, %v3671_v21  ;;  %v3701_v21 = vld [vmem:[%s5836_s0 + $0x468] sm:$0xff]  ;;  %3957 = vmatpush3.msra.mxu1 %v1451_v19 }
  0x9d   :  { %1264 = vmatmul.mubr.f32.gmra.mxu1 %v3744_v12  ;;  %v3774_v12 = vld [vmem:[%s5836_s0 + $0x5e0] sm:$0xff]  ;;  %3968 = vmatprep.subr.mxu1 %v5845_v0 }
  0x9e   :  { %3792 = vmatprep.mubr.msk.f32.mxu1 %vm101_vm1, %v3747_v22  ;;  %v1453_v22 = vld [vmem:[%s5837_s3 + $0x10] sm:$0xff] }
  0x9f   :  { %928 = vmatmul.mubr.f32.gmra.mxu0 %v3670_v23  ;;  %v3777_v23 = vld [vmem:[%s5836_s0 + $0x5f8] sm:$0xff] }
  0xa0   :  { %3717 = vmatprep.mubr.msk.f32.mxu0 %vm101_vm1, %v3673_v24  ;;  %v3700_v24 = vld [vmem:[%s5836_s0 + $0x460] sm:$0xff]  ;;  %3950 = vmatpush3.msra.mxu0 %v1453_v22 }
  0xa1   :  { %1269 = vmatmul.mubr.f32.gmra.mxu1 %v3746_v13  ;;  %v3703_v13 = vld [vmem:[%s5836_s0 + $0x478] sm:$0xff]  ;;  %3961 = vmatprep.subr.mxu0 %v5845_v0 }
  0xa2   :  { %3793 = vmatprep.mubr.msk.f32.mxu1 %vm101_vm1, %v3749_v25  ;;  %v3776_v25 = vld [vmem:[%s5836_s0 + $0x5f0] sm:$0xff] }
  0xa3   :  { %933 = vmatmul.mubr.f32.gmra.mxu0 %v3672_v26  ;;  %v3779_v26 = vld [vmem:[%s5836_s0 + $0x608] sm:$0xff] }
  0xa4   :  { %3718 = vmatprep.mubr.msk.f32.mxu0 %vm101_vm1, %v3675_v27  ;;  %v3702_v27 = vld [vmem:[%s5836_s0 + $0x470] sm:$0xff] }
  0xa5   :  { %1274 = vmatmul.mubr.f32.gmra.mxu1 %v3748_v14  ;;  %v3705_v14 = vld [vmem:[%s5836_s0 + $0x488] sm:$0xff] }
  0xa6   :  { %3794 = vmatprep.mubr.msk.f32.mxu1 %vm101_vm1, %v3751_v28  ;;  %v3778_v28 = vld [vmem:[%s5836_s0 + $0x600] sm:$0xff] }
  0xa7   :  { %938 = vmatmul.mubr.f32.gmra.mxu0 %v3674_v15  ;;  %v3707_v15 = vld [vmem:[%s5836_s0 + $0x498] sm:$0xff] }
  0xa8   :  { %3719 = vmatprep.mubr.msk.f32.mxu0 %vm101_vm1, %v3677_v31  ;;  %v3780_v31 = vld [vmem:[%s5836_s0 + $0x610] sm:$0xff] }
  0xa9   :  { %1279 = vmatmul.mubr.f32.gmra.mxu1 %v3750_v32  ;;  %v3783_v32 = vld [vmem:[%s5836_s0 + $0x628] sm:$0xff] }
  0xaa   :  { %3795 = vmatprep.mubr.msk.f32.mxu1 %vm101_vm1, %v3753_v33  ;;  %v3706_v33 = vld [vmem:[%s5836_s0 + $0x490] sm:$0xff] }
  0xab   :  { %943 = vmatmul.mubr.f32.gmra.mxu0 %v3676_v16  ;;  %v3709_v16 = vld [vmem:[%s5836_s0 + $0x4a8] sm:$0xff] }
  0xac   :  { %3720 = vmatprep.mubr.msk.f32.mxu0 %vm101_vm1, %v3679_v34  ;;  %v3782_v34 = vld [vmem:[%s5836_s0 + $0x620] sm:$0xff] }
  0xad   :  { %1284 = vmatmul.mubr.f32.gmra.mxu1 %v3752_v35 }
  0xae   :  { %3796 = vmatprep.mubr.msk.f32.mxu1 %vm101_vm1, %v3755_v36  ;;  %v3785_v36 = vld [vmem:[%s5836_s0 + $0x638] sm:$0xff] }
  0xaf   :  { %948 = vmatmul.mubr.f32.gmra.mxu0 %v3678_v17  ;;  %v3708_v17 = vld [vmem:[%s5836_s0 + $0x4a0] sm:$0xff] }
  0xb0   :  { %3721 = vmatprep.mubr.msk.f32.mxu0 %vm101_vm1, %v3681_v37 }
  0xb1   :  { %1289 = vmatmul.mubr.f32.gmra.mxu1 %v3754_v38 }
  0xb2   :  { %3797 = vmatprep.mubr.msk.f32.mxu1 %vm101_vm1, %v3757_v39 }
  0xb3   :  { %953 = vmatmul.mubr.f32.gmra.mxu0 %v3680_v18  ;;  %v3784_v18 = vld [vmem:[%s5836_s0 + $0x630] sm:$0xff] }
  0xb4   :  { %3722 = vmatprep.mubr.msk.f32.mxu0 %vm101_vm1, %v3683_v40 }
  0xb5   :  { %1294 = vmatmul.mubr.f32.gmra.mxu1 %v3756_v41 }
  0xb6   :  { %3798 = vmatprep.mubr.msk.f32.mxu1 %vm101_vm1, %v3759_v42 }
  0xb7   :  { %958 = vmatmul.mubr.f32.gmra.mxu0 %v3682_v20 }
  0xb8   :  { %3723 = vmatprep.mubr.msk.f32.mxu0 %vm101_vm1, %v3685_v43 }
  0xb9   :  { %1299 = vmatmul.mubr.f32.gmra.mxu1 %v3758_v44 }
  0xba   :  { %3799 = vmatprep.mubr.msk.f32.mxu1 %vm101_vm1, %v3761_v45 }
  0xbb   :  { %963 = vmatmul.mubr.f32.gmra.mxu0 %v3684_v46 }
  0xbc   :  { %3724 = vmatprep.mubr.msk.f32.mxu0 %vm101_vm1, %v3687_v47 }
  0xbd   :  { %1304 = vmatmul.mubr.f32.gmra.mxu1 %v3760_v48 }
  0xbe   :  { %3800 = vmatprep.mubr.msk.f32.mxu1 %vm101_vm1, %v3763_v49 }
  0xbf   :  { %968 = vmatmul.mubr.f32.gmra.mxu0 %v3686_v50 }
  0xc0   :  { %3725 = vmatprep.mubr.msk.f32.mxu0 %vm101_vm1, %v3689_v51 }
  0xc1   :  { %1309 = vmatmul.mubr.f32.gmra.mxu1 %v3762_v52 }
  0xc2   :  { %3801 = vmatprep.mubr.msk.f32.mxu1 %vm101_vm1, %v3765_v53 }
  0xc3   :  { %973 = vmatmul.mubr.f32.gmra.mxu0 %v3688_v54 }
  0xc4   :  { %3726 = vmatprep.mubr.msk.f32.mxu0 %vm101_vm1, %v3691_v55 }
  0xc5   :  { %1314 = vmatmul.mubr.f32.gmra.mxu1 %v3764_v56 }
  0xc6   :  { %3802 = vmatprep.mubr.msk.f32.mxu1 %vm101_vm1, %v3767_v57 }
  0xc7   :  { %978 = vmatmul.mubr.f32.gmra.mxu0 %v3690_v58 }
  0xc8   :  { %3727 = vmatprep.mubr.msk.f32.mxu0 %vm101_vm1, %v3693_v59 }
  0xc9   :  { %1319 = vmatmul.mubr.f32.gmra.mxu1 %v3766_v60 }
  0xca   :  { %3803 = vmatprep.mubr.msk.f32.mxu1 %vm101_vm1, %v3769_v61 }
  0xcb   :  { %983 = vmatmul.mubr.f32.gmra.mxu0 %v3692_v62 }
  0xcc   :  { %3728 = vmatprep.mubr.msk.f32.mxu0 %vm101_vm1, %v3695_v63 }
  0xcd   :  { %1324 = vmatmul.mubr.f32.gmra.mxu1 %v3768_v1 }
  0xce   :  { %3804 = vmatprep.mubr.msk.f32.mxu1 %vm101_vm1, %v3771_v2 }
  0xcf   :  { %988 = vmatmul.mubr.f32.gmra.mxu0 %v3694_v3 }
  0xd0   :  { %3729 = vmatprep.mubr.msk.f32.mxu0 %vm101_vm1, %v3697_v4 }
  0xd1   :  { %1329 = vmatmul.mubr.f32.gmra.mxu1 %v3770_v5 }
  0xd2   :  { %3805 = vmatprep.mubr.msk.f32.mxu1 %vm101_vm1, %v3773_v6 }
  0xd3   :  { %993 = vmatmul.mubr.f32.gmra.mxu0 %v3696_v7 }
  0xd4   :  { %3730 = vmatprep.mubr.msk.f32.mxu0 %vm101_vm1, %v3699_v8 }
  0xd5   :  { %1334 = vmatmul.mubr.f32.gmra.mxu1 %v3772_v9 }
  0xd6   :  { %3806 = vmatprep.mubr.msk.f32.mxu1 %vm101_vm1, %v3775_v10 }
  0xd7   :  { %998 = vmatmul.mubr.f32.gmra.mxu0 %v3698_v11 }
  0xd8   :  { %3731 = vmatprep.mubr.msk.f32.mxu0 %vm101_vm1, %v3701_v21 }
  0xd9   :  { %1339 = vmatmul.mubr.f32.gmra.mxu1 %v3774_v12 }
  0xda   :  { %3807 = vmatprep.mubr.msk.f32.mxu1 %vm101_vm1, %v3777_v23 }
  0xdb   :  { %1003 = vmatmul.mubr.f32.gmra.mxu0 %v3700_v24 }
  0xdc   :  { %3732 = vmatprep.mubr.msk.f32.mxu0 %vm101_vm1, %v3703_v13 }
  0xdd   :  { %1344 = vmatmul.mubr.f32.gmra.mxu1 %v3776_v25 }
  0xde   :  { %3808 = vmatprep.mubr.msk.f32.mxu1 %vm101_vm1, %v3779_v26 }
  0xdf   :  { %1008 = vmatmul.mubr.f32.gmra.mxu0 %v3702_v27 }
  0xe0   :  { %3733 = vmatprep.mubr.msk.f32.mxu0 %vm101_vm1, %v3705_v14 }
  0xe1   :  { %1349 = vmatmul.mubr.f32.gmra.mxu1 %v3778_v28 }
  0xe2   :  { %3809 = vmatprep.mubr.msk.f32.mxu1 %vm101_vm1, %v3781_v29 }
  0xe3   :  { %1013 = vmatmul.mubr.f32.gmra.mxu0 %v3704_v30 }
  0xe4   :  { %3734 = vmatprep.mubr.msk.f32.mxu0 %vm101_vm1, %v3707_v15 }
  0xe5   :  { %1354 = vmatmul.mubr.f32.gmra.mxu1 %v3780_v31 }
  0xe6   :  { %3810 = vmatprep.mubr.msk.f32.mxu1 %vm101_vm1, %v3783_v32 }
  0xe7   :  { %v5192_v35 = vpop.f32.mrf.mxu0  ;;  %1018 = vmatmul.mubr.f32.gmra.mxu0 %v3706_v33 }
  0xe8   :  { %3735 = vmatprep.mubr.msk.f32.mxu0 %vm101_vm1, %v3709_v16 }
  0xe9   :  { %v5201_v37 = vpop.f32.mrf.mxu1  ;;  %1359 = vmatmul.mubr.f32.gmra.mxu1 %v3782_v34  ;;  %v249_v38 = vpop.f32.mrf.mxu0 }
  0xea   :  { %v687_v39 = vmax.f32 %v5192_v35, %v5201_v37  ;;  %3811 = vmatprep.mubr.msk.f32.mxu1 %vm101_vm1, %v3785_v36 }
  0xeb   :  { %v565_v40 = vpop.f32.mrf.mxu1  ;;  %v5209_v41 = vpop.f32.mrf.mxu0  ;;  %1023 = vmatmul.mubr.f32.gmra.mxu0 %v3708_v17 }
  0xec   :  { %3951 = vmatprep.mubr.msk.f32.mxu0 %vm4183_vm2, %v5845_v0 }
  0xed   :  { %v5213_v42 = vpop.f32.mrf.mxu1  ;;  %1364 = vmatmul.mubr.f32.gmra.mxu1 %v3784_v18  ;;  %v254_v20 = vpop.f32.mrf.mxu0 }
  0xee   :  { %v688_v43 = vmax.f32 %v5209_v41, %v5213_v42  ;;  %3958 = vmatprep.mubr.msk.f32.mxu1 %vm4183_vm2, %v5845_v0 }
  0xef   :  { %v570_v44 = vpop.f32.mrf.mxu1  ;;  %v5219_v45 = vpop.f32.mrf.mxu0 }
  0xf1   :  { %v5221_v46 = vpop.f32.mrf.mxu1  ;;  %v259_v47 = vpop.f32.mrf.mxu0 }
  0xf3   :  { %v575_v49 = vpop.f32.mrf.mxu1  ;;  %v5225_v50 = vpop.f32.mrf.mxu0 }
  0xf5   :  { %v5227_v51 = vpop.f32.mrf.mxu1  ;;  %v264_v52 = vpop.f32.mrf.mxu0 }
  0xf7   :  { %v580_v54 = vpop.f32.mrf.mxu1  ;;  %v5231_v55 = vpop.f32.mrf.mxu0 }
  0xf9   :  { %v5233_v56 = vpop.f32.mrf.mxu1  ;;  %v269_v57 = vpop.f32.mrf.mxu0 }
  0xfb   :  { %v585_v59 = vpop.f32.mrf.mxu1  ;;  %v5237_v60 = vpop.f32.mrf.mxu0 }
  0xfd   :  { %v5239_v61 = vpop.f32.mrf.mxu1  ;;  %v274_v62 = vpop.f32.mrf.mxu0 }
  0xff   :  { %v590_v1 = vpop.f32.mrf.mxu1  ;;  %v5243_v2 = vpop.f32.mrf.mxu0 }
 0x101   :  { %v5245_v3 = vpop.f32.mrf.mxu1  ;;  %v279_v4 = vpop.f32.mrf.mxu0 }
 0x103   :  { %v595_v6 = vpop.f32.mrf.mxu1  ;;  %v5249_v7 = vpop.f32.mrf.mxu0 }
 0x105   :  { %v5251_v8 = vpop.f32.mrf.mxu1  ;;  %v284_v9 = vpop.f32.mrf.mxu0 }
 0x107   :  { %v600_v11 = vpop.f32.mrf.mxu1  ;;  %v5255_v19 = vpop.f32.mrf.mxu0 }
 0x109   :  { %v5257_v21 = vpop.f32.mrf.mxu1  ;;  %v289_v12 = vpop.f32.mrf.mxu0 }
 0x10b   :  { %v605_v23 = vpop.f32.mrf.mxu1  ;;  %v5261_v24 = vpop.f32.mrf.mxu0 }
 0x10d   :  { %v5263_v13 = vpop.f32.mrf.mxu1  ;;  %v294_v25 = vpop.f32.mrf.mxu0 }
 0x10f   :  { %v610_v27 = vpop.f32.mrf.mxu1  ;;  %v5267_v14 = vpop.f32.mrf.mxu0 }
 0x111   :  { %v5269_v28 = vpop.f32.mrf.mxu1  ;;  %v299_v29 = vpop.f32.mrf.mxu0 }
 0x113   :  { %v615_v15 = vpop.f32.mrf.mxu1  ;;  %v5273_v31 = vpop.f32.mrf.mxu0 }
 0x115   :  { %v5275_v32 = vpop.f32.mrf.mxu1  ;;  %v304_v33 = vpop.f32.mrf.mxu0 }
 0x117   :  { %v620_v34 = vpop.f32.mrf.mxu1  ;;  %v5279_v36 = vpop.f32.mrf.mxu0 }
 0x119   :  { %v5281_v17 = vpop.f32.mrf.mxu1  ;;  %v309_v38 = vpop.f32.mrf.mxu0 }
 0x11b   :  { %v625_v40 = vpop.f32.mrf.mxu1  ;;  %v5285_v20 = vpop.f32.mrf.mxu0 }
 0x11d   :  { %v5287_v44 = vpop.f32.mrf.mxu1  ;;  %v314_v47 = vpop.f32.mrf.mxu0 }
 0x11f   :  { %v630_v52 = vpop.f32.mrf.mxu1  ;;  %v5291_v54 = vpop.f32.mrf.mxu0 }
 0x121   :  { %v5293_v57 = vpop.f32.mrf.mxu1  ;;  %v319_v59 = vpop.f32.mrf.mxu0 }
 0x123   :  { %v635_v1 = vpop.f32.mrf.mxu1  ;;  %v5297_v4 = vpop.f32.mrf.mxu0 }
 0x125   :  { %v5299_v6 = vpop.f32.mrf.mxu1  ;;  %v324_v9 = vpop.f32.mrf.mxu0 }
 0x127   :  { %v640_v12 = vpop.f32.mrf.mxu1  ;;  %v5303_v23 = vpop.f32.mrf.mxu0 }
 0x129   :  { %v5305_v25 = vpop.f32.mrf.mxu1  ;;  %v329_v27 = vpop.f32.mrf.mxu0 }
 0x12b   :  { %v645_v15 = vpop.f32.mrf.mxu1  ;;  %v5309_v33 = vpop.f32.mrf.mxu0 }
 0x12d   :  { %v5311_v34 = vpop.f32.mrf.mxu1  ;;  %v334_v38 = vpop.f32.mrf.mxu0 }
 0x12f   :  { %v650_v47 = vpop.f32.mrf.mxu1  ;;  %v5315_v52 = vpop.f32.mrf.mxu0 }
 0x131   :  { %v5317_v59 = vpop.f32.mrf.mxu1  ;;  %v339_v1 = vpop.f32.mrf.mxu0 }
 0x133   :  { %v655_v12 = vpop.f32.mrf.mxu1  ;;  %v5321_v27 = vpop.f32.mrf.mxu0 }
 0x135   :  { %v5323_v15 = vpop.f32.mrf.mxu1  ;;  %v344_v29 = vpop.f32.mrf.mxu0 }
 0x137   :  { %v660_v11 = vpop.f32.mrf.mxu1  ;;  %v5327_v40 = vpop.f32.mrf.mxu0 }
 0x139   :  { %v5329_v47 = vpop.f32.mrf.mxu1  ;;  %v349_v62 = vpop.f32.mrf.mxu0 }
 0x13b   :  { %v665_v49 = vpop.f32.mrf.mxu1  ;;  %v5333_v9 = vpop.f32.mrf.mxu0 }
 0x13d   :  { %v5335_v12 = vpop.f32.mrf.mxu1  ;;  %v354_v18 = vpop.f32.mrf.mxu0 }
 0x13f   :  { %v670_v16 = vpop.f32.mrf.mxu1  ;;  %v5339_v38 = vpop.f32.mrf.mxu0 }
 0x141   :  { %v5341_v11 = vpop.f32.mrf.mxu1  ;;  %v359_v30 = vpop.f32.mrf.mxu0 }
 0x143   :  { %v675_v26 = vpop.f32.mrf.mxu1  ;;  %v5345_v1 = vpop.f32.mrf.mxu0 }
 0x145   :  { %v5347_v49 = vpop.f32.mrf.mxu1  ;;  %v364_v22 = vpop.f32.mrf.mxu0 }
 0x146   :  { %v5363_v22 = vld [vmem:[%s5838_s2] ss:$0 sm:$0xff] }
 0x147   :  { %v680_v10 = vpop.f32.mrf.mxu1  ;;  %v5351_v29 = vpop.f32.mrf.mxu0 }
 0x149   :  { %v5353_v16 = vpop.f32.mrf.mxu1  ;;  %v369_v5 = vpop.f32.mrf.mxu0 }
 0x14b   :  { %v685_v63 = vpop.f32.mrf.mxu1  ;;  %v904_v62 = vpop.f32.mrf.mxu0 }
 0x14c   :  { %v1028_v26 = vmax.f32 %v687_v39, %v904_v62  ;;  %v1458_v39 = vld [vmem:[%s5837_s3 + $0x38] sm:$0xff] }
 0x14d   :  { %v1245_v58 = vpop.f32.mrf.mxu1  ;;  %v906_v10 = vpop.f32.mrf.mxu0 }
 0x14e   :  { %v1369_v18 = vmax.f32 %v1028_v26, %v1245_v58  ;;  %v5847_v58 = vmax.f32 %v5219_v45, %v5221_v46  ;;  %v1456_v26 = vld [vmem:[%s5837_s3 + $0x28] sm:$0xff] }
 0x14f   :  { %v1247_v53 = vpop.f32.mrf.mxu1  ;;  %v909_v0 = vpop.f32.mrf.mxu0 }
 0x150   :  { %v1401_v5 = vadd.f32 %v5363_v22, %v1369_v18  ;;  %v1029_v63 = vmax.f32 %v688_v43, %v909_v0  ;;  %v1457_v0 = vld [vmem:[%s5837_s3 + $0x30] sm:$0xff]  ;;  %v5848_v43 = vmov 0.0  }
 0x151   :  { %v1250_v30 = vpop.f32.mrf.mxu1  ;;  %v911_v48 = vpop.f32.mrf.mxu0 }
 0x152   :  { %v1426_v35 = vmax.f32 %v1401_v5, 0.0  ;;  %v1370_v37 = vmax.f32 %v1029_v63, %v1250_v30  ;;  %v5849_v63 = vmax.f32 %v5225_v50, %v5227_v51  ;;  %v1460_v50 = vld [vmem:[%s5837_s3 + $0x48] sm:$0xff] }
 0x153   :  { %v1252_v62 = vpop.f32.mrf.mxu1  ;;  %v914_v10 = vpop.f32.mrf.mxu0 }
 0x154   :  { %v1402_v53 = vadd.f32 %v5363_v22, %v1370_v37  ;;  %v1030_v18 = vmax.f32 %v5847_v58, %v914_v10  ;;  %3959 = vmatmul.mubr.msk.f32.vlgmr.msra.gmra.mxu1 %vm1501_vm3, %v1426_v35  ;;  %v1455_v37 = vld [vmem:[%s5837_s3 + $0x20] sm:$0xff] }
 0x155   :  { %v1255_v41 = vpop.f32.mrf.mxu1  ;;  %v916_v42 = vpop.f32.mrf.mxu0  ;;  %3969 = vmatpush3.msra.mxu1 %v1458_v39  ;;  %3972 = vmatprep.mubr.msk.f32.mxu1 %vm4183_vm2, %v5848_v43 }
 0x156   :  { %v1427_v48 = vmax.f32 %v1402_v53, 0.0  ;;  %v1371_v30 = vmax.f32 %v1030_v18, %v1255_v41  ;;  %3970 = vmatprep.subr.mxu1 %v5848_v43  ;;  %v1459_v42 = vld [vmem:[%s5837_s3 + $0x40] sm:$0xff] }
 0x157   :  { %v1257_v45 = vpop.f32.mrf.mxu1  ;;  %v919_v46 = vpop.f32.mrf.mxu0  ;;  %3971 = vmatpush3.msra.mxu1 %v1457_v0  ;;  %v5850_v0 = vmax.f32 %v5231_v55, %v5233_v56  ;;  %v1462_v55 = vld [vmem:[%s5837_s3 + $0x58] sm:$0xff] }
 0x158   :  { %v1403_v5 = vadd.f32 %v5363_v22, %v1371_v30  ;;  %v1031_v35 = vmax.f32 %v5849_v63, %v919_v46  ;;  %3952 = vmatmul.mubr.msk.f32.vlgmr.msra.gmra.mxu0 %vm1501_vm3, %v1427_v48  ;;  %3982 = vmatprep.subr.mxu1 %v5848_v43  ;;  %v5851_v63 = vmax.f32 %v5237_v60, %v5239_v61  ;;  %v1464_v60 = vld [vmem:[%s5837_s3 + $0x68] sm:$0xff] }
 0x159   :  { %v1260_v39 = vpop.f32.mrf.mxu1  ;;  %v921_v62 = vpop.f32.mrf.mxu0  ;;  %3962 = vmatpush3.msra.mxu0 %v1456_v26  ;;  %3965 = vmatprep.mubr.msk.f32.mxu0 %vm4183_vm2, %v5848_v43 }
 0x15a   :  { %v1428_v10 = vmax.f32 %v1403_v5, 0.0  ;;  %v1372_v53 = vmax.f32 %v1031_v35, %v1260_v39  ;;  %3963 = vmatprep.subr.mxu0 %v5848_v43 }
 0x15b   :  { %v1262_v51 = vpop.f32.mrf.mxu1  ;;  %v924_v58 = vpop.f32.mrf.mxu0  ;;  %3964 = vmatpush3.msra.mxu0 %v1455_v37  ;;  %v1461_v37 = vld [vmem:[%s5837_s3 + $0x50] sm:$0xff] }
 0x15c   :  { %v1404_v18 = vadd.f32 %v5363_v22, %v1372_v53  ;;  %v1032_v41 = vmax.f32 %v5850_v0, %v924_v58  ;;  %3966 = vmatmul.mubr.msk.f32.vlgmr.msra.gmra.mxu0 %vm1501_vm3, %v1428_v10  ;;  %3975 = vmatprep.subr.mxu0 %v5848_v43  ;;  %v5852_v58 = vmax.f32 %v5243_v2, %v5245_v3  ;;  %v1463_v0 = vld [vmem:[%s5837_s3 + $0x60] sm:$0xff]  ;;  %v1466_v2 = vld [vmem:[%s5837_s3 + $0x78] sm:$0xff] }
 0x15d   :  { %v1265_v48 = vpop.f32.mrf.mxu1  ;;  %v926_v30 = vpop.f32.mrf.mxu0  ;;  %3976 = vmatpush3.msra.mxu0 %v1460_v50  ;;  %3979 = vmatprep.mubr.msk.f32.mxu0 %vm4183_vm2, %v5848_v43 }
 0x15e   :  { %v1429_v26 = vmax.f32 %v1404_v18, 0.0  ;;  %v1373_v45 = vmax.f32 %v1032_v41, %v1265_v48  ;;  %3977 = vmatprep.subr.mxu0 %v5848_v43 }
 0x15f   :  { %v1267_v56 = vpop.f32.mrf.mxu1  ;;  %v929_v46 = vpop.f32.mrf.mxu0  ;;  %3978 = vmatpush3.msra.mxu0 %v1459_v42 }
 0x160   :  { %v1405_v5 = vadd.f32 %v5363_v22, %v1373_v45  ;;  %v1033_v35 = vmax.f32 %v5851_v63, %v929_v46  ;;  %3973 = vmatmul.mubr.msk.f32.vlgmr.msra.gmra.mxu1 %vm1501_vm3, %v1429_v26  ;;  %3989 = vmatprep.subr.mxu0 %v5848_v43  ;;  %v1465_v46 = vld [vmem:[%s5837_s3 + $0x70] sm:$0xff] }
 0x161   :  { %v1270_v39 = vpop.f32.mrf.mxu1  ;;  %v931_v62 = vpop.f32.mrf.mxu0  ;;  %3983 = vmatpush3.msra.mxu1 %v1462_v55  ;;  %3986 = vmatprep.mubr.msk.f32.mxu1 %vm4183_vm2, %v5848_v43  ;;  %v5853_v55 = vmax.f32 %v5249_v7, %v5251_v8  ;;  %v1468_v7 = vld [vmem:[%s5837_s3 + $0x88] sm:$0xff] }
 0x162   :  { %v1430_v10 = vmax.f32 %v1405_v5, 0.0  ;;  %v1374_v53 = vmax.f32 %v1033_v35, %v1270_v39  ;;  %3984 = vmatprep.subr.mxu1 %v5848_v43 }
 0x163   :  { %v1272_v61 = vpop.f32.mrf.mxu1  ;;  %v934_v50 = vpop.f32.mrf.mxu0  ;;  %3985 = vmatpush3.msra.mxu1 %v1461_v37 }
 0x164   :  { %v1406_v51 = vadd.f32 %v5363_v22, %v1374_v53  ;;  %v1034_v18 = vmax.f32 %v5852_v58, %v934_v50  ;;  %3980 = vmatmul.mubr.msk.f32.vlgmr.msra.gmra.mxu0 %vm1501_vm3, %v1430_v10  ;;  %3996 = vmatprep.subr.mxu1 %v5848_v43  ;;  %v5854_v10 = vmax.f32 %v5255_v19, %v5257_v21  ;;  %v1470_v19 = vld [vmem:[%s5837_s3 + $0x98] sm:$0xff] }
 0x165   :  { %v1275_v41 = vpop.f32.mrf.mxu1  ;;  %v936_v42 = vpop.f32.mrf.mxu0  ;;  %3990 = vmatpush3.msra.mxu0 %v1464_v60  ;;  %3993 = vmatprep.mubr.msk.f32.mxu0 %vm4183_vm2, %v5848_v43  ;;  %v1467_v60 = vld [vmem:[%s5837_s3 + $0x80] sm:$0xff] }
 0x166   :  { %v1431_v48 = vmax.f32 %v1406_v51, 0.0  ;;  %v1375_v30 = vmax.f32 %v1034_v18, %v1275_v41  ;;  %3991 = vmatprep.subr.mxu0 %v5848_v43  ;;  %v5855_v41 = vmax.f32 %v5261_v24, %v5263_v13  ;;  %v1472_v24 = vld [vmem:[%s5837_s3 + $0xa8] sm:$0xff] }
 0x167   :  { %v1277_v3 = vpop.f32.mrf.mxu1  ;;  %v939_v26 = vpop.f32.mrf.mxu0  ;;  %3992 = vmatpush3.msra.mxu0 %v1463_v0 }
 0x168   :  { %v1407_v45 = vadd.f32 %v5363_v22, %v1375_v30  ;;  %v1035_v56 = vmax.f32 %v5853_v55, %v939_v26  ;;  %3987 = vmatmul.mubr.msk.f32.vlgmr.msra.gmra.mxu1 %vm1501_vm3, %v1431_v48  ;;  %4003 = vmatprep.subr.mxu0 %v5848_v43  ;;  %v1469_v48 = vld [vmem:[%s5837_s3 + $0x90] sm:$0xff] }
 0x169   :  { %v1280_v5 = vpop.f32.mrf.mxu1  ;;  %v941_v63 = vpop.f32.mrf.mxu0  ;;  %3997 = vmatpush3.msra.mxu1 %v1466_v2  ;;  %4000 = vmatprep.mubr.msk.f32.mxu1 %vm4183_vm2, %v5848_v43 }
 0x16a   :  { %v1432_v35 = vmax.f32 %v1407_v45, 0.0  ;;  %v1376_v37 = vmax.f32 %v1035_v56, %v1280_v5  ;;  %3998 = vmatprep.subr.mxu1 %v5848_v43  ;;  %v5856_v56 = vmax.f32 %v5267_v14, %v5269_v28  ;;  %v1471_v5 = vld [vmem:[%s5837_s3 + $0xa0] sm:$0xff]  ;;  %v1474_v14 = vld [vmem:[%s5837_s3 + $0xb8] sm:$0xff] }
 0x16b   :  { %v1282_v8 = vpop.f32.mrf.mxu1  ;;  %v944_v39 = vpop.f32.mrf.mxu0  ;;  %3999 = vmatpush3.msra.mxu1 %v1465_v46 }
 0x16c   :  { %v1408_v62 = vadd.f32 %v5363_v22, %v1376_v37  ;;  %v1036_v53 = vmax.f32 %v5854_v10, %v944_v39  ;;  %3994 = vmatmul.mubr.msk.f32.vlgmr.msra.gmra.mxu0 %vm1501_vm3, %v1432_v35  ;;  %4010 = vmatprep.subr.mxu1 %v5848_v43 }
 0x16d   :  { %v1285_v61 = vpop.f32.mrf.mxu1  ;;  %v946_v50 = vpop.f32.mrf.mxu0  ;;  %4004 = vmatpush3.msra.mxu0 %v1468_v7  ;;  %4007 = vmatprep.mubr.msk.f32.mxu0 %vm4183_vm2, %v5848_v43 }
 0x16e   :  { %v1433_v51 = vmax.f32 %v1408_v62, 0.0  ;;  %v1377_v58 = vmax.f32 %v1036_v53, %v1285_v61  ;;  %4005 = vmatprep.subr.mxu0 %v5848_v43  ;;  %v5857_v62 = vmax.f32 %v5273_v31, %v5275_v32  ;;  %v1473_v53 = vld [vmem:[%s5837_s3 + $0xb0] sm:$0xff]  ;;  %v1476_v31 = vld [vmem:[%s5837_s3 + $0xc8] sm:$0xff] }
 0x16f   :  { %v1287_v21 = vpop.f32.mrf.mxu1  ;;  %v949_v18 = vpop.f32.mrf.mxu0  ;;  %4006 = vmatpush3.msra.mxu0 %v1467_v60 }
 0x170   :  { %v1409_v0 = vadd.f32 %v5363_v22, %v1377_v58  ;;  %v1037_v42 = vmax.f32 %v5855_v41, %v949_v18  ;;  %4001 = vmatmul.mubr.msk.f32.vlgmr.msra.gmra.mxu1 %vm1501_vm3, %v1433_v51  ;;  %4017 = vmatprep.subr.mxu0 %v5848_v43  ;;  %v5858_v21 = vmax.f32 %v5279_v36, %v5281_v17  ;;  %v1478_v36 = vld [vmem:[%s5837_s3 + $0xd8] sm:$0xff] }
 0x171   :  { %v1290_v30 = vpop.f32.mrf.mxu1  ;;  %v951_v2 = vpop.f32.mrf.mxu0  ;;  %4011 = vmatpush3.msra.mxu1 %v1470_v19  ;;  %4014 = vmatprep.mubr.msk.f32.mxu1 %vm4183_vm2, %v5848_v43 }
 0x172   :  { %v1434_v3 = vmax.f32 %v1409_v0, 0.0  ;;  %v1378_v26 = vmax.f32 %v1037_v42, %v1290_v30  ;;  %4012 = vmatprep.subr.mxu1 %v5848_v43  ;;  %v1475_v0 = vld [vmem:[%s5837_s3 + $0xc0] sm:$0xff] }
 0x173   :  { %v1292_v13 = vpop.f32.mrf.mxu1  ;;  %v954_v45 = vpop.f32.mrf.mxu0  ;;  %4013 = vmatpush3.msra.mxu1 %v1469_v48 }
 0x174   :  { %v1410_v55 = vadd.f32 %v5363_v22, %v1378_v26  ;;  %v1038_v46 = vmax.f32 %v5856_v56, %v954_v45  ;;  %4008 = vmatmul.mubr.msk.f32.vlgmr.msra.gmra.mxu0 %vm1501_vm3, %v1434_v3  ;;  %4024 = vmatprep.subr.mxu1 %v5848_v43  ;;  %v5859_v26 = vmax.f32 %v5285_v20, %v5287_v44  ;;  %v1477_v13 = vld [vmem:[%s5837_s3 + $0xd0] sm:$0xff]  ;;  %v1480_v20 = vld [vmem:[%s5837_s3 + $0xe8] sm:$0xff] }
 0x175   :  { %v1295_v63 = vpop.f32.mrf.mxu1  ;;  %v956_v35 = vpop.f32.mrf.mxu0  ;;  %4018 = vmatpush3.msra.mxu0 %v1472_v24  ;;  %4021 = vmatprep.mubr.msk.f32.mxu0 %vm4183_vm2, %v5848_v43 }
 0x176   :  { %v1435_v37 = vmax.f32 %v1410_v55, 0.0  ;;  %v1379_v7 = vmax.f32 %v1038_v46, %v1295_v63  ;;  %4019 = vmatprep.subr.mxu0 %v5848_v43  ;;  %v5860_v35 = vmax.f32 %v5291_v54, %v5293_v57  ;;  %v1482_v54 = vld [vmem:[%s5837_s3 + $0xf8] sm:$0xff] }
 0x177   :  { %v1297_v28 = vpop.f32.mrf.mxu1  ;;  %v959_v8 = vpop.f32.mrf.mxu0  ;;  %4020 = vmatpush3.msra.mxu0 %v1471_v5 }
 0x178   :  { %v1411_v39 = vadd.f32 %v5363_v22, %v1379_v7  ;;  %v1039_v10 = vmax.f32 %v5857_v62, %v959_v8  ;;  %4015 = vmatmul.mubr.msk.f32.vlgmr.msra.gmra.mxu1 %vm1501_vm3, %v1435_v37  ;;  %4031 = vmatprep.subr.mxu0 %v5848_v43  ;;  %v1479_v7 = vld [vmem:[%s5837_s3 + $0xe0] sm:$0xff] }
 0x179   :  { %v1300_v60 = vpop.f32.mrf.mxu1  ;;  %v961_v61 = vpop.f32.mrf.mxu0  ;;  %4025 = vmatpush3.msra.mxu1 %v1474_v14  ;;  %4028 = vmatprep.mubr.msk.f32.mxu1 %vm4183_vm2, %v5848_v43 }
 0x17a   :  { %v1436_v50 = vmax.f32 %v1411_v39, 0.0  ;;  %v1380_v51 = vmax.f32 %v1039_v10, %v1300_v60  ;;  %4026 = vmatprep.subr.mxu1 %v5848_v43  ;;  %v1481_v61 = vld [vmem:[%s5837_s3 + $0xf0] sm:$0xff] }
 0x17b   :  { %v1302_v32 = vpop.f32.mrf.mxu1  ;;  %v964_v58 = vpop.f32.mrf.mxu0  ;;  %4027 = vmatpush3.msra.mxu1 %v1473_v53  ;;  %v5861_v53 = vmax.f32 %v5297_v4, %v5299_v6  ;;  %v1484_v4 = vld [vmem:[%s5837_s3 + $0x108] sm:$0xff] }
 0x17c   :  { %v1412_v19 = vadd.f32 %v5363_v22, %v1380_v51  ;;  %v1040_v18 = vmax.f32 %v5858_v21, %v964_v58  ;;  %4022 = vmatmul.mubr.msk.f32.vlgmr.msra.gmra.mxu0 %vm1501_vm3, %v1436_v50  ;;  %4038 = vmatprep.subr.mxu1 %v5848_v43  ;;  %v5862_v21 = vmax.f32 %v5303_v23, %v5305_v25  ;;  %v1486_v23 = vld [vmem:[%s5837_s3 + $0x118] sm:$0xff] }
 0x17d   :  { %v1305_v41 = vpop.f32.mrf.mxu1  ;;  %v966_v42 = vpop.f32.mrf.mxu0  ;;  %4032 = vmatpush3.msra.mxu0 %v1476_v31  ;;  %4035 = vmatprep.mubr.msk.f32.mxu0 %vm4183_vm2, %v5848_v43 }
 0x17e   :  { %v1437_v48 = vmax.f32 %v1412_v19, 0.0  ;;  %v1381_v30 = vmax.f32 %v1040_v18, %v1305_v41  ;;  %4033 = vmatprep.subr.mxu0 %v5848_v43 }
 0x17f   :  { %v1307_v17 = vpop.f32.mrf.mxu1  ;;  %v969_v2 = vpop.f32.mrf.mxu0  ;;  %4034 = vmatpush3.msra.mxu0 %v1475_v0  ;;  %v1483_v0 = vld [vmem:[%s5837_s3 + $0x100] sm:$0xff] }
 0x180   :  { %v1413_v3 = vadd.f32 %v5363_v22, %v1381_v30  ;;  %v1041_v24 = vmax.f32 %v5859_v26, %v969_v2  ;;  %4029 = vmatmul.mubr.msk.f32.vlgmr.msra.gmra.mxu1 %vm1501_vm3, %v1437_v48  ;;  %4045 = vmatprep.subr.mxu0 %v5848_v43  ;;  %v5863_v2 = vmax.f32 %v5309_v33, %v5311_v34  ;;  %v1485_v26 = vld [vmem:[%s5837_s3 + $0x110] sm:$0xff]  ;;  %v1488_v33 = vld [vmem:[%s5837_s3 + $0x128] sm:$0xff] }
 0x181   :  { %v1310_v45 = vpop.f32.mrf.mxu1  ;;  %v971_v55 = vpop.f32.mrf.mxu0  ;;  %4039 = vmatpush3.msra.mxu1 %v1478_v36  ;;  %4042 = vmatprep.mubr.msk.f32.mxu1 %vm4183_vm2, %v5848_v43 }
 0x182   :  { %v1438_v56 = vmax.f32 %v1413_v3, 0.0  ;;  %v1382_v46 = vmax.f32 %v1041_v24, %v1310_v45  ;;  %4040 = vmatprep.subr.mxu1 %v5848_v43 }
 0x183   :  { %v1312_v44 = vpop.f32.mrf.mxu1  ;;  %v974_v5 = vpop.f32.mrf.mxu0  ;;  %4041 = vmatpush3.msra.mxu1 %v1477_v13 }
 0x184   :  { %v1414_v63 = vadd.f32 %v5363_v22, %v1382_v46  ;;  %v1042_v37 = vmax.f32 %v5860_v35, %v974_v5  ;;  %4036 = vmatmul.mubr.msk.f32.vlgmr.msra.gmra.mxu0 %vm1501_vm3, %v1438_v56  ;;  %4052 = vmatprep.subr.mxu1 %v5848_v43  ;;  %v1487_v5 = vld [vmem:[%s5837_s3 + $0x120] sm:$0xff] }
 0x185   :  { %v1315_v14 = vpop.f32.mrf.mxu1  ;;  %v976_v28 = vpop.f32.mrf.mxu0  ;;  %4046 = vmatpush3.msra.mxu0 %v1480_v20  ;;  %4049 = vmatprep.mubr.msk.f32.mxu0 %vm4183_vm2, %v5848_v43  ;;  %v5864_v20 = vmax.f32 %v5315_v52, %v5317_v59  ;;  %v1490_v52 = vld [vmem:[%s5837_s3 + $0x138] sm:$0xff] }
 0x186   :  { %v1439_v8 = vmax.f32 %v1414_v63, 0.0  ;;  %v1383_v39 = vmax.f32 %v1042_v37, %v1315_v14  ;;  %4047 = vmatprep.subr.mxu0 %v5848_v43 }
 0x187   :  { %v1317_v57 = vpop.f32.mrf.mxu1  ;;  %v979_v62 = vpop.f32.mrf.mxu0  ;;  %4048 = vmatpush3.msra.mxu0 %v1479_v7 }
 0x188   :  { %v1415_v10 = vadd.f32 %v5363_v22, %v1383_v39  ;;  %v1043_v60 = vmax.f32 %v5861_v53, %v979_v62  ;;  %4043 = vmatmul.mubr.msk.f32.vlgmr.msra.gmra.mxu1 %vm1501_vm3, %v1439_v8  ;;  %4059 = vmatprep.subr.mxu0 %v5848_v43  ;;  %v5865_v8 = vmax.f32 %v5321_v27, %v5323_v15  ;;  %v1492_v27 = vld [vmem:[%s5837_s3 + $0x148] sm:$0xff] }
 0x189   :  { %v1320_v50 = vpop.f32.mrf.mxu1  ;;  %v981_v51 = vpop.f32.mrf.mxu0  ;;  %4053 = vmatpush3.msra.mxu1 %v1482_v54  ;;  %4056 = vmatprep.mubr.msk.f32.mxu1 %vm4183_vm2, %v5848_v43  ;;  %v1489_v54 = vld [vmem:[%s5837_s3 + $0x130] sm:$0xff] }
 0x18a   :  { %v1440_v31 = vmax.f32 %v1415_v10, 0.0  ;;  %v1384_v32 = vmax.f32 %v1043_v60, %v1320_v50  ;;  %4054 = vmatprep.subr.mxu1 %v5848_v43  ;;  %v5866_v50 = vmax.f32 %v5327_v40, %v5329_v47  ;;  %v1494_v40 = vld [vmem:[%s5837_s3 + $0x158] sm:$0xff] }
 0x18b   :  { %v1322_v6 = vpop.f32.mrf.mxu1  ;;  %v984_v58 = vpop.f32.mrf.mxu0  ;;  %4055 = vmatpush3.msra.mxu1 %v1481_v61 }
 0x18c   :  { %v1416_v19 = vadd.f32 %v5363_v22, %v1384_v32  ;;  %v1044_v18 = vmax.f32 %v5862_v21, %v984_v58  ;;  %4050 = vmatmul.mubr.msk.f32.vlgmr.msra.gmra.mxu0 %vm1501_vm3, %v1440_v31  ;;  %4066 = vmatprep.subr.mxu1 %v5848_v43  ;;  %v1491_v31 = vld [vmem:[%s5837_s3 + $0x140] sm:$0xff] }
 0x18d   :  { %v1325_v41 = vpop.f32.mrf.mxu1  ;;  %v986_v42 = vpop.f32.mrf.mxu0  ;;  %4060 = vmatpush3.msra.mxu0 %v1484_v4  ;;  %4063 = vmatprep.mubr.msk.f32.mxu0 %vm4183_vm2, %v5848_v43 }
 0x18e   :  { %v1441_v48 = vmax.f32 %v1416_v19, 0.0  ;;  %v1385_v30 = vmax.f32 %v1044_v18, %v1325_v41  ;;  %4061 = vmatprep.subr.mxu0 %v5848_v43  ;;  %v5867_v18 = vmax.f32 %v5333_v9, %v5335_v12  ;;  %v1493_v41 = vld [vmem:[%s5837_s3 + $0x150] sm:$0xff]  ;;  %v1496_v9 = vld [vmem:[%s5837_s3 + $0x168] sm:$0xff] }
 0x18f   :  { %v1327_v25 = vpop.f32.mrf.mxu1  ;;  %v989_v36 = vpop.f32.mrf.mxu0  ;;  %4062 = vmatpush3.msra.mxu0 %v1483_v0 }
 0x190   :  { %v1417_v17 = vadd.f32 %v5363_v22, %v1385_v30  ;;  %v1045_v3 = vmax.f32 %v5863_v2, %v989_v36  ;;  %4057 = vmatmul.mubr.msk.f32.vlgmr.msra.gmra.mxu1 %vm1501_vm3, %v1441_v48  ;;  %4073 = vmatprep.subr.mxu0 %v5848_v43 }
 0x191   :  { %v1330_v24 = vpop.f32.mrf.mxu1  ;;  %v991_v13 = vpop.f32.mrf.mxu0  ;;  %4067 = vmatpush3.msra.mxu1 %v1486_v23  ;;  %4070 = vmatprep.mubr.msk.f32.mxu1 %vm4183_vm2, %v5848_v43 }
 0x192   :  { %v1442_v45 = vmax.f32 %v1417_v17, 0.0  ;;  %v1386_v55 = vmax.f32 %v1045_v3, %v1330_v24  ;;  %4068 = vmatprep.subr.mxu1 %v5848_v43  ;;  %v5868_v17 = vmax.f32 %v5339_v38, %v5341_v11  ;;  %v1495_v3 = vld [vmem:[%s5837_s3 + $0x160] sm:$0xff]  ;;  %v1498_v38 = vld [vmem:[%s5837_s3 + $0x178] sm:$0xff] }
 0x193   :  { %v1332_v34 = vpop.f32.mrf.mxu1  ;;  %v994_v56 = vpop.f32.mrf.mxu0  ;;  %4069 = vmatpush3.msra.mxu1 %v1485_v26 }
 0x194   :  { %v1418_v46 = vadd.f32 %v5363_v22, %v1386_v55  ;;  %v1046_v44 = vmax.f32 %v5864_v20, %v994_v56  ;;  %4064 = vmatmul.mubr.msk.f32.vlgmr.msra.gmra.mxu0 %vm1501_vm3, %v1442_v45  ;;  %4080 = vmatprep.subr.mxu1 %v5848_v43  ;;  %v5869_v34 = vmax.f32 %v5345_v1, %v5347_v49  ;;  %v1500_v1 = vld [vmem:[%s5837_s3 + $0x188] sm:$0xff] }
 0x195   :  { %v1335_v63 = vpop.f32.mrf.mxu1  ;;  %v996_v35 = vpop.f32.mrf.mxu0  ;;  %4074 = vmatpush3.msra.mxu0 %v1488_v33  ;;  %4077 = vmatprep.mubr.msk.f32.mxu0 %vm4183_vm2, %v5848_v43 }
 0x196   :  { %v1443_v37 = vmax.f32 %v1418_v46, 0.0  ;;  %v1387_v7 = vmax.f32 %v1046_v44, %v1335_v63  ;;  %4075 = vmatprep.subr.mxu0 %v5848_v43  ;;  %v1497_v46 = vld [vmem:[%s5837_s3 + $0x170] sm:$0xff] }
 0x197   :  { %v1337_v59 = vpop.f32.mrf.mxu1  ;;  %v999_v14 = vpop.f32.mrf.mxu0  ;;  %4076 = vmatpush3.msra.mxu0 %v1487_v5 }
 0x198   :  { %v1419_v28 = vadd.f32 %v5363_v22, %v1387_v7  ;;  %v1047_v39 = vmax.f32 %v5865_v8, %v999_v14  ;;  %4071 = vmatmul.mubr.msk.f32.vlgmr.msra.gmra.mxu1 %vm1501_vm3, %v1443_v37  ;;  %4087 = vmatprep.subr.mxu0 %v5848_v43  ;;  %v5870_v7 = vmax.f32 %v5351_v29, %v5353_v16  ;;  %v1499_v59 = vld [vmem:[%s5837_s3 + $0x180] sm:$0xff] }
 0x199   :  { %v1340_v57 = vpop.f32.mrf.mxu1  ;;  %v1001_v62 = vpop.f32.mrf.mxu0  ;;  %4081 = vmatpush3.msra.mxu1 %v1490_v52  ;;  %4084 = vmatprep.mubr.msk.f32.mxu1 %vm4183_vm2, %v5848_v43 }
 0x19a   :  { %v1444_v10 = vmax.f32 %v1419_v28, 0.0  ;;  %v1388_v53 = vmax.f32 %v1047_v39, %v1340_v57  ;;  %4082 = vmatprep.subr.mxu1 %v5848_v43  ;;  %v3373_v57 = vld [vmem:[%s5839_s5 + $0x70] sm:$0xff]  ;;  %v3371_v62 = vld [vmem:[%s5839_s5 + $0x60] sm:$0xff] }
 0x19b   :  { %v1342_v15 = vpop.f32.mrf.mxu1  ;;  %v1004_v60 = vpop.f32.mrf.mxu0  ;;  %4083 = vmatpush3.msra.mxu1 %v1489_v54 }
 0x19c   :  { %v1420_v61 = vadd.f32 %v5363_v22, %v1388_v53  ;;  %v1048_v51 = vmax.f32 %v5866_v50, %v1004_v60  ;;  %4078 = vmatmul.mubr.msk.f32.vlgmr.msra.gmra.mxu0 %vm1501_vm3, %v1444_v10  ;;  %4094 = vmatprep.subr.mxu1 %v5848_v43  ;;  %v3370_v10 = vld [vmem:[%s5839_s5 + $0x58] sm:$0xff]  ;;  %v3369_v53 = vld [vmem:[%s5839_s5 + $0x50] sm:$0xff]  ;;  %v3367_v15 = vld [vmem:[%s5839_s5 + $0x40] sm:$0xff] }
 0x19d   :  { %v1345_v32 = vpop.f32.mrf.mxu1  ;;  %v1006_v4 = vpop.f32.mrf.mxu0  ;;  %4088 = vmatpush3.msra.mxu0 %v1492_v27  ;;  %4091 = vmatprep.mubr.msk.f32.mxu0 %vm4183_vm2, %v5848_v43  ;;  %v3368_v27 = vld [vmem:[%s5839_s5 + $0x48] sm:$0xff]  ;;  %v3366_v60 = vld [vmem:[%s5839_s5 + $0x38] sm:$0xff] }
 0x19e   :  { %v1445_v6 = vmax.f32 %v1420_v61, 0.0  ;;  %v1389_v58 = vmax.f32 %v1048_v51, %v1345_v32  ;;  %4089 = vmatprep.subr.mxu0 %v5848_v43  ;;  %v3365_v61 = vld [vmem:[%s5839_s5 + $0x30] sm:$0xff]  ;;  %v3364_v50 = vld [vmem:[%s5839_s5 + $0x28] sm:$0xff]  ;;  %v3363_v51 = vld [vmem:[%s5839_s5 + $0x20] sm:$0xff] }
 0x19f   :  { %v1347_v47 = vpop.f32.mrf.mxu1  ;;  %v1009_v19 = vpop.f32.mrf.mxu0  ;;  %4090 = vmatpush3.msra.mxu0 %v1491_v31  ;;  %v3362_v31 = vld [vmem:[%s5839_s5 + $0x18] sm:$0xff]  ;;  %v3361_v32 = vld [vmem:[%s5839_s5 + $0x10] sm:$0xff]  ;;  %v3360_v4 = vld [vmem:[%s5839_s5 + $0x8] sm:$0xff] }
 0x1a0   :  { %v1421_v21 = vadd.f32 %v5363_v22, %v1389_v58  ;;  %v1049_v0 = vmax.f32 %v5867_v18, %v1009_v19  ;;  %4085 = vmatmul.mubr.msk.f32.vlgmr.msra.gmra.mxu1 %vm1501_vm3, %v1445_v6  ;;  %4101 = vmatprep.subr.mxu0 %v5848_v43  ;;  %v3359_v6 = vld [vmem:[%s5839_s5] sm:$0xff]  ;;  %v3466_v58 = vld [vmem:[%s5840_s7 + $0x50] sm:$0xf]  ;;  %v3463_v19 = vld [vmem:[%s5840_s7 + $0x38] sm:$0xff] }
 0x1a1   :  { %v1350_v42 = vpop.f32.mrf.mxu1  ;;  %v1011_v48 = vpop.f32.mrf.mxu0  ;;  %4095 = vmatpush3.msra.mxu1 %v1494_v40  ;;  %4098 = vmatprep.mubr.msk.f32.mxu1 %vm4183_vm2, %v5848_v43  ;;  %v3465_v40 = vld [vmem:[%s5840_s7 + $0x48] sm:$0xff]  ;;  %v3464_v47 = vld [vmem:[%s5840_s7 + $0x40] sm:$0xff] }
 0x1a2   :  { %v1446_v30 = vmax.f32 %v1421_v21, 0.0  ;;  %v1390_v23 = vmax.f32 %v1049_v0, %v1350_v42  ;;  %4096 = vmatprep.subr.mxu1 %v5848_v43  ;;  %v3462_v21 = vld [vmem:[%s5840_s7 + $0x30] sm:$0xff]  ;;  %v3461_v18 = vld [vmem:[%s5840_s7 + $0x28] sm:$0xff]  ;;  %v3460_v0 = vld [vmem:[%s5840_s7 + $0x20] sm:$0xff] }
 0x1a3   :  { %v1352_v12 = vpop.f32.mrf.mxu1  ;;  %v1014_v25 = vpop.f32.mrf.mxu0  ;;  %4097 = vmatpush3.msra.mxu1 %v1493_v41  ;;  %v3459_v41 = vld [vmem:[%s5840_s7 + $0x18] sm:$0xff] }
 0x1a4   :  { %v1422_v36 = vadd.f32 %v5363_v22, %v1390_v23  ;;  %v1050_v2 = vmax.f32 %v5868_v17, %v1014_v25  ;;  %4092 = vmatmul.mubr.msk.f32.vlgmr.msra.gmra.mxu0 %vm1501_vm3, %v1446_v30  ;;  %4108 = vmatprep.subr.mxu1 %v5848_v43 }
 0x1a5   :  { %v1355_v26 = vpop.f32.mrf.mxu1  ;;  %v1016_v24 = vpop.f32.mrf.mxu0  ;;  %4102 = vmatpush3.msra.mxu0 %v1496_v9  ;;  %4105 = vmatprep.mubr.msk.f32.mxu0 %vm4183_vm2, %v5848_v43 }
 0x1a6   :  { %v1447_v13 = vmax.f32 %v1422_v36, 0.0  ;;  %v1391_v45 = vmax.f32 %v1050_v2, %v1355_v26  ;;  %4103 = vmatprep.subr.mxu0 %v5848_v43 }
 0x1a7   :  { %v1357_v11 = vpop.f32.mrf.mxu1  ;;  %v1019_v55 = vpop.f32.mrf.mxu0  ;;  %4104 = vmatpush3.msra.mxu0 %v1495_v3 }
 0x1a8   :  { %v1423_v33 = vadd.f32 %v5363_v22, %v1391_v45  ;;  %v1051_v56 = vmax.f32 %v5869_v34, %v1019_v55  ;;  %4099 = vmatmul.mubr.msk.f32.vlgmr.msra.gmra.mxu1 %vm1501_vm3, %v1447_v13  ;;  %4115 = vmatprep.subr.mxu0 %v5848_v43 }
 0x1a9   :  { %v1360_v20 = vpop.f32.mrf.mxu1  ;;  %v1021_v44 = vpop.f32.mrf.mxu0  ;;  %4109 = vmatpush3.msra.mxu1 %v1498_v38  ;;  %4112 = vmatprep.mubr.msk.f32.mxu1 %vm4183_vm2, %v5848_v43 }
 0x1aa   :  { %v1448_v5 = vmax.f32 %v1423_v33, 0.0  ;;  %v1392_v63 = vmax.f32 %v1051_v56, %v1360_v20  ;;  %4110 = vmatprep.subr.mxu1 %v5848_v43 }
 0x1ab   :  { %v1362_v49 = vpop.f32.mrf.mxu1  ;;  %v1024_v35 = vpop.f32.mrf.mxu0  ;;  %4111 = vmatpush3.msra.mxu1 %v1497_v46 }
 0x1ac   :  { %v1424_v37 = vadd.f32 %v5363_v22, %v1392_v63  ;;  %v1052_v52 = vmax.f32 %v5870_v7, %v1024_v35  ;;  %4106 = vmatmul.mubr.msk.f32.vlgmr.msra.gmra.mxu0 %vm1501_vm3, %v1448_v5  ;;  %4122 = vmatprep.subr.mxu1 %v5848_v43 }
 0x1ad   :  { %v1365_v14 = vpop.f32.mrf.mxu1  ;;  %v1026_v28 = vpop.f32.mrf.mxu0  ;;  %4116 = vmatpush3.msra.mxu0 %v1500_v1  ;;  %4119 = vmatprep.mubr.msk.f32.mxu0 %vm4183_vm2, %v5848_v43 }
 0x1ae   :  { %v1449_v8 = vmax.f32 %v1424_v37, 0.0  ;;  %v1393_v39 = vmax.f32 %v1052_v52, %v1365_v14  ;;  %4117 = vmatprep.subr.mxu0 %v5848_v43 }
 0x1af   :  { %v1367_v29 = vpop.f32.mrf.mxu1  ;;  %4118 = vmatpush3.msra.mxu0 %v1499_v59 }
 0x1b0   :  { %v1425_v16 = vadd.f32 %v5363_v22, %v1393_v39  ;;  %4113 = vmatmul.mubr.msk.f32.vlgmr.msra.gmra.mxu1 %vm1501_vm3, %v1449_v8  ;;  %4155 = vmatprep.subr.mxu0 %v5848_v43  ;;  %v3372_v22 = vld [vmem:[%s5839_s5 + $0x68] sm:$0xff] }
 0x1b1   :  { %4152 = vmatprep.mubr.msk.f32.mxu1 %vm4183_vm2, %v5848_v43  ;;  %4123 = vmatpush3.msra.mxu1 %v3373_v57 }
 0x1b2   :  { %v1450_v54 = vmax.f32 %v1425_v16, 0.0  ;;  %4124 = vmatprep.subr.mxu1 %v5848_v43 }
 0x1b3   :  { %4125 = vmatpush3.msra.mxu1 %v3372_v22 }
 0x1b4   :  { %4120 = vmatmul.mubr.msk.f32.vlgmr.msra.gmra.mxu0 %vm1501_vm3, %v1450_v54  ;;  %4126 = vmatprep.subr.mxu1 %v5848_v43 }
 0x1b5   :  { %4177 = vmatprep.mubr.msk.f32.mxu0 %vm4183_vm2, %v5848_v43  ;;  %4127 = vmatpush3.msra.mxu1 %v3371_v62 }
 0x1b6   :  { %4128 = vmatprep.subr.mxu1 %v5848_v43  ;;  %4156 = vmatpush3.msk.msra.mxu0 %vm3478_vm4, %v3466_v58 }
 0x1b7   :  { %4129 = vmatpush3.msra.mxu1 %v3370_v10  ;;  %4157 = vmatprep.subr.mxu0 %v5848_v43 }
 0x1b8   :  { %4130 = vmatprep.subr.mxu1 %v5848_v43  ;;  %4158 = vmatpush3.msra.mxu0 %v3465_v40 }
 0x1b9   :  { %4131 = vmatpush3.msra.mxu1 %v3369_v53  ;;  %4159 = vmatprep.subr.mxu0 %v5848_v43 }
 0x1ba   :  { %4132 = vmatprep.subr.mxu1 %v5848_v43  ;;  %4160 = vmatpush3.msra.mxu0 %v3464_v47 }
 0x1bb   :  { %4133 = vmatpush3.msra.mxu1 %v3368_v27  ;;  %4161 = vmatprep.subr.mxu0 %v5848_v43 }
 0x1bc   :  { %4134 = vmatprep.subr.mxu1 %v5848_v43  ;;  %4162 = vmatpush3.msra.mxu0 %v3463_v19 }
 0x1bd   :  { %4135 = vmatpush3.msra.mxu1 %v3367_v15  ;;  %4163 = vmatprep.subr.mxu0 %v5848_v43 }
 0x1be   :  { %4136 = vmatprep.subr.mxu1 %v5848_v43  ;;  %4164 = vmatpush3.msra.mxu0 %v3462_v21 }
 0x1bf   :  { %4137 = vmatpush3.msra.mxu1 %v3366_v60  ;;  %4165 = vmatprep.subr.mxu0 %v5848_v43 }
 0x1c0   :  { %4138 = vmatprep.subr.mxu1 %v5848_v43  ;;  %4166 = vmatpush3.msra.mxu0 %v3461_v18 }
 0x1c1   :  { %4139 = vmatpush3.msra.mxu1 %v3365_v61  ;;  %4167 = vmatprep.subr.mxu0 %v5848_v43 }
 0x1c2   :  { %4140 = vmatprep.subr.mxu1 %v5848_v43  ;;  %4168 = vmatpush3.msra.mxu0 %v3460_v0 }
 0x1c3   :  { %4141 = vmatpush3.msra.mxu1 %v3364_v50  ;;  %4169 = vmatprep.subr.mxu0 %v5848_v43 }
 0x1c4   :  { %4142 = vmatprep.subr.mxu1 %v5848_v43  ;;  %4170 = vmatpush3.msra.mxu0 %v3459_v41 }
 0x1c5   :  { %4143 = vmatpush3.msra.mxu1 %v3363_v51  ;;  %4171 = vmatprep.subr.mxu0 %v5848_v43 }
 0x1c6   :  { %4144 = vmatprep.subr.mxu1 %v5848_v43 }
 0x1c7   :  { %4145 = vmatpush3.msra.mxu1 %v3362_v31 }
 0x1c8   :  { %4146 = vmatprep.subr.mxu1 %v5848_v43 }
 0x1c9   :  { %4147 = vmatpush3.msra.mxu1 %v3361_v32 }
 0x1ca   :  { %4148 = vmatprep.subr.mxu1 %v5848_v43 }
 0x1cb   :  { %4149 = vmatpush3.msra.mxu1 %v3360_v4 }
 0x1cc   :  { %4150 = vmatprep.subr.mxu1 %v5848_v43 }
 0x1cd   :  { %4151 = vmatpush3.msra.mxu1 %v3359_v6 }
 0x214   :  { %v1644_v42 = vpop.f32.mrf.mxu1 }
 0x216   :  { %v3960_v48 = vpop.f32.mrf.mxu1 }
 0x218   :  { %v1571_v30 = vpop.f32.mrf.mxu0 }
 0x219   :  { %v1645_v1 = vadd.f32 %v1644_v42, %v1571_v30 }
 0x21a   :  { %v3953_v23 = vpop.f32.mrf.mxu0 }
 0x21c   :  { %v1717_v9 = vpop.f32.mrf.mxu0 }
 0x21d   :  { %v1721_v35 = vadd.f32 %v1717_v9, %v1645_v1 }
 0x21e   :  { %v3967_v12 = vpop.f32.mrf.mxu0 }
 0x220   :  { %v1791_v25 = vpop.f32.mrf.mxu1 }
 0x221   :  { %v1795_v7 = vadd.f32 %v1791_v25, %v1721_v35 }
 0x222   :  { %v3974_v36 = vpop.f32.mrf.mxu1 }
 0x224   :  { %v1865_v17 = vpop.f32.mrf.mxu0 }
 0x225   :  { %v1869_v59 = vadd.f32 %v1865_v17, %v1795_v7 }
 0x226   :  { %v3981_v2 = vpop.f32.mrf.mxu0 }
 0x227   :  { %v3838_v2 = vld [vmem:[%s5841_s4] ss:$0 sm:$0xff] }
 0x228   :  { %v1939_v3 = vpop.f32.mrf.mxu1 }
 0x229   :  { %v1943_v28 = vadd.f32 %v1939_v3, %v1869_v59 }
 0x22a   :  { %v3988_v26 = vpop.f32.mrf.mxu1 }
 0x22c   :  { %v2013_v24 = vpop.f32.mrf.mxu0 }
 0x22d   :  { %v2017_v39 = vadd.f32 %v2013_v24, %v1943_v28 }
 0x22e   :  { %v3995_v13 = vpop.f32.mrf.mxu0 }
 0x230   :  { %v2087_v45 = vpop.f32.mrf.mxu1 }
 0x231   :  { %v2091_v16 = vadd.f32 %v2087_v45, %v2017_v39  ;;  %v3458_v45 = vld [vmem:[%s5840_s7 + $0x10] sm:$0xff] }
 0x232   :  { %v4002_v38 = vpop.f32.mrf.mxu1  ;;  %4172 = vmatpush3.msra.mxu0 %v3458_v45 }
 0x233   :  { %4173 = vmatprep.subr.mxu0 %v5848_v43  ;;  %v3457_v38 = vld [vmem:[%s5840_s7 + $0x8] sm:$0xff] }
 0x234   :  { %v2161_v11 = vpop.f32.mrf.mxu0  ;;  %4174 = vmatpush3.msra.mxu0 %v3457_v38 }
 0x235   :  { %v2165_v57 = vadd.f32 %v2161_v11, %v2091_v16  ;;  %v3456_v11 = vld [vmem:[%s5840_s7] sm:$0xff]  ;;  %4175 = vmatprep.subr.mxu0 %v5848_v43 }
 0x236   :  { %v4009_v55 = vpop.f32.mrf.mxu0  ;;  %4176 = vmatpush3.msra.mxu0 %v3456_v11 }
 0x237   :  { %v3839_v55 = vld [vmem:[%s5842_s6] ss:$0 sm:$0xff] }
 0x238   :  { %v2235_v33 = vpop.f32.mrf.mxu1 }
 0x239   :  { %v2239_v62 = vadd.f32 %v2235_v33, %v2165_v57 }
 0x23a   :  { %v4016_v34 = vpop.f32.mrf.mxu1 }
 0x23c   :  { %v2309_v56 = vpop.f32.mrf.mxu0 }
 0x23d   :  { %v2313_v53 = vadd.f32 %v2309_v56, %v2239_v62 }
 0x23e   :  { %v4023_v46 = vpop.f32.mrf.mxu0 }
 0x240   :  { %v2383_v20 = vpop.f32.mrf.mxu1 }
 0x241   :  { %v2387_v15 = vadd.f32 %v2383_v20, %v2313_v53  ;;  %v3841_v20 = vld [vmem:[%s5843_s8] ss:$0 sm:$0xff] }
 0x242   :  { %v4030_v44 = vpop.f32.mrf.mxu1 }
 0x244   :  { %v2457_v5 = vpop.f32.mrf.mxu0 }
 0x245   :  { %v2461_v61 = vadd.f32 %v2457_v5, %v2387_v15 }
 0x246   :  { %v4037_v63 = vpop.f32.mrf.mxu0 }
 0x248   :  { %v2531_v49 = vpop.f32.mrf.mxu1 }
 0x249   :  { %v2535_v51 = vadd.f32 %v2531_v49, %v2461_v61 }
 0x24a   :  { %v4044_v37 = vpop.f32.mrf.mxu1 }
 0x24c   :  { %v2605_v52 = vpop.f32.mrf.mxu0 }
 0x24d   :  { %v2609_v32 = vadd.f32 %v2605_v52, %v2535_v51 }
 0x24e   :  { %v4051_v14 = vpop.f32.mrf.mxu0 }
 0x250   :  { %v2679_v8 = vpop.f32.mrf.mxu1 }
 0x251   :  { %v2683_v6 = vadd.f32 %v2679_v8, %v2609_v32 }
 0x252   :  { %v4058_v29 = vpop.f32.mrf.mxu1 }
 0x254   :  { %v2753_v54 = vpop.f32.mrf.mxu0 }
 0x255   :  { %v2757_v40 = vadd.f32 %v2753_v54, %v2683_v6 }
 0x256   :  { %v4065_v22 = vpop.f32.mrf.mxu0 }
 0x258   :  { %v2827_v10 = vpop.f32.mrf.mxu1 }
 0x259   :  { %v2831_v19 = vadd.f32 %v2827_v10, %v2757_v40 }
 0x25a   :  { %v4072_v27 = vpop.f32.mrf.mxu1 }
 0x25c   :  { %v2901_v60 = vpop.f32.mrf.mxu0 }
 0x25d   :  { %v2905_v18 = vadd.f32 %v2901_v60, %v2831_v19 }
 0x25e   :  { %v4079_v50 = vpop.f32.mrf.mxu0 }
 0x260   :  { %v2975_v31 = vpop.f32.mrf.mxu1 }
 0x261   :  { %v2979_v41 = vadd.f32 %v2975_v31, %v2905_v18 }
 0x262   :  { %v4086_v4 = vpop.f32.mrf.mxu1 }
 0x264   :  { %v3049_v58 = vpop.f32.mrf.mxu0 }
 0x265   :  { %v3053_v48 = vadd.f32 %v3049_v58, %v2979_v41 }
 0x266   :  { %v4093_v47 = vpop.f32.mrf.mxu0 }
 0x268   :  { %v3123_v21 = vpop.f32.mrf.mxu1 }
 0x269   :  { %v3127_v23 = vadd.f32 %v3123_v21, %v3053_v48 }
 0x26a   :  { %v4100_v0 = vpop.f32.mrf.mxu1 }
 0x26c   :  { %v3197_v42 = vpop.f32.mrf.mxu0 }
 0x26d   :  { %v3201_v12 = vadd.f32 %v3197_v42, %v3127_v23 }
 0x26e   :  { %v4107_v30 = vpop.f32.mrf.mxu0 }
 0x270   :  { %v3271_v9 = vpop.f32.mrf.mxu1 }
 0x271   :  { %v3275_v36 = vadd.f32 %v3271_v9, %v3201_v12 }
 0x272   :  { %v4114_v25 = vpop.f32.mrf.mxu1 }
 0x274   :  { %v3345_v17 = vpop.f32.mrf.mxu0 }
 0x275   :  { %v3349_v3 = vadd.f32 %v3345_v17, %v3275_v36 }
 0x276   :  { %v4121_v26 = vpop.f32.mrf.mxu0 }
 0x277   :  { %v3357_v24 = vadd.f32 %v3838_v2, %v3349_v3 }
 0x279   :  { %v3358_v13 = vmax.f32 %v3357_v24, 0.0 }
 0x27b   :  { %4153 = vmatmul.mubr.msk.f32.vlgmr.msra.gmra.mxu1 %vm3381_vm5, %v3358_v13 }
 0x33b   :  { %v3451_v33 = vpop.f32.mrf.mxu1 }
 0x33c   :  { %v3452_v34 = vadd.f32 %v3839_v55, %v3451_v33 }
 0x33d   :  { %v4154_v56 = vpop.f32.mrf.mxu1 }
 0x33e   :  { %v3455_v46 = vmax.f32 %v3452_v34, 0.0 }
 0x340   :  { %4178 = vmatmul.mubr.msk.f32.vlgmr.msra.gmra.mxu0 %vm3474_vm6, %v3455_v46 }
 0x400   :  { %v3548_v44 = vpop.f32.mrf.mxu0 }
 0x401   :  { %v3549_v5 = vadd.f32 %v3841_v20, %v3548_v44 }
 0x402   :  { %v4179_v63 = vpop.f32.mrf.mxu0 }
 0x403   :  { %3553 = vst.msk [vmem:[%s5844_s9] sm:$0xff] %vm3552_vm7, %v3549_v5 }

</bundles_post_ra>
